<compile_context>
chip_gen: v6e
topology: v6e:2x2x1
jax: 0.10.0
libtpu: 0.0.40
codegen_flags: <defaults>
</compile_context>

<pallas_src>
import functools

import jax
import jax.numpy as jnp
from jax.experimental import pallas as pl
from jax.experimental.pallas import tpu as pltpu


# ----------------------------------------------------------------------------
# Pallas kernel
# ----------------------------------------------------------------------------
def _layernorm_rows_kernel(x_ref, g_ref, b_ref, o_ref, *, eps, d):
    """Row-wise LayerNorm: x_ref is a (tm, D) tile holding full rows.

    mean/std are computed over the full row (the last dim is never tiled, so
    each grid step owns complete samples).  std is the unbiased estimator
    (divide by D-1) to match torch.Tensor.std default.
    """
    x = x_ref[...]                                           # (tm, D) f32
    mean = jnp.mean(x, axis=-1, keepdims=True)               # (tm, 1)
    diff = x - mean
    var = jnp.sum(diff * diff, axis=-1, keepdims=True) / (d - 1.0)
    std = jnp.sqrt(var)
    y = diff / (std + eps)                                   # (x - mean)/(std + eps)
    o_ref[...] = y * g_ref[...] + b_ref[...]                 # per-channel affine


# ----------------------------------------------------------------------------
# Wrapper
# ----------------------------------------------------------------------------
def layer_norm(x, gamma, beta, *, eps=1e-5, affine=True):
    """x: (N, C, *spatial) any-rank >= 2.  gamma/beta: (C,).  Returns same shape."""
    orig_shape = x.shape
    N, C = orig_shape[0], orig_shape[1]
    D = 1
    for s in orig_shape[1:]:
        D *= s
    spatial = D // C

    x2 = x.reshape(N, D).astype(jnp.float32)

    # Expand per-channel affine params to a lane-dense (1, D) row:
    # flattened sample index = c*spatial + s  ->  repeat each gamma[c] `spatial` times.
    if affine:
        g_row = jnp.repeat(gamma.astype(jnp.float32), spatial).reshape(1, D)
        b_row = jnp.repeat(beta.astype(jnp.float32), spatial).reshape(1, D)
    else:
        g_row = jnp.ones((1, D), jnp.float32)
        b_row = jnp.zeros((1, D), jnp.float32)

    # Row-tile size: sublane-aligned (multiple of 8), capped so a (tm, D) f32
    # tile stays around ~2 MiB (double-buffered input + output fits easily in
    # every generation's scoped VMEM, including v5e's 16 MiB default).
    tm = max(8, min(256, ((2 << 20) // max(1, D * 4)) // 8 * 8))
    Np = ((N + tm - 1) // tm) * tm
    if Np != N:
        # Padded rows are all-zero -> std=0 -> output = beta (finite); sliced off below.
        x2 = jnp.pad(x2, ((0, Np - N), (0, 0)))

    kernel = functools.partial(_layernorm_rows_kernel, eps=float(eps), d=float(D))

    out = pl.pallas_call(
        kernel,
        out_shape=jax.ShapeDtypeStruct((Np, D), jnp.float32),
        grid=(Np // tm,),
        in_specs=[
            pl.BlockSpec((tm, D), lambda i: (i, 0)),   # x rows (tiled)
            pl.BlockSpec((1, D), lambda i: (0, 0)),    # gamma row (resident)
            pl.BlockSpec((1, D), lambda i: (0, 0)),    # beta row (resident)
        ],
        out_specs=pl.BlockSpec((tm, D), lambda i: (i, 0)),
        compiler_params=pltpu.CompilerParams(
            dimension_semantics=("parallel",),         # megacore-shardable row axis
        ),
    )(x2, g_row, b_row)

    return out[:N].reshape(orig_shape)


# ----------------------------------------------------------------------------
# Pure-JAX reference (mirrors the PyTorch module exactly) for verification
# ----------------------------------------------------------------------------
def layer_norm_ref(x, gamma, beta, eps=1e-5):
    x = x.astype(jnp.float32)
    N = x.shape[0]
    xf = x.reshape(N, -1)
    # (batch==1 global-stats branch is numerically identical to this for N==1)
    mean = xf.mean(axis=1)
    std = jnp.sqrt(((xf - mean[:, None]) ** 2).sum(axis=1) / (xf.shape[1] - 1))
    bshape = (-1,) + (1,) * (x.ndim - 1)
    y = (x - mean.reshape(bshape)) / (std.reshape(bshape) + eps)
    gshape = (1, -1) + (1,) * (x.ndim - 2)
    return y * gamma.reshape(gshape).astype(jnp.float32) + beta.reshape(gshape).astype(jnp.float32)


if __name__ == "__main__":
    key = jax.random.PRNGKey(0)
    kx, kg = jax.random.split(key)

    # Module spec: LayerNorm(num_features=C) applied to an NCHW tensor.
    N, C, H, W = 2, 4, 16, 16
    x = jax.random.normal(kx, (N, C, H, W), jnp.float32)
    gamma = jax.random.uniform(kg, (C,), jnp.float32)     # torch .uniform_()
    beta = jnp.zeros((C,), jnp.float32)                   # torch zeros

    out = layer_norm(x, gamma, beta, eps=1e-5, affine=True)
    out = jax.block_until_ready(out)

    ref = layer_norm_ref(x, gamma, beta, eps=1e-5)
    assert out.shape == (N, C, H, W)
    assert bool(jnp.all(jnp.isfinite(out)))
    assert bool(jnp.allclose(out, ref, rtol=1e-5, atol=1e-5)), \
        float(jnp.max(jnp.abs(out - ref)))

    print("KERNEL_OK")
</pallas_src>

<mosaic_0001>
module attributes {stable_mosaic.version = 11 : i64} {
  func.func @_layernorm_rows_kernel(%arg0: i32, %arg1: memref<256x1024xf32, #tpu.memory_space<vmem>>, %arg2: memref<1x1024xf32, #tpu.memory_space<vmem>>, %arg3: memref<1x1024xf32, #tpu.memory_space<vmem>>, %arg4: memref<256x1024xf32, #tpu.memory_space<vmem>>) attributes {dimension_semantics = [#tpu.dimension_semantics<parallel>], iteration_bounds = array<i64: 1>, scalar_prefetch = 0 : i64, scratch_operands = 0 : i64, tpu.core_type = #tpu.core_type<tc>, window_params = [{transform_indices = @transform_0, window_bounds = array<i64: 256, 1024>}, {pipeline_mode = #tpu.pipeline_mode<synchronous>, transform_indices = @transform_1, window_bounds = array<i64: 1, 1024>}, {pipeline_mode = #tpu.pipeline_mode<synchronous>, transform_indices = @transform_2, window_bounds = array<i64: 1, 1024>}, {transform_indices = @transform_3, window_bounds = array<i64: 256, 1024>}]} {
    %c0 = arith.constant 0 : index
    %c0_0 = arith.constant 0 : index
    %0 = vector.load %arg1[%c0, %c0_0] : memref<256x1024xf32, #tpu.memory_space<vmem>>, vector<256x1024xf32>
    %cst = arith.constant dense<0.000000e+00> : vector<256xf32>
    %1 = vector.multi_reduction <add>, %0, %cst [1] : vector<256x1024xf32> to vector<256xf32>
    %2 = vector.shape_cast %1 : vector<256xf32> to vector<256x1xf32>
    %cst_1 = arith.constant 1.024000e+03 : f32
    %3 = vector.broadcast %cst_1 : f32 to vector<256x1xf32>
    %4 = arith.divf %2, %3 : vector<256x1xf32>
    %5 = vector.broadcast %4 : vector<256x1xf32> to vector<256x1024xf32>
    %6 = arith.subf %0, %5 : vector<256x1024xf32>
    %7 = arith.mulf %6, %6 : vector<256x1024xf32>
    %cst_2 = arith.constant dense<0.000000e+00> : vector<256xf32>
    %8 = vector.multi_reduction <add>, %7, %cst_2 [1] : vector<256x1024xf32> to vector<256xf32>
    %9 = vector.shape_cast %8 : vector<256xf32> to vector<256x1xf32>
    %cst_3 = arith.constant 1.023000e+03 : f32
    %10 = vector.broadcast %cst_3 : f32 to vector<256x1xf32>
    %11 = arith.divf %9, %10 : vector<256x1xf32>
    %12 = math.sqrt %11 : vector<256x1xf32>
    %cst_4 = arith.constant 9.99999974E-6 : f32
    %13 = vector.broadcast %cst_4 : f32 to vector<256x1xf32>
    %14 = arith.addf %12, %13 : vector<256x1xf32>
    %15 = vector.broadcast %14 : vector<256x1xf32> to vector<256x1024xf32>
    %16 = arith.divf %6, %15 : vector<256x1024xf32>
    %c0_5 = arith.constant 0 : index
    %c0_6 = arith.constant 0 : index
    %17 = vector.load %arg2[%c0_5, %c0_6] : memref<1x1024xf32, #tpu.memory_space<vmem>>, vector<1x1024xf32>
    %18 = vector.broadcast %17 : vector<1x1024xf32> to vector<256x1024xf32>
    %19 = arith.mulf %16, %18 : vector<256x1024xf32>
    %c0_7 = arith.constant 0 : index
    %c0_8 = arith.constant 0 : index
    %20 = vector.load %arg3[%c0_7, %c0_8] : memref<1x1024xf32, #tpu.memory_space<vmem>>, vector<1x1024xf32>
    %21 = vector.broadcast %20 : vector<1x1024xf32> to vector<256x1024xf32>
    %22 = arith.addf %19, %21 : vector<256x1024xf32>
    %c0_9 = arith.constant 0 : index
    %c0_10 = arith.constant 0 : index
    %23 = vector.load %arg4[%c0_9, %c0_10] : memref<256x1024xf32, #tpu.memory_space<vmem>>, vector<256x1024xf32>
    tpu.vector_store %arg4[%c0_9, %c0_10], %22 {strides = array<i32>} : memref<256x1024xf32, #tpu.memory_space<vmem>>, vector<256x1024xf32>,
    return
  }
  func.func @transform_0(%arg0: i32) -> (i32, i32) {
    %c0_i32 = arith.constant 0 : i32
    %c0_i32_0 = arith.constant 0 : i32
    return %arg0, %c0_i32 : i32, i32
  }
  func.func @transform_1(%arg0: i32) -> (i32, i32) {
    %c0_i32 = arith.constant 0 : i32
    %c0_i32_0 = arith.constant 0 : i32
    %c0_i32_1 = arith.constant 0 : i32
    return %c0_i32, %c0_i32_0 : i32, i32
  }
  func.func @transform_2(%arg0: i32) -> (i32, i32) {
    %c0_i32 = arith.constant 0 : i32
    %c0_i32_0 = arith.constant 0 : i32
    %c0_i32_1 = arith.constant 0 : i32
    return %c0_i32, %c0_i32_0 : i32, i32
  }
  func.func @transform_3(%arg0: i32) -> (i32, i32) {
    %c0_i32 = arith.constant 0 : i32
    %c0_i32_0 = arith.constant 0 : i32
    return %arg0, %c0_i32 : i32, i32
  }
}

</mosaic_0001>

<bundles_post_ra>
// kernel: tpu_custom_call.1
= control target key start
LH: loop header
LB: loop body
LE: loop exit
PB: predicated region body
PF: predicated region fallthrough
CT: control target
= control target key end

     0   :  { %8 = vsyncpa [#allocation3], 0  ;;  %s6143_s0 = inlined_call_operand.hbm [shape: f32[256,1024], index: 0, kind: input, shape index: {}]   ;;  %s6144_s1 = inlined_call_operand.hbm [shape: f32[1,1024], index: 1, kind: input, shape index: {}]   ;;  %s6145_s2 = inlined_call_operand.hbm [shape: f32[1,1024], index: 2, kind: input, shape index: {}]   ;;  %s6146_s3 = inlined_call_operand.hbm [shape: f32[256,1024], index: 3, kind: output, shape index: {}]  }
   0x1   :  { %9 = vsyncpa [#allocation6], 0 }
   0x2   :  { %10 = vsyncpa [#allocation4], 0  ;;  %s3345_s12 = smov [#allocation5]   ;;  %s3346_s14 = smov [#allocation2]  }
   0x3   :  { %s29_s13 = sshll.u32 %s3345_s12, 4  ;;  %s16_s15 = sshll.u32 %s3346_s14, 4  ;;  %s30_s13 = int_to_ptr.vmem [resolvable:$true] %s29_s13  ;;  %s17_s15 = int_to_ptr.vmem [resolvable:$true] %s16_s15 }
   0x4   :  { %s3267_s16 = scalar_lea.vmem %s30_s13, 128  ;;  %p3272_p1 = scmp.lt.s32.totalorder %s30_s13, %s30_s13 }
   0x5   :  { %p3268_p0 = scmp.ne.s32.totalorder %s30_s13, %s3267_s16  ;;  %p3273_p2 = scmp.lt.s32.totalorder %s3267_s16, %s3267_s16 }
   0x7   :  { %p3274_p3 = por %p3273_p2, %p3272_p1 }
   0x9   :  { %p3275_p4 = pnand %p3274_p3, %p3268_p0 }
   0xb   :  { %3278 = shalt.err (!%p3275_p4)
}
   0xc   :  { %32 = dma.hbm_to_vmem [thread:$0]  %s6144_s1, 128, %s30_s13, [#allocation6]  }
   0xd   :  { %s3287_s19 = scalar_lea.vmem %s17_s15, 32768  ;;  %p3292_p6 = scmp.lt.s32.totalorder %s17_s15, %s17_s15 }
   0xe   :  { %p3288_p5 = scmp.ne.s32.totalorder %s17_s15, %s3287_s19  ;;  %p3293_p7 = scmp.lt.s32.totalorder %s3287_s19, %s3287_s19 }
  0x10   :  { %p3294_p8 = por %p3293_p7, %p3292_p6 }
  0x12   :  { %p3295_p9 = pnand %p3294_p8, %p3288_p5 }
  0x14   :  { %3298 = shalt.err (!%p3295_p9)
}
  0x15   :  { %s3347_s20 = smov 1024   ;;  %s3348_s21 = smov 64  }
  0x16   :  { %22 = dma.hbm_to_vmem [thread:$0]  %s6143_s0, 32768, %s17_s15, [#allocation3], %s3347_s20, %s3347_s20, %s3348_s21  }
  0x17   :  { %s3349_s24 = smov [#allocation7]  }
  0x18   :  { %s39_s25 = sshll.u32 %s3349_s24, 4  ;;  %s40_s25 = int_to_ptr.vmem [resolvable:$true] %s39_s25 }
  0x19   :  { %s3307_s1 = scalar_lea.vmem %s40_s25, 128  ;;  %p3312_p11 = scmp.lt.s32.totalorder %s40_s25, %s40_s25 }
  0x1a   :  { %p3308_p10 = scmp.ne.s32.totalorder %s40_s25, %s3307_s1  ;;  %p3313_p12 = scmp.lt.s32.totalorder %s3307_s1, %s3307_s1 }
  0x1c   :  { %p3314_p13 = por %p3313_p12, %p3312_p11 }
  0x1e   :  { %p3315_p0 = pnand %p3314_p13, %p3308_p10 }
  0x20   :  { %3318 = shalt.err (!%p3315_p0)
}
  0x21   :  { %42 = dma.hbm_to_vmem [thread:$0]  %s6145_s2, 128, %s40_s25, [#allocation6]  }
  0x22   :  { %3339 = dma.done.wait [#allocation3], 32768  }
  0x23   :  { %3340 = vsyncadd [#allocation3], 4294934528 }
  0x24   :  { %3341 = dma.done.wait [#allocation6], 256  }
  0x25   :  { %3342 = vsyncadd [#allocation6], 4294967040  ;;  %v68_v0 = vld [vmem:[#allocation2 + $0x80] sm:$0xff]  ;;  %v69_v1 = vld [vmem:[#allocation2 + $0x88] sm:$0xff]  ;;  %s3350_s0 = smov [#allocation8]  }
  0x26   :  { %v70_v2 = vld [vmem:[#allocation2 + $0x90] sm:$0xff]  ;;  %v326_v3 = vadd.f32 %v69_v1, %v68_v0  ;;  %v71_v4 = vld [vmem:[#allocation2 + $0x98] sm:$0xff]  ;;  %v52_v5 = vld [vmem:[#allocation2] sm:$0xff]  ;;  %s2863_s2 = sshll.u32 %s3350_s0, 4  ;;  %s2864_s2 = int_to_ptr.vmem [resolvable:$true] %s2863_s2 }
  0x27   :  { %v53_v7 = vld [vmem:[#allocation2 + $0x8] sm:$0xff]  ;;  %v54_v8 = vld [vmem:[#allocation2 + $0x10] sm:$0xff]  ;;  %v72_v9 = vld [vmem:[#allocation2 + $0xa0] sm:$0xff]  ;;  %s3319_s28 = scalar_lea.vmem %s2864_s2, 32768  ;;  %p3324_p2 = scmp.lt.s32.totalorder %s2864_s2, %s2864_s2 }
  0x28   :  { %v327_v6 = vadd.f32 %v326_v3, %v70_v2  ;;  %v308_v10 = vadd.f32 %v53_v7, %v52_v5  ;;  %v3383_v12 = vld [vmem:[#allocation2 + $0x18] sm:$0xff]  ;;  %v76_v13 = vld [vmem:[#allocation2 + $0xc0] sm:$0xff]  ;;  %v77_v14 = vld [vmem:[#allocation2 + $0xc8] sm:$0xff]  ;;  %p3320_p1 = scmp.ne.s32.totalorder %s2864_s2, %s3319_s28  ;;  %p3325_p3 = scmp.lt.s32.totalorder %s3319_s28, %s3319_s28 }
  0x29   :  { %v3385_v15 = vld [vmem:[#allocation2 + $0xa8] sm:$0xff]  ;;  %v78_v17 = vld [vmem:[#allocation2 + $0xd0] sm:$0xff]  ;;  %v335_v18 = vadd.f32 %v77_v14, %v76_v13  ;;  %v56_v21 = vld [vmem:[#allocation2 + $0x20] sm:$0xff] }
  0x2a   :  { %v328_v11 = vadd.f32 %v327_v6, %v71_v4  ;;  %v309_v16 = vadd.f32 %v308_v10, %v54_v8  ;;  %v74_v19 = vld [vmem:[#allocation2 + $0xb0] sm:$0xff]  ;;  %v79_v22 = vld [vmem:[#allocation2 + $0xd8] sm:$0xff]  ;;  %v60_v25 = vld [vmem:[#allocation2 + $0x40] sm:$0xff]  ;;  %p3326_p4 = por %p3325_p3, %p3324_p2 }
  0x2b   :  { %v336_v24 = vadd.f32 %v335_v18, %v78_v17  ;;  %v61_v26 = vld [vmem:[#allocation2 + $0x48] sm:$0xff]  ;;  %v62_v27 = vld [vmem:[#allocation2 + $0x50] sm:$0xff]  ;;  %v75_v28 = vld [vmem:[#allocation2 + $0xb8] sm:$0xff] }
  0x2c   :  { %v329_v20 = vadd.f32 %v328_v11, %v72_v9  ;;  %v310_v23 = vadd.f32 %v309_v16, %v3383_v12  ;;  %v3389_v30 = vld [vmem:[#allocation2 + $0x28] sm:$0xff]  ;;  %v80_v31 = vld [vmem:[#allocation2 + $0xe0] sm:$0xff]  ;;  %v317_v32 = vadd.f32 %v61_v26, %v60_v25  ;;  %v3391_v33 = vld [vmem:[#allocation2 + $0x30] sm:$0xff]  ;;  %p3327_p5 = pnand %p3326_p4, %p3320_p1 }
  0x2d   :  { %v337_v35 = vadd.f32 %v336_v24, %v79_v22  ;;  %v63_v36 = vld [vmem:[#allocation2 + $0x58] sm:$0xff]  ;;  %v92_v37 = vld [vmem:[#allocation2 + $0x140] sm:$0xff]  ;;  %v81_v39 = vld [vmem:[#allocation2 + $0xe8] sm:$0xff] }
  0x2e   :  { %v330_v29 = vadd.f32 %v329_v20, %v3385_v15  ;;  %v311_v34 = vadd.f32 %v310_v23, %v56_v21  ;;  %v318_v40 = vadd.f32 %v317_v32, %v62_v27  ;;  %v93_v41 = vld [vmem:[#allocation2 + $0x148] sm:$0xff]  ;;  %v94_v42 = vld [vmem:[#allocation2 + $0x150] sm:$0xff]  ;;  %v3393_v43 = vld [vmem:[#allocation2 + $0x38] sm:$0xff] }
  0x2f   :  { %v82_v45 = vld [vmem:[#allocation2 + $0xf0] sm:$0xff]  ;;  %v338_v46 = vadd.f32 %v337_v35, %v80_v31  ;;  %v64_v47 = vld [vmem:[#allocation2 + $0x60] sm:$0xff]  ;;  %v353_v48 = vadd.f32 %v93_v41, %v92_v37  ;;  %v95_v51 = vld [vmem:[#allocation2 + $0x158] sm:$0xff] }
  0x30   :  { %v331_v38 = vadd.f32 %v330_v29, %v74_v19  ;;  %v312_v44 = vadd.f32 %v311_v34, %v3389_v30  ;;  %v319_v50 = vadd.f32 %v318_v40, %v63_v36  ;;  %v84_v52 = vld [vmem:[#allocation2 + $0x100] sm:$0xff]  ;;  %v85_v53 = vld [vmem:[#allocation2 + $0x108] sm:$0xff]  ;;  %v83_v55 = vld [vmem:[#allocation2 + $0xf8] sm:$0xff] }
  0x31   :  { %v339_v56 = vadd.f32 %v338_v46, %v81_v39  ;;  %v65_v57 = vld [vmem:[#allocation2 + $0x68] sm:$0xff]  ;;  %v354_v58 = vadd.f32 %v353_v48, %v94_v42  ;;  %v86_v59 = vld [vmem:[#allocation2 + $0x110] sm:$0xff]  ;;  %v344_v60 = vadd.f32 %v85_v53, %v84_v52  ;;  %v96_v63 = vld [vmem:[#allocation2 + $0x160] sm:$0xff] }
  0x32   :  { %v332_v49 = vadd.f32 %v331_v38, %v75_v28  ;;  %v313_v54 = vadd.f32 %v312_v44, %v3391_v33  ;;  %v3397_v61 = vld [vmem:[#allocation2 + $0x70] sm:$0xff]  ;;  %v320_v62 = vadd.f32 %v319_v50, %v64_v47  ;;  %v87_v0 = vld [vmem:[#allocation2 + $0x118] sm:$0xff]  ;;  %v108_v5 = vld [vmem:[#allocation2 + $0x1c0] sm:$0xff] }
  0x33   :  { %v340_v2 = vadd.f32 %v339_v56, %v82_v45  ;;  %v355_v3 = vadd.f32 %v354_v58, %v95_v51  ;;  %v345_v4 = vadd.f32 %v344_v60, %v86_v59  ;;  %v109_v6 = vld [vmem:[#allocation2 + $0x1c8] sm:$0xff]  ;;  %v110_v7 = vld [vmem:[#allocation2 + $0x1d0] sm:$0xff]  ;;  %v3400_v8 = vld [vmem:[#allocation2 + $0x78] sm:$0xff] }
  0x34   :  { %333 = vadd.xlane.f32.xlu1 %v332_v49  ;;  %v314_v1 = vadd.f32 %v313_v54, %v3393_v43  ;;  %v321_v9 = vadd.f32 %v320_v62, %v65_v57  ;;  %v97_v10 = vld [vmem:[#allocation2 + $0x168] sm:$0xff]  ;;  %v88_v11 = vld [vmem:[#allocation2 + $0x120] sm:$0xff]  ;;  %v371_v13 = vadd.f32 %v109_v6, %v108_v5  ;;  %v98_v16 = vld [vmem:[#allocation2 + $0x170] sm:$0xff] }
  0x35   :  { %v341_v14 = vadd.f32 %v340_v2, %v83_v55  ;;  %v356_v17 = vadd.f32 %v355_v3, %v96_v63  ;;  %v346_v18 = vadd.f32 %v345_v4, %v87_v0  ;;  %v111_v19 = vld [vmem:[#allocation2 + $0x1d8] sm:$0xff]  ;;  %v100_v20 = vld [vmem:[#allocation2 + $0x180] sm:$0xff]  ;;  %v89_v22 = vld [vmem:[#allocation2 + $0x128] sm:$0xff] }
  0x36   :  { %315 = vadd.xlane.f32.xlu0 %v314_v1  ;;  %v322_v21 = vadd.f32 %v321_v9, %v3397_v61  ;;  %v372_v23 = vadd.f32 %v371_v13, %v110_v7  ;;  %v101_v24 = vld [vmem:[#allocation2 + $0x188] sm:$0xff]  ;;  %v102_v25 = vld [vmem:[#allocation2 + $0x190] sm:$0xff]  ;;  %v99_v26 = vld [vmem:[#allocation2 + $0x178] sm:$0xff] }
  0x37   :  { %v357_v27 = vadd.f32 %v356_v17, %v97_v10  ;;  %v90_v28 = vld [vmem:[#allocation2 + $0x130] sm:$0xff]  ;;  %v347_v29 = vadd.f32 %v346_v18, %v88_v11  ;;  %v112_v31 = vld [vmem:[#allocation2 + $0x1e0] sm:$0xff]  ;;  %v362_v32 = vadd.f32 %v101_v24, %v100_v20  ;;  %v103_v36 = vld [vmem:[#allocation2 + $0x198] sm:$0xff] }
  0x38   :  { %342 = vadd.xlane.f32.xlu1 %v341_v14  ;;  %v323_v34 = vadd.f32 %v322_v21, %v3400_v8  ;;  %v373_v35 = vadd.f32 %v372_v23, %v111_v19  ;;  %v124_v37 = vld [vmem:[#allocation2 + $0x240] sm:$0xff]  ;;  %v125_v38 = vld [vmem:[#allocation2 + $0x248] sm:$0xff]  ;;  %v91_v40 = vld [vmem:[#allocation2 + $0x138] sm:$0xff] }
  0x39   :  { %v358_v39 = vadd.f32 %v357_v27, %v98_v16  ;;  %v348_v41 = vadd.f32 %v347_v29, %v89_v22  ;;  %v113_v42 = vld [vmem:[#allocation2 + $0x1e8] sm:$0xff]  ;;  %v363_v44 = vadd.f32 %v362_v32, %v102_v25  ;;  %v126_v45 = vld [vmem:[#allocation2 + $0x250] sm:$0xff]  ;;  %v389_v46 = vadd.f32 %v125_v38, %v124_v37  ;;  %v104_v49 = vld [vmem:[#allocation2 + $0x1a0] sm:$0xff] }
  0x3a   :  { %324 = vadd.xlane.f32.xlu0 %v323_v34  ;;  %v114_v47 = vld [vmem:[#allocation2 + $0x1f0] sm:$0xff]  ;;  %v374_v48 = vadd.f32 %v373_v35, %v112_v31  ;;  %v127_v50 = vld [vmem:[#allocation2 + $0x258] sm:$0xff]  ;;  %v116_v55 = vld [vmem:[#allocation2 + $0x200] sm:$0xff] }
  0x3b   :  { %v359_v51 = vadd.f32 %v358_v39, %v99_v26  ;;  %v349_v52 = vadd.f32 %v348_v41, %v90_v28  ;;  %v364_v53 = vadd.f32 %v363_v44, %v103_v36  ;;  %v390_v54 = vadd.f32 %v389_v46, %v126_v45  ;;  %v117_v56 = vld [vmem:[#allocation2 + $0x208] sm:$0xff]  ;;  %v118_v57 = vld [vmem:[#allocation2 + $0x210] sm:$0xff]  ;;  %v115_v58 = vld [vmem:[#allocation2 + $0x1f8] sm:$0xff] }
  0x3c   :  { %v375_v59 = vadd.f32 %v374_v48, %v113_v42  ;;  %v105_v60 = vld [vmem:[#allocation2 + $0x1a8] sm:$0xff]  ;;  %v128_v62 = vld [vmem:[#allocation2 + $0x260] sm:$0xff]  ;;  %v380_v63 = vadd.f32 %v117_v56, %v116_v55  ;;  %v106_v1 = vld [vmem:[#allocation2 + $0x1b0] sm:$0xff] }
  0x3d   :  { %360 = vadd.xlane.f32.xlu1 %v359_v51  ;;  %v350_v0 = vadd.f32 %v349_v52, %v91_v40  ;;  %v365_v2 = vadd.f32 %v364_v53, %v104_v49  ;;  %v391_v3 = vadd.f32 %v390_v54, %v127_v50  ;;  %v119_v4 = vld [vmem:[#allocation2 + $0x218] sm:$0xff]  ;;  %v140_v5 = vld [vmem:[#allocation2 + $0x2c0] sm:$0xff]  ;;  %v129_v7 = vld [vmem:[#allocation2 + $0x268] sm:$0xff] }
  0x3e   :  { %v376_v6 = vadd.f32 %v375_v59, %v114_v47  ;;  %v381_v9 = vadd.f32 %v380_v63, %v118_v57  ;;  %v141_v10 = vld [vmem:[#allocation2 + $0x2c8] sm:$0xff]  ;;  %v142_v11 = vld [vmem:[#allocation2 + $0x2d0] sm:$0xff]  ;;  %v107_v13 = vld [vmem:[#allocation2 + $0x1b8] sm:$0xff] }
  0x3f   :  { %351 = vadd.xlane.f32.xlu0 %v350_v0  ;;  %v366_v14 = vadd.f32 %v365_v2, %v105_v60  ;;  %v130_v16 = vld [vmem:[#allocation2 + $0x270] sm:$0xff]  ;;  %v392_v17 = vadd.f32 %v391_v3, %v128_v62  ;;  %v120_v18 = vld [vmem:[#allocation2 + $0x220] sm:$0xff]  ;;  %v407_v19 = vadd.f32 %v141_v10, %v140_v5  ;;  %v143_v22 = vld [vmem:[#allocation2 + $0x2d8] sm:$0xff] }
  0x40   :  { %v377_v20 = vadd.f32 %v376_v6, %v115_v58  ;;  %v382_v21 = vadd.f32 %v381_v9, %v119_v4  ;;  %v132_v23 = vld [vmem:[#allocation2 + $0x280] sm:$0xff]  ;;  %v133_v24 = vld [vmem:[#allocation2 + $0x288] sm:$0xff]  ;;  %v131_v26 = vld [vmem:[#allocation2 + $0x278] sm:$0xff] }
  0x41   :  { %v367_v25 = vadd.f32 %v366_v14, %v106_v1  ;;  %v393_v27 = vadd.f32 %v392_v17, %v129_v7  ;;  %v121_v28 = vld [vmem:[#allocation2 + $0x228] sm:$0xff]  ;;  %v408_v29 = vadd.f32 %v407_v19, %v142_v11  ;;  %v134_v31 = vld [vmem:[#allocation2 + $0x290] sm:$0xff]  ;;  %v398_v32 = vadd.f32 %v133_v24, %v132_v23  ;;  %v144_v36 = vld [vmem:[#allocation2 + $0x2e0] sm:$0xff] }
  0x42   :  { %378 = vadd.xlane.f32.xlu1 %v377_v20  ;;  %v122_v34 = vld [vmem:[#allocation2 + $0x230] sm:$0xff]  ;;  %v383_v35 = vadd.f32 %v382_v21, %v120_v18  ;;  %v135_v37 = vld [vmem:[#allocation2 + $0x298] sm:$0xff]  ;;  %v156_v42 = vld [vmem:[#allocation2 + $0x340] sm:$0xff] }
  0x43   :  { %v368_v38 = vadd.f32 %v367_v25, %v107_v13  ;;  %v394_v39 = vadd.f32 %v393_v27, %v130_v16  ;;  %v409_v40 = vadd.f32 %v408_v29, %v143_v22  ;;  %v399_v41 = vadd.f32 %v398_v32, %v134_v31  ;;  %v157_v44 = vld [vmem:[#allocation2 + $0x348] sm:$0xff]  ;;  %v158_v45 = vld [vmem:[#allocation2 + $0x350] sm:$0xff]  ;;  %v123_v46 = vld [vmem:[#allocation2 + $0x238] sm:$0xff] }
  0x44   :  { %v384_v47 = vadd.f32 %v383_v35, %v121_v28  ;;  %v145_v48 = vld [vmem:[#allocation2 + $0x2e8] sm:$0xff]  ;;  %v136_v49 = vld [vmem:[#allocation2 + $0x2a0] sm:$0xff]  ;;  %v425_v50 = vadd.f32 %v157_v44, %v156_v42  ;;  %v146_v52 = vld [vmem:[#allocation2 + $0x2f0] sm:$0xff] }
  0x45   :  { %369 = vadd.xlane.f32.xlu0 %v368_v38  ;;  %v395_v51 = vadd.f32 %v394_v39, %v131_v26  ;;  %v410_v53 = vadd.f32 %v409_v40, %v144_v36  ;;  %v400_v54 = vadd.f32 %v399_v41, %v135_v37  ;;  %v159_v55 = vld [vmem:[#allocation2 + $0x358] sm:$0xff]  ;;  %v148_v56 = vld [vmem:[#allocation2 + $0x300] sm:$0xff]  ;;  %v137_v58 = vld [vmem:[#allocation2 + $0x2a8] sm:$0xff] }
  0x46   :  { %v385_v57 = vadd.f32 %v384_v47, %v122_v34  ;;  %v426_v59 = vadd.f32 %v425_v50, %v158_v45  ;;  %v149_v60 = vld [vmem:[#allocation2 + $0x308] sm:$0xff]  ;;  %v150_v62 = vld [vmem:[#allocation2 + $0x310] sm:$0xff]  ;;  %v147_v63 = vld [vmem:[#allocation2 + $0x2f8] sm:$0xff] }
  0x47   :  { %396 = vadd.xlane.f32.xlu1 %v395_v51  ;;  %v411_v0 = vadd.f32 %v410_v53, %v145_v48  ;;  %v138_v1 = vld [vmem:[#allocation2 + $0x2b0] sm:$0xff]  ;;  %v401_v2 = vadd.f32 %v400_v54, %v136_v49  ;;  %v160_v3 = vld [vmem:[#allocation2 + $0x360] sm:$0xff]  ;;  %v416_v4 = vadd.f32 %v149_v60, %v148_v56  ;;  %v151_v7 = vld [vmem:[#allocation2 + $0x318] sm:$0xff] }
  0x48   :  { %v386_v5 = vadd.f32 %v385_v57, %v123_v46  ;;  %v427_v6 = vadd.f32 %v426_v59, %v159_v55  ;;  %v172_v9 = vld [vmem:[#allocation2 + $0x3c0] sm:$0xff]  ;;  %v173_v10 = vld [vmem:[#allocation2 + $0x3c8] sm:$0xff]  ;;  %v139_v13 = vld [vmem:[#allocation2 + $0x2b8] sm:$0xff] }
  0x49   :  { %v412_v11 = vadd.f32 %v411_v0, %v146_v52  ;;  %v402_v14 = vadd.f32 %v401_v2, %v137_v58  ;;  %v161_v16 = vld [vmem:[#allocation2 + $0x368] sm:$0xff]  ;;  %v417_v17 = vadd.f32 %v416_v4, %v150_v62  ;;  %v174_v18 = vld [vmem:[#allocation2 + $0x3d0] sm:$0xff]  ;;  %v443_v19 = vadd.f32 %v173_v10, %v172_v9  ;;  %v152_v22 = vld [vmem:[#allocation2 + $0x320] sm:$0xff] }
  0x4a   :  { %387 = vadd.xlane.f32.xlu0 %v386_v5  ;;  %v162_v20 = vld [vmem:[#allocation2 + $0x370] sm:$0xff]  ;;  %v428_v21 = vadd.f32 %v427_v6, %v160_v3  ;;  %v175_v23 = vld [vmem:[#allocation2 + $0x3d8] sm:$0xff]  ;;  %v164_v28 = vld [vmem:[#allocation2 + $0x380] sm:$0xff] }
  0x4b   :  { %v413_v24 = vadd.f32 %v412_v11, %v147_v63  ;;  %v403_v25 = vadd.f32 %v402_v14, %v138_v1  ;;  %v418_v26 = vadd.f32 %v417_v17, %v151_v7  ;;  %v444_v27 = vadd.f32 %v443_v19, %v174_v18  ;;  %v165_v29 = vld [vmem:[#allocation2 + $0x388] sm:$0xff]  ;;  %v166_v31 = vld [vmem:[#allocation2 + $0x390] sm:$0xff]  ;;  %v163_v32 = vld [vmem:[#allocation2 + $0x378] sm:$0xff] }
  0x4c   :  { %v429_v34 = vadd.f32 %v428_v21, %v161_v16  ;;  %v153_v35 = vld [vmem:[#allocation2 + $0x328] sm:$0xff]  ;;  %v176_v36 = vld [vmem:[#allocation2 + $0x3e0] sm:$0xff]  ;;  %v434_v37 = vadd.f32 %v165_v29, %v164_v28  ;;  %v154_v39 = vld [vmem:[#allocation2 + $0x330] sm:$0xff] }
  0x4d   :  { %414 = vadd.xlane.f32.xlu1 %v413_v24  ;;  %v404_v38 = vadd.f32 %v403_v25, %v139_v13  ;;  %v419_v40 = vadd.f32 %v418_v26, %v152_v22  ;;  %v445_v41 = vadd.f32 %v444_v27, %v175_v23  ;;  %v167_v42 = vld [vmem:[#allocation2 + $0x398] sm:$0xff]  ;;  %v188_v44 = vld [vmem:[#allocation2 + $0x440] sm:$0xff]  ;;  %v177_v46 = vld [vmem:[#allocation2 + $0x3e8] sm:$0xff] }
  0x4e   :  { %v430_v45 = vadd.f32 %v429_v34, %v162_v20  ;;  %v435_v47 = vadd.f32 %v434_v37, %v166_v31  ;;  %v189_v48 = vld [vmem:[#allocation2 + $0x448] sm:$0xff]  ;;  %v190_v49 = vld [vmem:[#allocation2 + $0x450] sm:$0xff]  ;;  %v155_v50 = vld [vmem:[#allocation2 + $0x338] sm:$0xff] }
  0x4f   :  { %405 = vadd.xlane.f32.xlu0 %v404_v38  ;;  %v420_v51 = vadd.f32 %v419_v40, %v153_v35  ;;  %v178_v52 = vld [vmem:[#allocation2 + $0x3f0] sm:$0xff]  ;;  %v446_v53 = vadd.f32 %v445_v41, %v176_v36  ;;  %v168_v54 = vld [vmem:[#allocation2 + $0x3a0] sm:$0xff]  ;;  %v461_v55 = vadd.f32 %v189_v48, %v188_v44  ;;  %v191_v58 = vld [vmem:[#allocation2 + $0x458] sm:$0xff] }
  0x50   :  { %v431_v56 = vadd.f32 %v430_v45, %v163_v32  ;;  %v436_v57 = vadd.f32 %v435_v47, %v167_v42  ;;  %v180_v59 = vld [vmem:[#allocation2 + $0x400] sm:$0xff]  ;;  %v181_v60 = vld [vmem:[#allocation2 + $0x408] sm:$0xff]  ;;  %v179_v63 = vld [vmem:[#allocation2 + $0x3f8] sm:$0xff] }
  0x51   :  { %v421_v62 = vadd.f32 %v420_v51, %v154_v39  ;;  %v447_v0 = vadd.f32 %v446_v53, %v177_v46  ;;  %v169_v1 = vld [vmem:[#allocation2 + $0x3a8] sm:$0xff]  ;;  %v462_v2 = vadd.f32 %v461_v55, %v190_v49  ;;  %v182_v3 = vld [vmem:[#allocation2 + $0x410] sm:$0xff]  ;;  %v452_v4 = vadd.f32 %v181_v60, %v180_v59  ;;  %v192_v7 = vld [vmem:[#allocation2 + $0x460] sm:$0xff] }
  0x52   :  { %432 = vadd.xlane.f32.xlu1 %v431_v56  ;;  %v170_v5 = vld [vmem:[#allocation2 + $0x3b0] sm:$0xff]  ;;  %v437_v6 = vadd.f32 %v436_v57, %v168_v54  ;;  %v183_v9 = vld [vmem:[#allocation2 + $0x418] sm:$0xff]  ;;  %v204_v16 = vld [vmem:[#allocation2 + $0x4c0] sm:$0xff] }
  0x53   :  { %v422_v10 = vadd.f32 %v421_v62, %v155_v50  ;;  %v448_v11 = vadd.f32 %v447_v0, %v178_v52  ;;  %v463_v13 = vadd.f32 %v462_v2, %v191_v58  ;;  %v453_v14 = vadd.f32 %v452_v4, %v182_v3  ;;  %v205_v17 = vld [vmem:[#allocation2 + $0x4c8] sm:$0xff]  ;;  %v206_v18 = vld [vmem:[#allocation2 + $0x4d0] sm:$0xff]  ;;  %v171_v19 = vld [vmem:[#allocation2 + $0x3b8] sm:$0xff] }
  0x54   :  { %v438_v20 = vadd.f32 %v437_v6, %v169_v1  ;;  %v193_v21 = vld [vmem:[#allocation2 + $0x468] sm:$0xff]  ;;  %v184_v22 = vld [vmem:[#allocation2 + $0x420] sm:$0xff]  ;;  %v479_v23 = vadd.f32 %v205_v17, %v204_v16  ;;  %v194_v25 = vld [vmem:[#allocation2 + $0x470] sm:$0xff] }
  0x55   :  { %423 = vadd.xlane.f32.xlu0 %v422_v10  ;;  %v449_v24 = vadd.f32 %v448_v11, %v179_v63  ;;  %v464_v26 = vadd.f32 %v463_v13, %v192_v7  ;;  %v454_v27 = vadd.f32 %v453_v14, %v183_v9  ;;  %v207_v28 = vld [vmem:[#allocation2 + $0x4d8] sm:$0xff]  ;;  %v196_v29 = vld [vmem:[#allocation2 + $0x480] sm:$0xff]  ;;  %v185_v32 = vld [vmem:[#allocation2 + $0x428] sm:$0xff] }
  0x56   :  { %v439_v31 = vadd.f32 %v438_v20, %v170_v5  ;;  %v480_v34 = vadd.f32 %v479_v23, %v206_v18  ;;  %v197_v35 = vld [vmem:[#allocation2 + $0x488] sm:$0xff]  ;;  %v198_v36 = vld [vmem:[#allocation2 + $0x490] sm:$0xff]  ;;  %v195_v37 = vld [vmem:[#allocation2 + $0x478] sm:$0xff] }
  0x57   :  { %450 = vadd.xlane.f32.xlu1 %v449_v24  ;;  %v465_v38 = vadd.f32 %v464_v26, %v193_v21  ;;  %v186_v39 = vld [vmem:[#allocation2 + $0x430] sm:$0xff]  ;;  %v455_v40 = vadd.f32 %v454_v27, %v184_v22  ;;  %v208_v41 = vld [vmem:[#allocation2 + $0x4e0] sm:$0xff]  ;;  %v470_v42 = vadd.f32 %v197_v35, %v196_v29  ;;  %v199_v46 = vld [vmem:[#allocation2 + $0x498] sm:$0xff] }
  0x58   :  { %v440_v44 = vadd.f32 %v439_v31, %v171_v19  ;;  %v481_v45 = vadd.f32 %v480_v34, %v207_v28  ;;  %v220_v47 = vld [vmem:[#allocation2 + $0x540] sm:$0xff]  ;;  %v221_v48 = vld [vmem:[#allocation2 + $0x548] sm:$0xff]  ;;  %v187_v50 = vld [vmem:[#allocation2 + $0x438] sm:$0xff] }
  0x59   :  { %v466_v49 = vadd.f32 %v465_v38, %v194_v25  ;;  %v456_v51 = vadd.f32 %v455_v40, %v185_v32  ;;  %v209_v52 = vld [vmem:[#allocation2 + $0x4e8] sm:$0xff]  ;;  %v471_v53 = vadd.f32 %v470_v42, %v198_v36  ;;  %v222_v54 = vld [vmem:[#allocation2 + $0x550] sm:$0xff]  ;;  %v497_v55 = vadd.f32 %v221_v48, %v220_v47  ;;  %v200_v58 = vld [vmem:[#allocation2 + $0x4a0] sm:$0xff] }
  0x5a   :  { %441 = vadd.xlane.f32.xlu0 %v440_v44  ;;  %v210_v56 = vld [vmem:[#allocation2 + $0x4f0] sm:$0xff]  ;;  %v482_v57 = vadd.f32 %v481_v45, %v208_v41  ;;  %v223_v59 = vld [vmem:[#allocation2 + $0x558] sm:$0xff]  ;;  %v212_v1 = vld [vmem:[#allocation2 + $0x500] sm:$0xff] }
  0x5b   :  { %v467_v60 = vadd.f32 %v466_v49, %v195_v37  ;;  %v457_v62 = vadd.f32 %v456_v51, %v186_v39  ;;  %v472_v63 = vadd.f32 %v471_v53, %v199_v46  ;;  %v498_v0 = vadd.f32 %v497_v55, %v222_v54  ;;  %v213_v2 = vld [vmem:[#allocation2 + $0x508] sm:$0xff]  ;;  %v214_v3 = vld [vmem:[#allocation2 + $0x510] sm:$0xff]  ;;  %v211_v4 = vld [vmem:[#allocation2 + $0x4f8] sm:$0xff] }
  0x5c   :  { %v483_v5 = vadd.f32 %v482_v57, %v209_v52  ;;  %v201_v6 = vld [vmem:[#allocation2 + $0x4a8] sm:$0xff]  ;;  %v224_v7 = vld [vmem:[#allocation2 + $0x560] sm:$0xff]  ;;  %v488_v9 = vadd.f32 %v213_v2, %v212_v1  ;;  %v202_v11 = vld [vmem:[#allocation2 + $0x4b0] sm:$0xff] }
  0x5d   :  { %468 = vadd.xlane.f32.xlu1 %v467_v60  ;;  %v458_v10 = vadd.f32 %v457_v62, %v187_v50  ;;  %v473_v13 = vadd.f32 %v472_v63, %v200_v58  ;;  %v499_v14 = vadd.f32 %v498_v0, %v223_v59  ;;  %v215_v16 = vld [vmem:[#allocation2 + $0x518] sm:$0xff]  ;;  %v236_v17 = vld [vmem:[#allocation2 + $0x5c0] sm:$0xff]  ;;  %v225_v19 = vld [vmem:[#allocation2 + $0x568] sm:$0xff] }
  0x5e   :  { %v484_v18 = vadd.f32 %v483_v5, %v210_v56  ;;  %v489_v20 = vadd.f32 %v488_v9, %v214_v3  ;;  %v237_v21 = vld [vmem:[#allocation2 + $0x5c8] sm:$0xff]  ;;  %v238_v22 = vld [vmem:[#allocation2 + $0x5d0] sm:$0xff]  ;;  %v203_v23 = vld [vmem:[#allocation2 + $0x4b8] sm:$0xff] }
  0x5f   :  { %459 = vadd.xlane.f32.xlu0 %v458_v10  ;;  %v474_v24 = vadd.f32 %v473_v13, %v201_v6  ;;  %v226_v25 = vld [vmem:[#allocation2 + $0x570] sm:$0xff]  ;;  %v500_v26 = vadd.f32 %v499_v14, %v224_v7  ;;  %v216_v27 = vld [vmem:[#allocation2 + $0x520] sm:$0xff]  ;;  %v515_v28 = vadd.f32 %v237_v21, %v236_v17  ;;  %v239_v32 = vld [vmem:[#allocation2 + $0x5d8] sm:$0xff] }
  0x60   :  { %v485_v29 = vadd.f32 %v484_v18, %v211_v4  ;;  %v490_v31 = vadd.f32 %v489_v20, %v215_v16  ;;  %v228_v34 = vld [vmem:[#allocation2 + $0x580] sm:$0xff]  ;;  %v229_v35 = vld [vmem:[#allocation2 + $0x588] sm:$0xff]  ;;  %v227_v37 = vld [vmem:[#allocation2 + $0x578] sm:$0xff] }
  0x61   :  { %v475_v36 = vadd.f32 %v474_v24, %v202_v11  ;;  %v501_v38 = vadd.f32 %v500_v26, %v225_v19  ;;  %v217_v39 = vld [vmem:[#allocation2 + $0x528] sm:$0xff]  ;;  %v516_v40 = vadd.f32 %v515_v28, %v238_v22  ;;  %v230_v41 = vld [vmem:[#allocation2 + $0x590] sm:$0xff]  ;;  %v506_v42 = vadd.f32 %v229_v35, %v228_v34  ;;  %v240_v46 = vld [vmem:[#allocation2 + $0x5e0] sm:$0xff] }
  0x62   :  { %486 = vadd.xlane.f32.xlu1 %v485_v29  ;;  %v218_v44 = vld [vmem:[#allocation2 + $0x530] sm:$0xff]  ;;  %v491_v45 = vadd.f32 %v490_v31, %v216_v27  ;;  %v231_v47 = vld [vmem:[#allocation2 + $0x598] sm:$0xff]  ;;  %v252_v52 = vld [vmem:[#allocation2 + $0x640] sm:$0xff] }
  0x63   :  { %v476_v48 = vadd.f32 %v475_v36, %v203_v23  ;;  %v502_v49 = vadd.f32 %v501_v38, %v226_v25  ;;  %v517_v50 = vadd.f32 %v516_v40, %v239_v32  ;;  %v507_v51 = vadd.f32 %v506_v42, %v230_v41  ;;  %v253_v53 = vld [vmem:[#allocation2 + $0x648] sm:$0xff]  ;;  %v254_v54 = vld [vmem:[#allocation2 + $0x650] sm:$0xff]  ;;  %v219_v55 = vld [vmem:[#allocation2 + $0x538] sm:$0xff] }
  0x64   :  { %v492_v56 = vadd.f32 %v491_v45, %v217_v39  ;;  %v241_v57 = vld [vmem:[#allocation2 + $0x5e8] sm:$0xff]  ;;  %v232_v58 = vld [vmem:[#allocation2 + $0x5a0] sm:$0xff]  ;;  %v533_v59 = vadd.f32 %v253_v53, %v252_v52  ;;  %v242_v62 = vld [vmem:[#allocation2 + $0x5f0] sm:$0xff] }
  0x65   :  { %477 = vadd.xlane.f32.xlu0 %v476_v48  ;;  %v503_v60 = vadd.f32 %v502_v49, %v227_v37  ;;  %v518_v63 = vadd.f32 %v517_v50, %v240_v46  ;;  %v508_v0 = vadd.f32 %v507_v51, %v231_v47  ;;  %v255_v1 = vld [vmem:[#allocation2 + $0x658] sm:$0xff]  ;;  %v244_v2 = vld [vmem:[#allocation2 + $0x600] sm:$0xff]  ;;  %v233_v4 = vld [vmem:[#allocation2 + $0x5a8] sm:$0xff] }
  0x66   :  { %v493_v3 = vadd.f32 %v492_v56, %v218_v44  ;;  %v534_v5 = vadd.f32 %v533_v59, %v254_v54  ;;  %v245_v6 = vld [vmem:[#allocation2 + $0x608] sm:$0xff]  ;;  %v246_v7 = vld [vmem:[#allocation2 + $0x610] sm:$0xff]  ;;  %v243_v9 = vld [vmem:[#allocation2 + $0x5f8] sm:$0xff] }
  0x67   :  { %504 = vadd.xlane.f32.xlu1 %v503_v60  ;;  %v519_v10 = vadd.f32 %v518_v63, %v241_v57  ;;  %v234_v11 = vld [vmem:[#allocation2 + $0x5b0] sm:$0xff]  ;;  %v509_v13 = vadd.f32 %v508_v0, %v232_v58  ;;  %v256_v14 = vld [vmem:[#allocation2 + $0x660] sm:$0xff]  ;;  %v524_v16 = vadd.f32 %v245_v6, %v244_v2  ;;  %v247_v19 = vld [vmem:[#allocation2 + $0x618] sm:$0xff] }
  0x68   :  { %v494_v17 = vadd.f32 %v493_v3, %v219_v55  ;;  %v535_v18 = vadd.f32 %v534_v5, %v255_v1  ;;  %v268_v20 = vld [vmem:[#allocation2 + $0x6c0] sm:$0xff]  ;;  %v269_v21 = vld [vmem:[#allocation2 + $0x6c8] sm:$0xff]  ;;  %v235_v23 = vld [vmem:[#allocation2 + $0x5b8] sm:$0xff] }
  0x69   :  { %v520_v22 = vadd.f32 %v519_v10, %v242_v62  ;;  %v510_v24 = vadd.f32 %v509_v13, %v233_v4  ;;  %v257_v25 = vld [vmem:[#allocation2 + $0x668] sm:$0xff]  ;;  %v525_v26 = vadd.f32 %v524_v16, %v246_v7  ;;  %v270_v27 = vld [vmem:[#allocation2 + $0x6d0] sm:$0xff]  ;;  %v551_v28 = vadd.f32 %v269_v21, %v268_v20  ;;  %v248_v32 = vld [vmem:[#allocation2 + $0x620] sm:$0xff] }
  0x6a   :  { %495 = vadd.xlane.f32.xlu0 %v494_v17  ;;  %v258_v29 = vld [vmem:[#allocation2 + $0x670] sm:$0xff]  ;;  %v536_v31 = vadd.f32 %v535_v18, %v256_v14  ;;  %v271_v34 = vld [vmem:[#allocation2 + $0x6d8] sm:$0xff]  ;;  %v260_v39 = vld [vmem:[#allocation2 + $0x680] sm:$0xff] }
  0x6b   :  { %v521_v35 = vadd.f32 %v520_v22, %v243_v9  ;;  %v511_v36 = vadd.f32 %v510_v24, %v234_v11  ;;  %v526_v37 = vadd.f32 %v525_v26, %v247_v19  ;;  %v552_v38 = vadd.f32 %v551_v28, %v270_v27  ;;  %v261_v40 = vld [vmem:[#allocation2 + $0x688] sm:$0xff]  ;;  %v262_v41 = vld [vmem:[#allocation2 + $0x690] sm:$0xff]  ;;  %v259_v42 = vld [vmem:[#allocation2 + $0x678] sm:$0xff] }
  0x6c   :  { %v537_v44 = vadd.f32 %v536_v31, %v257_v25  ;;  %v249_v45 = vld [vmem:[#allocation2 + $0x628] sm:$0xff]  ;;  %v272_v46 = vld [vmem:[#allocation2 + $0x6e0] sm:$0xff]  ;;  %v542_v47 = vadd.f32 %v261_v40, %v260_v39  ;;  %v250_v49 = vld [vmem:[#allocation2 + $0x630] sm:$0xff] }
  0x6d   :  { %522 = vadd.xlane.f32.xlu1 %v521_v35  ;;  %v512_v48 = vadd.f32 %v511_v36, %v235_v23  ;;  %v527_v50 = vadd.f32 %v526_v37, %v248_v32  ;;  %v553_v51 = vadd.f32 %v552_v38, %v271_v34  ;;  %v263_v52 = vld [vmem:[#allocation2 + $0x698] sm:$0xff]  ;;  %v284_v53 = vld [vmem:[#allocation2 + $0x740] sm:$0xff]  ;;  %v273_v55 = vld [vmem:[#allocation2 + $0x6e8] sm:$0xff] }
  0x6e   :  { %v538_v54 = vadd.f32 %v537_v44, %v258_v29  ;;  %v543_v56 = vadd.f32 %v542_v47, %v262_v41  ;;  %v285_v57 = vld [vmem:[#allocation2 + $0x748] sm:$0xff]  ;;  %v286_v58 = vld [vmem:[#allocation2 + $0x750] sm:$0xff]  ;;  %v251_v59 = vld [vmem:[#allocation2 + $0x638] sm:$0xff] }
  0x6f   :  { %513 = vadd.xlane.f32.xlu0 %v512_v48  ;;  %v528_v60 = vadd.f32 %v527_v50, %v249_v45  ;;  %v274_v62 = vld [vmem:[#allocation2 + $0x6f0] sm:$0xff]  ;;  %v554_v63 = vadd.f32 %v553_v51, %v272_v46  ;;  %v264_v0 = vld [vmem:[#allocation2 + $0x6a0] sm:$0xff]  ;;  %v569_v1 = vadd.f32 %v285_v57, %v284_v53  ;;  %v287_v4 = vld [vmem:[#allocation2 + $0x758] sm:$0xff] }
  0x70   :  { %v539_v2 = vadd.f32 %v538_v54, %v259_v42  ;;  %v544_v3 = vadd.f32 %v543_v56, %v263_v52  ;;  %v276_v5 = vld [vmem:[#allocation2 + $0x700] sm:$0xff]  ;;  %v277_v6 = vld [vmem:[#allocation2 + $0x708] sm:$0xff]  ;;  %v275_v9 = vld [vmem:[#allocation2 + $0x6f8] sm:$0xff] }
  0x71   :  { %v529_v7 = vadd.f32 %v528_v60, %v250_v49  ;;  %v555_v10 = vadd.f32 %v554_v63, %v273_v55  ;;  %v265_v11 = vld [vmem:[#allocation2 + $0x6a8] sm:$0xff]  ;;  %v570_v13 = vadd.f32 %v569_v1, %v286_v58  ;;  %v278_v14 = vld [vmem:[#allocation2 + $0x710] sm:$0xff]  ;;  %v560_v16 = vadd.f32 %v277_v6, %v276_v5  ;;  %v288_v19 = vld [vmem:[#allocation2 + $0x760] sm:$0xff] }
  0x72   :  { %540 = vadd.xlane.f32.xlu1 %v539_v2  ;;  %v266_v17 = vld [vmem:[#allocation2 + $0x6b0] sm:$0xff]  ;;  %v545_v18 = vadd.f32 %v544_v3, %v264_v0  ;;  %v279_v20 = vld [vmem:[#allocation2 + $0x718] sm:$0xff]  ;;  %v300_v25 = vld [vmem:[#allocation2 + $0x7c0] sm:$0xff] }
  0x73   :  { %v530_v21 = vadd.f32 %v529_v7, %v251_v59  ;;  %v556_v22 = vadd.f32 %v555_v10, %v274_v62  ;;  %v571_v23 = vadd.f32 %v570_v13, %v287_v4  ;;  %v561_v24 = vadd.f32 %v560_v16, %v278_v14  ;;  %v301_v26 = vld [vmem:[#allocation2 + $0x7c8] sm:$0xff]  ;;  %v302_v27 = vld [vmem:[#allocation2 + $0x7d0] sm:$0xff]  ;;  %v267_v28 = vld [vmem:[#allocation2 + $0x6b8] sm:$0xff] }
  0x74   :  { %v546_v29 = vadd.f32 %v545_v18, %v265_v11  ;;  %v289_v31 = vld [vmem:[#allocation2 + $0x768] sm:$0xff]  ;;  %v280_v32 = vld [vmem:[#allocation2 + $0x720] sm:$0xff]  ;;  %v587_v34 = vadd.f32 %v301_v26, %v300_v25  ;;  %v290_v36 = vld [vmem:[#allocation2 + $0x770] sm:$0xff] }
  0x75   :  { %531 = vadd.xlane.f32.xlu0 %v530_v21  ;;  %v557_v35 = vadd.f32 %v556_v22, %v275_v9  ;;  %v572_v37 = vadd.f32 %v571_v23, %v288_v19  ;;  %v562_v38 = vadd.f32 %v561_v24, %v279_v20  ;;  %v303_v39 = vld [vmem:[#allocation2 + $0x7d8] sm:$0xff]  ;;  %v292_v40 = vld [vmem:[#allocation2 + $0x780] sm:$0xff]  ;;  %v281_v42 = vld [vmem:[#allocation2 + $0x728] sm:$0xff] }
  0x76   :  { %v547_v41 = vadd.f32 %v546_v29, %v266_v17  ;;  %v588_v44 = vadd.f32 %v587_v34, %v302_v27  ;;  %v293_v45 = vld [vmem:[#allocation2 + $0x788] sm:$0xff]  ;;  %v294_v46 = vld [vmem:[#allocation2 + $0x790] sm:$0xff]  ;;  %v304_v49 = vld [vmem:[#allocation2 + $0x7e0] sm:$0xff] }
  0x77   :  { %558 = vadd.xlane.f32.xlu1 %v557_v35  ;;  %v573_v47 = vadd.f32 %v572_v37, %v289_v31  ;;  %v563_v48 = vadd.f32 %v562_v38, %v280_v32  ;;  %v578_v50 = vadd.f32 %v293_v45, %v292_v40  ;;  %v291_v52 = vld [vmem:[#allocation2 + $0x778] sm:$0xff]  ;;  %v282_v53 = vld [vmem:[#allocation2 + $0x730] sm:$0xff]  ;;  %v305_v58 = vld [vmem:[#allocation2 + $0x7e8] sm:$0xff] }
  0x78   :  { %v548_v51 = vadd.f32 %v547_v41, %v267_v28  ;;  %v589_v54 = vadd.f32 %v588_v44, %v303_v39  ;;  %v295_v55 = vld [vmem:[#allocation2 + $0x798] sm:$0xff]  ;;  %v296_v63 = vld [vmem:[#allocation2 + $0x7a0] sm:$0xff]  ;;  %v306_v2 = vld [vmem:[#allocation2 + $0x7f0] sm:$0xff] }
  0x79   :  { %v574_v56 = vadd.f32 %v573_v47, %v290_v36  ;;  %v564_v57 = vadd.f32 %v563_v48, %v281_v42  ;;  %v579_v59 = vadd.f32 %v578_v50, %v294_v46  ;;  %v283_v60 = vld [vmem:[#allocation2 + $0x738] sm:$0xff]  ;;  %v297_v5 = vld [vmem:[#allocation2 + $0x7a8] sm:$0xff]  ;;  %v298_v11 = vld [vmem:[#allocation2 + $0x7b0] sm:$0xff] }
  0x7a   :  { %549 = vadd.xlane.f32.xlu0 %v548_v51  ;;  %v590_v62 = vadd.f32 %v589_v54, %v304_v49  ;;  %v307_v7 = vld [vmem:[#allocation2 + $0x7f8] sm:$0xff]  ;;  %v3010_v23 = vld [vmem:[#allocation2 + $0x80] sm:$0xff]  ;;  %v3011_v25 = vld [vmem:[#allocation2 + $0x88] sm:$0xff] }
  0x7b   :  { %v575_v0 = vadd.f32 %v574_v56, %v291_v52  ;;  %v565_v1 = vadd.f32 %v564_v57, %v282_v53  ;;  %v580_v3 = vadd.f32 %v579_v59, %v295_v55  ;;  %v299_v16 = vld [vmem:[#allocation2 + $0x7b8] sm:$0xff]  ;;  %v3012_v28 = vld [vmem:[#allocation2] sm:$0xff]  ;;  %v3013_v31 = vld [vmem:[#allocation2 + $0x8] sm:$0xff] }
  0x7c   :  { %v591_v4 = vadd.f32 %v590_v62, %v305_v58  ;;  %v3014_v34 = vld [vmem:[#allocation2 + $0x10] sm:$0xff]  ;;  %v3016_v39 = vld [vmem:[#allocation2 + $0x98] sm:$0xff]  ;;  %v3017_v41 = vld [vmem:[#allocation2 + $0xa0] sm:$0xff] }
  0x7d   :  { %576 = vadd.xlane.f32.xlu1 %v575_v0  ;;  %v566_v6 = vadd.f32 %v565_v1, %v283_v60  ;;  %v581_v9 = vadd.f32 %v580_v3, %v296_v63  ;;  %v3015_v36 = vld [vmem:[#allocation2 + $0x90] sm:$0xff]  ;;  %v3018_v50 = vld [vmem:[#allocation2 + $0x20] sm:$0xff] }
  0x7e   :  { %v592_v10 = vadd.f32 %v591_v4, %v306_v2  ;;  %v3019_v59 = vld [vmem:[#allocation2 + $0xb0] sm:$0xff]  ;;  %v3021_v1 = vld [vmem:[#allocation2 + $0x40] sm:$0xff] }
  0x7f   :  { %567 = vadd.xlane.f32.xlu0 %v566_v6  ;;  %v582_v13 = vadd.f32 %v581_v9, %v297_v5 }
  0x80   :  { %v593_v14 = vadd.f32 %v592_v10, %v307_v7  ;;  %v3022_v7 = vld [vmem:[#allocation2 + $0x48] sm:$0xff] }
  0x81   :  { %v583_v17 = vadd.f32 %v582_v13, %v298_v11 }
  0x82   :  { %594 = vadd.xlane.f32.xlu1 %v593_v14  ;;  %v3023_v14 = vld [vmem:[#allocation2 + $0x50] sm:$0xff] }
  0x83   :  { %v584_v18 = vadd.f32 %v583_v17, %v299_v16 }
  0x85   :  { %585 = vadd.xlane.f32.xlu0 %v584_v18 }
  0xbd   :  { %v334_v19 = vpop.xlane.xlu1 %333 }
  0xbe   :  { %v599_v20 = vmul.f32 0.0009765625, %v334_v19 }
  0xbf   :  { %v316_v21 = vpop.xlane.xlu0 %315 }
  0xc0   :  { %v597_v22 = vmul.f32 0.0009765625, %v316_v21  ;;  %v3404_v24 = vsub.f32 %v3010_v23, %v599_v20  ;;  %v3406_v26 = vsub.f32 %v3011_v25, %v599_v20  ;;  %v3414_v37 = vsub.f32 %v3015_v36, %v599_v20 }
  0xc1   :  { %v343_v27 = vpop.xlane.xlu1 %342  ;;  %v3419_v40 = vsub.f32 %v3016_v39, %v599_v20  ;;  %v3421_v42 = vsub.f32 %v3017_v41, %v599_v20  ;;  %v3424_v44 = vsub.f32 %v3385_v15, %v599_v20  ;;  %v3453_v60 = vsub.f32 %v3019_v59, %v599_v20  ;;  %v3026_v39 = vld [vmem:[#allocation2 + $0x68] sm:$0xff] }
  0xc2   :  { %v3408_v29 = vsub.f32 %v3012_v28, %v597_v22  ;;  %v3410_v32 = vsub.f32 %v3013_v31, %v597_v22  ;;  %v3412_v35 = vsub.f32 %v3014_v34, %v597_v22  ;;  %v3417_v38 = vsub.f32 %v3383_v12, %v597_v22  ;;  %v3025_v34 = vld [vmem:[#allocation2 + $0x60] sm:$0xff] }
  0xc3   :  { %v325_v45 = vpop.xlane.xlu0 %324  ;;  %v901_v12 = vmul.f32 %v3404_v24, %v3404_v24  ;;  %v902_v48 = vmul.f32 %v3406_v26, %v3406_v26  ;;  %v3434_v51 = vsub.f32 %v3018_v50, %v597_v22  ;;  %v3437_v15 = vsub.f32 %v3389_v30, %v597_v22 }
  0xc4   :  { %v885_v46 = vmul.f32 %v3408_v29, %v3408_v29  ;;  %v886_v47 = vmul.f32 %v3410_v32, %v3410_v32  ;;  %v598_v49 = vmul.f32 0.0009765625, %v325_v45  ;;  %v3440_v52 = vsub.f32 %v3391_v33, %v597_v22  ;;  %v3020_v33 = vld [vmem:[#allocation2 + $0xb8] sm:$0xff] }
  0xc5   :  { %v3443_v53 = vsub.f32 %v3393_v43, %v597_v22  ;;  %v887_v54 = vmul.f32 %v3412_v35, %v3412_v35  ;;  %v903_v56 = vmul.f32 %v3414_v37, %v3414_v37  ;;  %v3449_v57 = vmul.f32 0.0009765625, %v343_v27  ;;  %v3024_v27 = vld [vmem:[#allocation2 + $0x58] sm:$0xff] }
  0xc6   :  { %v1141_v55 = vadd.f32 %v886_v47, %v885_v46  ;;  %v361_v58 = vpop.xlane.xlu1 %360  ;;  %v888_v30 = vmul.f32 %v3417_v38, %v3417_v38  ;;  %v3455_v62 = vsub.f32 %v3020_v33, %v599_v20  ;;  %v904_v63 = vmul.f32 %v3419_v40, %v3419_v40 }
  0xc7   :  { %v1159_v0 = vadd.f32 %v902_v48, %v901_v12  ;;  %v3459_v2 = vsub.f32 %v3021_v1, %v598_v49  ;;  %v889_v4 = vmul.f32 %v3434_v51, %v3434_v51  ;;  %v890_v5 = vmul.f32 %v3437_v15, %v3437_v15 }
  0xc8   :  { %6380 = vst [vmem:[#allocation12_spill] sm:$0xff] %v3455_v62  ;;  %v1142_v43 = vadd.f32 %v1141_v55, %v887_v54  ;;  %v352_v3 = vpop.xlane.xlu0 %351  ;;  %v891_v6 = vmul.f32 %v3440_v52, %v3440_v52  ;;  %v3467_v9 = vsub.f32 %v3022_v7, %v598_v49  ;;  %v892_v10 = vmul.f32 %v3443_v53, %v3443_v53  ;;  %v3027_v55 = vld [vmem:[#allocation2 + $0xc0] sm:$0xff]  ;;  %v3030_v7 = vld [vmem:[#allocation2 + $0xd8] sm:$0xff] }
  0xc9   :  { %v1160_v13 = vadd.f32 %v1159_v0, %v903_v56  ;;  %v3471_v16 = vsub.f32 %v3023_v14, %v598_v49  ;;  %v905_v17 = vmul.f32 %v3421_v42, %v3421_v42  ;;  %v906_v18 = vmul.f32 %v3424_v44, %v3424_v44 }
  0xca   :  { %v1143_v11 = vadd.f32 %v1142_v43, %v888_v30  ;;  %v893_v19 = vmul.f32 %v3459_v2, %v3459_v2  ;;  %v894_v20 = vmul.f32 %v3467_v9, %v3467_v9  ;;  %v907_v23 = vmul.f32 %v3453_v60, %v3453_v60  ;;  %v3028_v30 = vld [vmem:[#allocation2 + $0xc8] sm:$0xff] }
  0xcb   :  { %v379_v21 = vpop.xlane.xlu1 %378  ;;  %v1161_v25 = vadd.f32 %v1160_v13, %v904_v63  ;;  %v3483_v28 = vsub.f32 %v3024_v27, %v598_v49  ;;  %v908_v31 = vmul.f32 %v3455_v62, %v3455_v62  ;;  %v3487_v36 = vsub.f32 %v3025_v34, %v598_v49  ;;  %v3032_v34 = vld [vmem:[#allocation2 + $0xe8] sm:$0xff] }
  0xcc   :  { %v1144_v22 = vadd.f32 %v1143_v11, %v889_v4  ;;  %v3489_v41 = vsub.f32 %v3026_v39, %v598_v49  ;;  %v3492_v45 = vsub.f32 %v3397_v61, %v598_v49  ;;  %v895_v12 = vmul.f32 %v3471_v16, %v3471_v16  ;;  %v3029_v61 = vld [vmem:[#allocation2 + $0xd0] sm:$0xff] }
  0xcd   :  { %v1162_v47 = vadd.f32 %v1161_v25, %v905_v17  ;;  %v1150_v48 = vadd.f32 %v894_v20, %v893_v19  ;;  %v3497_v54 = vsub.f32 %v3400_v8, %v598_v49  ;;  %v3500_v56 = vsub.f32 %v3027_v55, %v3449_v57 }
  0xce   :  { %v1145_v46 = vadd.f32 %v1144_v22, %v890_v5  ;;  %v370_v50 = vpop.xlane.xlu0 %369  ;;  %v3503_v59 = vsub.f32 %v3028_v30, %v3449_v57  ;;  %v3506_v33 = vsub.f32 %v3029_v61, %v3449_v57  ;;  %v896_v0 = vmul.f32 %v3483_v28, %v3483_v28  ;;  %v3031_v22 = vld [vmem:[#allocation2 + $0xe0] sm:$0xff]  ;;  %v3034_v30 = vld [vmem:[#allocation2 + $0x108] sm:$0xff] }
  0xcf   :  { %6381 = vst [vmem:[#allocation13_spill] sm:$0xff] %v3500_v56  ;;  %v1163_v63 = vadd.f32 %v1162_v47, %v906_v18  ;;  %v1151_v1 = vadd.f32 %v1150_v48, %v895_v12  ;;  %v3510_v8 = vmul.f32 0.0009765625, %v361_v58  ;;  %v3512_v49 = vmul.f32 0.0009765625, %v352_v3  ;;  %v3033_v48 = vld [vmem:[#allocation2 + $0x100] sm:$0xff] }
  0xd0   :  { %6382 = vst [vmem:[#allocation14_spill] sm:$0xff] %v3503_v59  ;;  %6383 = vst [vmem:[#allocation15_spill] sm:$0xff] %v3506_v33  ;;  %v1146_v43 = vadd.f32 %v1145_v46, %v891_v6  ;;  %v3514_v4 = vmul.f32 0.0009765625, %v379_v21  ;;  %v397_v5 = vpop.xlane.xlu1 %396  ;;  %v3517_v11 = vsub.f32 %v3030_v7, %v3449_v57  ;;  %v897_v6 = vmul.f32 %v3487_v36, %v3487_v36 }
  0xd1   :  { %v1164_v14 = vadd.f32 %v1163_v63, %v907_v23  ;;  %v1152_v17 = vadd.f32 %v1151_v1, %v896_v0  ;;  %v898_v18 = vmul.f32 %v3489_v41, %v3489_v41  ;;  %v909_v58 = vmul.f32 %v3500_v56, %v3500_v56  ;;  %v3036_v1 = vld [vmem:[#allocation2 + $0xf0] sm:$0xff] }
  0xd2   :  { %6384 = vst [vmem:[#allocation16_spill] sm:$0xff] %v3517_v11  ;;  %v1147_v13 = vadd.f32 %v1146_v43, %v892_v10  ;;  %v910_v3 = vmul.f32 %v3503_v59, %v3503_v59  ;;  %v911_v19 = vmul.f32 %v3506_v33, %v3506_v33  ;;  %v899_v10 = vmul.f32 %v3492_v45, %v3492_v45  ;;  %v3035_v43 = vld [vmem:[#allocation2 + $0x110] sm:$0xff] }
  0xd3   :  { %v900_v20 = vmul.f32 %v3497_v54, %v3497_v54  ;;  %v1153_v21 = vadd.f32 %v1152_v17, %v897_v6  ;;  %v3534_v23 = vsub.f32 %v3031_v22, %v3449_v57  ;;  %v388_v25 = vpop.xlane.xlu0 %387  ;;  %v1165_v27 = vadd.f32 %v1164_v14, %v908_v31  ;;  %v3037_v14 = vld [vmem:[#allocation2 + $0x118] sm:$0xff] }
  0xd4   :  { %1148 = vadd.xlane.f32.xlu0 %v1147_v13  ;;  %v3537_v39 = vsub.f32 %v3032_v34, %v3449_v57  ;;  %v912_v46 = vmul.f32 %v3517_v11, %v3517_v11  ;;  %v1168_v47 = vadd.f32 %v910_v3, %v909_v58  ;;  %v3542_v55 = vsub.f32 %v3033_v48, %v3512_v49  ;;  %v3038_v58 = vld [vmem:[#allocation2 + $0xf8] sm:$0xff] }
  0xd5   :  { %6385 = vst [vmem:[#allocation17_spill] sm:$0xff] %v3534_v23  ;;  %v1154_v12 = vadd.f32 %v1153_v21, %v898_v18  ;;  %v3545_v61 = vsub.f32 %v3034_v30, %v3512_v49  ;;  %v3548_v31 = vsub.f32 %v3035_v43, %v3512_v49  ;;  %v3550_v63 = vmul.f32 0.0009765625, %v370_v50  ;;  %v3040_v30 = vld [vmem:[#allocation2 + $0x128] sm:$0xff]  ;;  %v3041_v43 = vld [vmem:[#allocation2 + $0x130] sm:$0xff]  ;;  %v3084_v11 = vld [vmem:[#allocation2 + $0x298] sm:$0xff] }
  0xd6   :  { %6386 = vst [vmem:[#allocation18_spill] sm:$0xff] %v3537_v39  ;;  %6387 = vst [vmem:[#allocation19_spill] sm:$0xff] %v3542_v55  ;;  %v415_v0 = vpop.xlane.xlu1 %414  ;;  %v3553_v7 = vsub.f32 %v3036_v1, %v3449_v57  ;;  %v1169_v13 = vadd.f32 %v1168_v47, %v911_v19  ;;  %v3556_v6 = vsub.f32 %v3037_v14, %v3512_v49  ;;  %v3558_v17 = vmul.f32 0.0009765625, %v397_v5  ;;  %v3042_v14 = vld [vmem:[#allocation2 + $0x140] sm:$0xff] }
  0xd7   :  { %6388 = vst [vmem:[#allocation20_spill] sm:$0xff] %v3545_v61  ;;  %6389 = vst [vmem:[#allocation21_spill] sm:$0xff] %v3548_v31  ;;  %v1155_v18 = vadd.f32 %v1154_v12, %v899_v10  ;;  %v3561_v3 = vsub.f32 %v3038_v58, %v3449_v57  ;;  %v913_v50 = vmul.f32 %v3534_v23, %v3534_v23  ;;  %v3571_v34 = vmul.f32 0.0009765625, %v388_v25  ;;  %v3043_v58 = vld [vmem:[#allocation2 + $0x148] sm:$0xff] }
  0xd8   :  { %6390 = vst [vmem:[#allocation22_spill] sm:$0xff] %v3553_v7  ;;  %6391 = vst [vmem:[#allocation23_spill] sm:$0xff] %v3556_v6  ;;  %1166 = vadd.xlane.f32.xlu0 %v1165_v27  ;;  %v914_v21 = vmul.f32 %v3537_v39, %v3537_v39  ;;  %v1170_v22 = vadd.f32 %v1169_v13, %v912_v46  ;;  %v917_v19 = vmul.f32 %v3542_v55, %v3542_v55  ;;  %v3039_v27 = vld [vmem:[#allocation2 + $0x120] sm:$0xff]  ;;  %v406_v12 = vpop.xlane.xlu0 %405  ;;  %v3060_v39 = vld [vmem:[#allocation2 + $0x1d0] sm:$0xff] }
  0xd9   :  { %6392 = vst [vmem:[#allocation24_spill] sm:$0xff] %v3561_v3  ;;  %v918_v5 = vmul.f32 %v3545_v61, %v3545_v61  ;;  %v1156_v10 = vadd.f32 %v1155_v18, %v900_v20  ;;  %v3574_v57 = vsub.f32 %v3039_v27, %v3512_v49  ;;  %v919_v47 = vmul.f32 %v3548_v31, %v3548_v31  ;;  %v3046_v31 = vld [vmem:[#allocation2 + $0x158] sm:$0xff] }
  0xda   :  { %v1171_v48 = vadd.f32 %v1170_v22, %v913_v50  ;;  %v3579_v46 = vsub.f32 %v3040_v30, %v3512_v49  ;;  %v3582_v1 = vsub.f32 %v3041_v43, %v3512_v49  ;;  %v920_v20 = vmul.f32 %v3556_v6, %v3556_v6  ;;  %v3044_v22 = vld [vmem:[#allocation2 + $0x150] sm:$0xff] }
  0xdb   :  { %6393 = vst [vmem:[#allocation25_spill] sm:$0xff] %v3574_v57  ;;  %v433_v25 = vpop.xlane.xlu1 %432  ;;  %1157 = vadd.xlane.f32.xlu1 %v1156_v10  ;;  %v1177_v13 = vadd.f32 %v918_v5, %v917_v19  ;;  %v3587_v18 = vsub.f32 %v3042_v14, %v3510_v8  ;;  %v3590_v50 = vsub.f32 %v3043_v58, %v3510_v8  ;;  %v3045_v19 = vld [vmem:[#allocation2 + $0x138] sm:$0xff]  ;;  %v3602_v14 = vmul.f32 0.0009765625, %v415_v0 }
  0xdc   :  { %6394 = vst [vmem:[#allocation26_spill] sm:$0xff] %v3579_v46  ;;  %6395 = vst [vmem:[#allocation27_spill] sm:$0xff] %v3582_v1  ;;  %v3593_v27 = vsub.f32 %v3044_v22, %v3510_v8  ;;  %v915_v30 = vmul.f32 %v3553_v7, %v3553_v7  ;;  %v916_v43 = vmul.f32 %v3561_v3, %v3561_v3  ;;  %v3604_v6 = vmul.f32 0.0009765625, %v406_v12  ;;  %v3059_v7 = vld [vmem:[#allocation2 + $0x1c8] sm:$0xff] }
  0xdd   :  { %6396 = vst [vmem:[#allocation28_spill] sm:$0xff] %v3587_v18  ;;  %6397 = vst [vmem:[#allocation29_spill] sm:$0xff] %v3590_v50  ;;  %v1172_v10 = vadd.f32 %v1171_v48, %v914_v21  ;;  %v3600_v5 = vsub.f32 %v3045_v19, %v3512_v49  ;;  %v1178_v58 = vadd.f32 %v1177_v13, %v919_v47  ;;  %v3048_v19 = vld [vmem:[#allocation2 + $0x168] sm:$0xff] }
  0xde   :  { %6398 = vst [vmem:[#allocation30_spill] sm:$0xff] %v3593_v27  ;;  %v3607_v22 = vsub.f32 %v3046_v31, %v3510_v8  ;;  %v921_v55 = vmul.f32 %v3574_v57, %v3574_v57  ;;  %v925_v21 = vmul.f32 %v3587_v18, %v3587_v18  ;;  %v926_v49 = vmul.f32 %v3590_v50, %v3590_v50  ;;  %v424_v18 = vpop.xlane.xlu0 %423 }
  0xdf   :  { %6399 = vst [vmem:[#allocation31_spill] sm:$0xff] %v3600_v5  ;;  %v1173_v61 = vadd.f32 %v1172_v10, %v915_v30  ;;  %v922_v0 = vmul.f32 %v3579_v46, %v3579_v46  ;;  %v923_v47 = vmul.f32 %v3582_v1, %v3582_v1  ;;  %v1179_v12 = vadd.f32 %v1178_v58, %v920_v20  ;;  %v3047_v30 = vld [vmem:[#allocation2 + $0x160] sm:$0xff]  ;;  %v3052_v1 = vld [vmem:[#allocation2 + $0x188] sm:$0xff] }
  0xe0   :  { %6400 = vst [vmem:[#allocation32_spill] sm:$0xff] %v3607_v22  ;;  %v927_v31 = vmul.f32 %v3593_v27, %v3593_v27  ;;  %v924_v13 = vmul.f32 %v3600_v5, %v3600_v5  ;;  %v3624_v10 = vsub.f32 %v3047_v30, %v3510_v8  ;;  %v3627_v50 = vsub.f32 %v3048_v19, %v3510_v8  ;;  %v451_v46 = vpop.xlane.xlu1 %450  ;;  %v3049_v27 = vld [vmem:[#allocation2 + $0x180] sm:$0xff]  ;;  %v3051_v5 = vld [vmem:[#allocation2 + $0x178] sm:$0xff] }
  0xe1   :  { %v1174_v48 = vadd.f32 %v1173_v61, %v916_v43  ;;  %v1180_v57 = vadd.f32 %v1179_v12, %v921_v55  ;;  %v928_v20 = vmul.f32 %v3607_v22, %v3607_v22  ;;  %v1186_v58 = vadd.f32 %v926_v49, %v925_v21  ;;  %v3050_v43 = vld [vmem:[#allocation2 + $0x170] sm:$0xff]  ;;  %v3054_v22 = vld [vmem:[#allocation2 + $0x198] sm:$0xff] }
  0xe2   :  { %6401 = vst [vmem:[#allocation33_spill] sm:$0xff] %v3624_v10  ;;  %6402 = vst [vmem:[#allocation34_spill] sm:$0xff] %v3627_v50  ;;  %v3632_v61 = vsub.f32 %v3049_v27, %v3550_v63  ;;  %v3635_v30 = vsub.f32 %v3050_v43, %v3510_v8  ;;  %v3638_v19 = vsub.f32 %v3051_v5, %v3510_v8  ;;  %v3053_v12 = vld [vmem:[#allocation2 + $0x190] sm:$0xff]  ;;  %v3646_v49 = vmul.f32 0.0009765625, %v433_v25 }
  0xe3   :  { %1175 = vadd.xlane.f32.xlu1 %v1174_v48  ;;  %v3641_v55 = vsub.f32 %v3052_v1, %v3550_v63  ;;  %v3644_v21 = vsub.f32 %v3053_v12, %v3550_v63  ;;  %v1181_v27 = vadd.f32 %v1180_v57, %v922_v0  ;;  %v1187_v48 = vadd.f32 %v1186_v58, %v927_v31  ;;  %v3055_v31 = vld [vmem:[#allocation2 + $0x1a0] sm:$0xff] }
  0xe4   :  { %6403 = vst [vmem:[#allocation35_spill] sm:$0xff] %v3632_v61  ;;  %6404 = vst [vmem:[#allocation36_spill] sm:$0xff] %v3635_v30  ;;  %v3649_v43 = vsub.f32 %v3054_v22, %v3550_v63  ;;  %v3651_v3 = vmul.f32 0.0009765625, %v424_v18  ;;  %v929_v8 = vmul.f32 %v3624_v10, %v3624_v10  ;;  %v933_v1 = vmul.f32 %v3632_v61, %v3632_v61  ;;  %v3056_v61 = vld [vmem:[#allocation2 + $0x1a8] sm:$0xff] }
  0xe5   :  { %6405 = vst [vmem:[#allocation37_spill] sm:$0xff] %v3638_v19  ;;  %6406 = vst [vmem:[#allocation38_spill] sm:$0xff] %v3641_v55  ;;  %v934_v5 = vmul.f32 %v3641_v55, %v3641_v55  ;;  %v1182_v12 = vadd.f32 %v1181_v27, %v923_v47  ;;  %v930_v57 = vmul.f32 %v3627_v50, %v3627_v50  ;;  %v442_v27 = vpop.xlane.xlu0 %441 }
  0xe6   :  { %6407 = vst [vmem:[#allocation39_spill] sm:$0xff] %v3644_v21  ;;  %6408 = vst [vmem:[#allocation40_spill] sm:$0xff] %v3649_v43  ;;  %v1188_v25 = vadd.f32 %v1187_v48, %v928_v20  ;;  %v935_v22 = vmul.f32 %v3644_v21, %v3644_v21  ;;  %v931_v18 = vmul.f32 %v3635_v30, %v3635_v30  ;;  %v469_v20 = vpop.xlane.xlu1 %468  ;;  %v3057_v30 = vld [vmem:[#allocation2 + $0x1b0] sm:$0xff] }
  0xe7   :  { %v932_v0 = vmul.f32 %v3638_v19, %v3638_v19  ;;  %v3668_v58 = vsub.f32 %v3055_v31, %v3550_v63  ;;  %v3671_v47 = vsub.f32 %v3056_v61, %v3550_v63  ;;  %v1183_v55 = vadd.f32 %v1182_v12, %v924_v13  ;;  %v3058_v19 = vld [vmem:[#allocation2 + $0x1c0] sm:$0xff]  ;;  %v3061_v12 = vld [vmem:[#allocation2 + $0x1d8] sm:$0xff] }
  0xe8   :  { %v1189_v48 = vadd.f32 %v1188_v25, %v929_v8  ;;  %v936_v21 = vmul.f32 %v3649_v43, %v3649_v43  ;;  %v1195_v50 = vadd.f32 %v934_v5, %v933_v1  ;;  %v3676_v10 = vsub.f32 %v3057_v30, %v3550_v63 }
  0xe9   :  { %6409 = vst [vmem:[#allocation41_spill] sm:$0xff] %v3668_v58  ;;  %6410 = vst [vmem:[#allocation42_spill] sm:$0xff] %v3671_v47  ;;  %v3679_v31 = vsub.f32 %v3058_v19, %v3514_v4  ;;  %v3682_v61 = vsub.f32 %v3059_v7, %v3514_v4  ;;  %v3685_v13 = vsub.f32 %v3060_v39, %v3514_v4  ;;  %v3687_v8 = vmul.f32 0.0009765625, %v451_v46  ;;  %v3062_v19 = vld [vmem:[#allocation2 + $0x1b8] sm:$0xff] }
  0xea   :  { %6411 = vst [vmem:[#allocation43_spill] sm:$0xff] %v3676_v10  ;;  %1184 = vadd.xlane.f32.xlu0 %v1183_v55  ;;  %v1190_v1 = vadd.f32 %v1189_v48, %v930_v57  ;;  %v1196_v5 = vadd.f32 %v1195_v50, %v935_v22  ;;  %v3690_v30 = vsub.f32 %v3061_v12, %v3514_v4  ;;  %v3692_v25 = vmul.f32 0.0009765625, %v442_v27  ;;  %v3063_v27 = vld [vmem:[#allocation2 + $0x1e0] sm:$0xff]  ;;  %v3064_v48 = vld [vmem:[#allocation2 + $0x1e8] sm:$0xff] }
  0xeb   :  { %6412 = vst [vmem:[#allocation44_spill] sm:$0xff] %v3679_v31  ;;  %6413 = vst [vmem:[#allocation45_spill] sm:$0xff] %v3682_v61  ;;  %v3695_v43 = vsub.f32 %v3062_v19, %v3550_v63  ;;  %v937_v7 = vmul.f32 %v3668_v58, %v3668_v58  ;;  %v941_v39 = vmul.f32 %v3679_v31, %v3679_v31  ;;  %v3065_v31 = vld [vmem:[#allocation2 + $0x1f0] sm:$0xff] }
  0xec   :  { %6414 = vst [vmem:[#allocation46_spill] sm:$0xff] %v3685_v13  ;;  %6415 = vst [vmem:[#allocation47_spill] sm:$0xff] %v3690_v30  ;;  %v1191_v46 = vadd.f32 %v1190_v1, %v931_v18  ;;  %v938_v50 = vmul.f32 %v3671_v47, %v3671_v47  ;;  %v1197_v55 = vadd.f32 %v1196_v5, %v936_v21  ;;  %v460_v1 = vpop.xlane.xlu0 %459  ;;  %v487_v5 = vpop.xlane.xlu1 %486  ;;  %v3066_v47 = vld [vmem:[#allocation2 + $0x200] sm:$0xff] }
  0xed   :  { %6416 = vst [vmem:[#allocation48_spill] sm:$0xff] %v3695_v43  ;;  %v942_v57 = vmul.f32 %v3682_v61, %v3682_v61  ;;  %v939_v22 = vmul.f32 %v3676_v10, %v3676_v10  ;;  %v3708_v63 = vsub.f32 %v3063_v27, %v3514_v4  ;;  %v3711_v12 = vsub.f32 %v3064_v48, %v3514_v4  ;;  %v3067_v48 = vld [vmem:[#allocation2 + $0x208] sm:$0xff] }
  0xee   :  { %v943_v18 = vmul.f32 %v3685_v13, %v3685_v13  ;;  %v1192_v19 = vadd.f32 %v1191_v46, %v932_v0  ;;  %v1198_v21 = vadd.f32 %v1197_v55, %v937_v7  ;;  %v3716_v61 = vsub.f32 %v3065_v31, %v3514_v4  ;;  %v3068_v13 = vld [vmem:[#allocation2 + $0x210] sm:$0xff] }
  0xef   :  { %6417 = vst [vmem:[#allocation49_spill] sm:$0xff] %v3708_v63  ;;  %6418 = vst [vmem:[#allocation50_spill] sm:$0xff] %v3711_v12  ;;  %v944_v10 = vmul.f32 %v3690_v30, %v3690_v30  ;;  %v1204_v27 = vadd.f32 %v942_v57, %v941_v39  ;;  %v3721_v58 = vsub.f32 %v3066_v47, %v3571_v34  ;;  %v3729_v7 = vmul.f32 0.0009765625, %v469_v20  ;;  %v3069_v39 = vld [vmem:[#allocation2 + $0x218] sm:$0xff] }
  0xf0   :  { %6419 = vst [vmem:[#allocation51_spill] sm:$0xff] %v3716_v61  ;;  %v3724_v23 = vsub.f32 %v3067_v48, %v3571_v34  ;;  %v3727_v0 = vsub.f32 %v3068_v13, %v3571_v34  ;;  %1193 = vadd.xlane.f32.xlu1 %v1192_v19  ;;  %v940_v31 = vmul.f32 %v3695_v43, %v3695_v43  ;;  %v3736_v47 = vmul.f32 0.0009765625, %v460_v1  ;;  %v3070_v48 = vld [vmem:[#allocation2 + $0x1f8] sm:$0xff] }
  0xf1   :  { %6420 = vst [vmem:[#allocation52_spill] sm:$0xff] %v3721_v58  ;;  %v1199_v46 = vadd.f32 %v1198_v21, %v938_v50  ;;  %v3734_v55 = vsub.f32 %v3069_v39, %v3571_v34  ;;  %v3738_v57 = vmul.f32 0.0009765625, %v487_v5  ;;  %v3741_v30 = vsub.f32 %v3070_v48, %v3514_v4 }
  0xf2   :  { %6421 = vst [vmem:[#allocation53_spill] sm:$0xff] %v3724_v23  ;;  %6422 = vst [vmem:[#allocation54_spill] sm:$0xff] %v3727_v0  ;;  %v1205_v13 = vadd.f32 %v1204_v27, %v943_v18  ;;  %v949_v19 = vmul.f32 %v3721_v58, %v3721_v58  ;;  %v950_v50 = vmul.f32 %v3724_v23, %v3724_v23  ;;  %v478_v27 = vpop.xlane.xlu0 %477  ;;  %v3072_v58 = vld [vmem:[#allocation2 + $0x228] sm:$0xff] }
  0xf3   :  { %6423 = vst [vmem:[#allocation55_spill] sm:$0xff] %v3734_v55  ;;  %6424 = vst [vmem:[#allocation56_spill] sm:$0xff] %v3741_v30  ;;  %v1200_v20 = vadd.f32 %v1199_v46, %v939_v22  ;;  %v951_v21 = vmul.f32 %v3727_v0, %v3727_v0  ;;  %v945_v1 = vmul.f32 %v3708_v63, %v3708_v63  ;;  %v3071_v46 = vld [vmem:[#allocation2 + $0x220] sm:$0xff] }
  0xf4   :  { %v946_v5 = vmul.f32 %v3711_v12, %v3711_v12  ;;  %v947_v4 = vmul.f32 %v3716_v61, %v3716_v61  ;;  %v1206_v18 = vadd.f32 %v1205_v13, %v944_v10  ;;  %v3756_v39 = vsub.f32 %v3071_v46, %v3571_v34  ;;  %v3073_v12 = vld [vmem:[#allocation2 + $0x230] sm:$0xff]  ;;  %v3074_v10 = vld [vmem:[#allocation2 + $0x240] sm:$0xff] }
  0xf5   :  { %v1201_v22 = vadd.f32 %v1200_v20, %v940_v31  ;;  %v952_v48 = vmul.f32 %v3734_v55, %v3734_v55  ;;  %v1213_v0 = vadd.f32 %v950_v50, %v949_v19  ;;  %v3761_v63 = vsub.f32 %v3072_v58, %v3571_v34  ;;  %v3075_v20 = vld [vmem:[#allocation2 + $0x248] sm:$0xff]  ;;  %v3076_v19 = vld [vmem:[#allocation2 + $0x250] sm:$0xff]  ;;  %v3077_v58 = vld [vmem:[#allocation2 + $0x258] sm:$0xff] }
  0xf6   :  { %6425 = vst [vmem:[#allocation57_spill] sm:$0xff] %v3756_v39  ;;  %v1207_v23 = vadd.f32 %v1206_v18, %v945_v1  ;;  %v3764_v43 = vsub.f32 %v3073_v12, %v3571_v34  ;;  %v3767_v31 = vsub.f32 %v3074_v10, %v3558_v17  ;;  %v3770_v46 = vsub.f32 %v3075_v20, %v3558_v17  ;;  %v3083_v61 = vld [vmem:[#allocation2 + $0x290] sm:$0xff] }
  0xf7   :  { %6426 = vst [vmem:[#allocation58_spill] sm:$0xff] %v3761_v63  ;;  %1202 = vadd.xlane.f32.xlu0 %v1201_v22  ;;  %v1214_v13 = vadd.f32 %v1213_v0, %v951_v21  ;;  %v3773_v50 = vsub.f32 %v3076_v19, %v3558_v17  ;;  %v3776_v1 = vsub.f32 %v3077_v58, %v3558_v17  ;;  %v3778_v12 = vmul.f32 0.0009765625, %v478_v27  ;;  %v3078_v22 = vld [vmem:[#allocation2 + $0x238] sm:$0xff] }
  0xf8   :  { %6427 = vst [vmem:[#allocation59_spill] sm:$0xff] %v3764_v43  ;;  %6428 = vst [vmem:[#allocation60_spill] sm:$0xff] %v3767_v31  ;;  %v948_v18 = vmul.f32 %v3741_v30, %v3741_v30  ;;  %v1208_v10 = vadd.f32 %v1207_v23, %v946_v5  ;;  %v3783_v0 = vsub.f32 %v3078_v22, %v3571_v34  ;;  %v505_v22 = vpop.xlane.xlu1 %504 }
  0xf9   :  { %6429 = vst [vmem:[#allocation61_spill] sm:$0xff] %v3770_v46  ;;  %6430 = vst [vmem:[#allocation62_spill] sm:$0xff] %v3773_v50  ;;  %v953_v21 = vmul.f32 %v3756_v39, %v3756_v39  ;;  %v1215_v20 = vadd.f32 %v1214_v13, %v952_v48  ;;  %v957_v19 = vmul.f32 %v3767_v31, %v3767_v31  ;;  %v496_v39 = vpop.xlane.xlu0 %495  ;;  %v3079_v48 = vld [vmem:[#allocation2 + $0x260] sm:$0xff]  ;;  %v3080_v31 = vld [vmem:[#allocation2 + $0x268] sm:$0xff] }
  0xfa   :  { %6431 = vst [vmem:[#allocation63_spill] sm:$0xff] %v3776_v1  ;;  %6432 = vst [vmem:[#allocation64_spill] sm:$0xff] %v3783_v0  ;;  %v958_v58 = vmul.f32 %v3770_v46, %v3770_v46  ;;  %v1209_v27 = vadd.f32 %v1208_v10, %v947_v4  ;;  %v954_v55 = vmul.f32 %v3761_v63, %v3761_v63 }
  0xfb   :  { %v955_v23 = vmul.f32 %v3764_v43, %v3764_v43  ;;  %v959_v34 = vmul.f32 %v3773_v50, %v3773_v50  ;;  %v1216_v5 = vadd.f32 %v1215_v20, %v953_v21  ;;  %v3798_v13 = vsub.f32 %v3079_v48, %v3558_v17  ;;  %v3081_v43 = vld [vmem:[#allocation2 + $0x280] sm:$0xff]  ;;  %v3082_v21 = vld [vmem:[#allocation2 + $0x288] sm:$0xff] }
  0xfc   :  { %v3801_v46 = vsub.f32 %v3080_v31, %v3558_v17  ;;  %v960_v4 = vmul.f32 %v3776_v1, %v3776_v1  ;;  %v1210_v10 = vadd.f32 %v1209_v27, %v948_v18  ;;  %v1222_v63 = vadd.f32 %v958_v58, %v957_v19  ;;  %v3085_v58 = vld [vmem:[#allocation2 + $0x270] sm:$0xff] }
  0xfd   :  { %6433 = vst [vmem:[#allocation65_spill] sm:$0xff] %v3798_v13  ;;  %v3806_v30 = vsub.f32 %v3081_v43, %v3604_v6  ;;  %v3809_v20 = vsub.f32 %v3082_v21, %v3604_v6  ;;  %v956_v48 = vmul.f32 %v3783_v0, %v3783_v0  ;;  %v1217_v50 = vadd.f32 %v1216_v5, %v954_v55  ;;  %v3086_v5 = vld [vmem:[#allocation2 + $0x278] sm:$0xff] }
  0xfe   :  { %6434 = vst [vmem:[#allocation66_spill] sm:$0xff] %v3801_v46  ;;  %v3814_v31 = vsub.f32 %v3083_v61, %v3604_v6  ;;  %v3817_v18 = vsub.f32 %v3084_v11, %v3604_v6  ;;  %1211 = vadd.xlane.f32.xlu1 %v1210_v10  ;;  %v3819_v19 = vmul.f32 0.0009765625, %v505_v22  ;;  %v3821_v43 = vmul.f32 0.0009765625, %v496_v39  ;;  %v3100_v0 = vld [vmem:[#allocation2 + $0x318] sm:$0xff] }
  0xff   :  { %6435 = vst [vmem:[#allocation67_spill] sm:$0xff] %v3806_v30  ;;  %6436 = vst [vmem:[#allocation68_spill] sm:$0xff] %v3809_v20  ;;  %v3824_v27 = vsub.f32 %v3085_v58, %v3558_v17  ;;  %v1223_v21 = vadd.f32 %v1222_v63, %v959_v34  ;;  %v1218_v1 = vadd.f32 %v1217_v50, %v955_v23  ;;  %v3087_v34 = vld [vmem:[#allocation2 + $0x2a0] sm:$0xff] }
 0x100   :  { %6437 = vst [vmem:[#allocation69_spill] sm:$0xff] %v3814_v31  ;;  %6438 = vst [vmem:[#allocation70_spill] sm:$0xff] %v3817_v18  ;;  %v965_v55 = vmul.f32 %v3806_v30, %v3806_v30  ;;  %v966_v61 = vmul.f32 %v3809_v20, %v3809_v20  ;;  %v967_v11 = vmul.f32 %v3814_v31, %v3814_v31  ;;  %v3088_v30 = vld [vmem:[#allocation2 + $0x2a8] sm:$0xff] }
 0x101   :  { %6439 = vst [vmem:[#allocation71_spill] sm:$0xff] %v3824_v27  ;;  %v3833_v22 = vsub.f32 %v3086_v5, %v3558_v17  ;;  %v961_v39 = vmul.f32 %v3798_v13, %v3798_v13  ;;  %v962_v63 = vmul.f32 %v3801_v46, %v3801_v46  ;;  %v1224_v50 = vadd.f32 %v1223_v21, %v960_v4  ;;  %v3089_v5 = vld [vmem:[#allocation2 + $0x2b0] sm:$0xff]  ;;  %v3090_v46 = vld [vmem:[#allocation2 + $0x2c0] sm:$0xff] }
 0x102   :  { %v1219_v23 = vadd.f32 %v1218_v1, %v956_v48  ;;  %v3840_v10 = vsub.f32 %v3087_v34, %v3604_v6  ;;  %v968_v58 = vmul.f32 %v3817_v18, %v3817_v18  ;;  %v1231_v31 = vadd.f32 %v966_v61, %v965_v55  ;;  %v3091_v48 = vld [vmem:[#allocation2 + $0x2c8] sm:$0xff]  ;;  %v3092_v55 = vld [vmem:[#allocation2 + $0x2d0] sm:$0xff] }
 0x103   :  { %6440 = vst [vmem:[#allocation72_spill] sm:$0xff] %v3833_v22  ;;  %v1225_v20 = vadd.f32 %v1224_v50, %v961_v39  ;;  %v3845_v17 = vsub.f32 %v3088_v30, %v3604_v6  ;;  %v3848_v13 = vsub.f32 %v3089_v5, %v3604_v6  ;;  %v3851_v1 = vsub.f32 %v3090_v46, %v3602_v14  ;;  %v3093_v30 = vld [vmem:[#allocation2 + $0x2d8] sm:$0xff] }
 0x104   :  { %6441 = vst [vmem:[#allocation73_spill] sm:$0xff] %v3840_v10  ;;  %1220 = vadd.xlane.f32.xlu0 %v1219_v23  ;;  %v1232_v4 = vadd.f32 %v1231_v31, %v967_v11  ;;  %v3854_v21 = vsub.f32 %v3091_v48, %v3602_v14  ;;  %v3857_v61 = vsub.f32 %v3092_v55, %v3602_v14  ;;  %v3094_v31 = vld [vmem:[#allocation2 + $0x2b8] sm:$0xff] }
 0x105   :  { %6442 = vst [vmem:[#allocation74_spill] sm:$0xff] %v3845_v17  ;;  %6443 = vst [vmem:[#allocation75_spill] sm:$0xff] %v3848_v13  ;;  %v3860_v39 = vsub.f32 %v3093_v30, %v3602_v14  ;;  %v963_v50 = vmul.f32 %v3824_v27, %v3824_v27  ;;  %v964_v46 = vmul.f32 %v3833_v22, %v3833_v22  ;;  %v3099_v27 = vld [vmem:[#allocation2 + $0x310] sm:$0xff] }
 0x106   :  { %6444 = vst [vmem:[#allocation76_spill] sm:$0xff] %v3851_v1  ;;  %6445 = vst [vmem:[#allocation77_spill] sm:$0xff] %v3854_v21  ;;  %v1226_v23 = vadd.f32 %v1225_v20, %v962_v63  ;;  %v3867_v11 = vsub.f32 %v3094_v31, %v3604_v6  ;;  %v969_v34 = vmul.f32 %v3840_v10, %v3840_v10  ;;  %v523_v31 = vpop.xlane.xlu1 %522  ;;  %v514_v10 = vpop.xlane.xlu0 %513 }
 0x107   :  { %6446 = vst [vmem:[#allocation78_spill] sm:$0xff] %v3857_v61  ;;  %6447 = vst [vmem:[#allocation79_spill] sm:$0xff] %v3860_v39  ;;  %v1233_v5 = vadd.f32 %v1232_v4, %v968_v58  ;;  %v973_v48 = vmul.f32 %v3851_v1, %v3851_v1  ;;  %v974_v55 = vmul.f32 %v3854_v21, %v3854_v21  ;;  %v3095_v58 = vld [vmem:[#allocation2 + $0x2e0] sm:$0xff]  ;;  %v3096_v1 = vld [vmem:[#allocation2 + $0x2e8] sm:$0xff] }
 0x108   :  { %6448 = vst [vmem:[#allocation80_spill] sm:$0xff] %v3867_v11  ;;  %v1227_v30 = vadd.f32 %v1226_v23, %v963_v50  ;;  %v970_v18 = vmul.f32 %v3845_v17, %v3845_v17  ;;  %v971_v20 = vmul.f32 %v3848_v13, %v3848_v13  ;;  %v975_v6 = vmul.f32 %v3857_v61, %v3857_v61  ;;  %v3097_v13 = vld [vmem:[#allocation2 + $0x300] sm:$0xff] }
 0x109   :  { %v1234_v63 = vadd.f32 %v1233_v5, %v969_v34  ;;  %v3882_v4 = vsub.f32 %v3095_v58, %v3602_v14  ;;  %v3885_v21 = vsub.f32 %v3096_v1, %v3602_v14  ;;  %v976_v50 = vmul.f32 %v3860_v39, %v3860_v39  ;;  %v3098_v34 = vld [vmem:[#allocation2 + $0x308] sm:$0xff] }
 0x10a   :  { %v1228_v23 = vadd.f32 %v1227_v30, %v964_v46  ;;  %v1240_v17 = vadd.f32 %v974_v55, %v973_v48  ;;  %v3890_v22 = vsub.f32 %v3097_v13, %v3651_v3  ;;  %v3893_v5 = vsub.f32 %v3098_v34, %v3651_v3  ;;  %v3101_v55 = vld [vmem:[#allocation2 + $0x2f0] sm:$0xff] }
 0x10b   :  { %6449 = vst [vmem:[#allocation81_spill] sm:$0xff] %v3882_v4  ;;  %6450 = vst [vmem:[#allocation82_spill] sm:$0xff] %v3885_v21  ;;  %v972_v58 = vmul.f32 %v3867_v11, %v3867_v11  ;;  %v1235_v61 = vadd.f32 %v1234_v63, %v970_v18  ;;  %v3898_v1 = vsub.f32 %v3099_v27, %v3651_v3  ;;  %v3903_v48 = vmul.f32 0.0009765625, %v523_v31  ;;  %v3102_v63 = vld [vmem:[#allocation2 + $0x2f8] sm:$0xff] }
 0x10c   :  { %6451 = vst [vmem:[#allocation83_spill] sm:$0xff] %v3890_v22  ;;  %6452 = vst [vmem:[#allocation84_spill] sm:$0xff] %v3893_v5  ;;  %v3901_v46 = vsub.f32 %v3100_v0, %v3651_v3  ;;  %1229 = vadd.xlane.f32.xlu1 %v1228_v23  ;;  %v3905_v13 = vmul.f32 0.0009765625, %v514_v10  ;;  %v3908_v30 = vsub.f32 %v3101_v55, %v3602_v14  ;;  %v3116_v11 = vld [vmem:[#allocation2 + $0x398] sm:$0xff] }
 0x10d   :  { %6453 = vst [vmem:[#allocation85_spill] sm:$0xff] %v3898_v1  ;;  %v1241_v34 = vadd.f32 %v1240_v17, %v975_v6  ;;  %v1236_v39 = vadd.f32 %v1235_v61, %v971_v20  ;;  %v981_v18 = vmul.f32 %v3890_v22, %v3890_v22  ;;  %v982_v27 = vmul.f32 %v3893_v5, %v3893_v5  ;;  %v3103_v6 = vld [vmem:[#allocation2 + $0x320] sm:$0xff]  ;;  %v3104_v22 = vld [vmem:[#allocation2 + $0x328] sm:$0xff] }
 0x10e   :  { %6454 = vst [vmem:[#allocation86_spill] sm:$0xff] %v3901_v46  ;;  %6455 = vst [vmem:[#allocation87_spill] sm:$0xff] %v3908_v30  ;;  %v983_v0 = vmul.f32 %v3898_v1, %v3898_v1  ;;  %v3917_v31 = vsub.f32 %v3102_v63, %v3602_v14  ;;  %v977_v10 = vmul.f32 %v3882_v4, %v3882_v4  ;;  %v3105_v63 = vld [vmem:[#allocation2 + $0x330] sm:$0xff] }
 0x10f   :  { %v978_v17 = vmul.f32 %v3885_v21, %v3885_v21  ;;  %v1242_v61 = vadd.f32 %v1241_v34, %v976_v50  ;;  %v1237_v20 = vadd.f32 %v1236_v39, %v972_v58  ;;  %v3924_v23 = vsub.f32 %v3103_v6, %v3651_v3  ;;  %v3106_v21 = vld [vmem:[#allocation2 + $0x340] sm:$0xff]  ;;  %v3107_v58 = vld [vmem:[#allocation2 + $0x348] sm:$0xff] }
 0x110   :  { %6456 = vst [vmem:[#allocation88_spill] sm:$0xff] %v3917_v31  ;;  %v984_v55 = vmul.f32 %v3901_v46, %v3901_v46  ;;  %v1249_v1 = vadd.f32 %v982_v27, %v981_v18  ;;  %v3929_v14 = vsub.f32 %v3104_v22, %v3651_v3  ;;  %v3932_v4 = vsub.f32 %v3105_v63, %v3651_v3  ;;  %v3108_v18 = vld [vmem:[#allocation2 + $0x350] sm:$0xff]  ;;  %v3109_v22 = vld [vmem:[#allocation2 + $0x358] sm:$0xff] }
 0x111   :  { %6457 = vst [vmem:[#allocation89_spill] sm:$0xff] %v3924_v23  ;;  %v1243_v5 = vadd.f32 %v1242_v61, %v977_v10  ;;  %v3935_v39 = vsub.f32 %v3106_v21, %v3646_v49  ;;  %1238 = vadd.xlane.f32.xlu0 %v1237_v20  ;;  %v3938_v34 = vsub.f32 %v3107_v58, %v3646_v49 }
 0x112   :  { %6458 = vst [vmem:[#allocation90_spill] sm:$0xff] %v3929_v14  ;;  %6459 = vst [vmem:[#allocation91_spill] sm:$0xff] %v3932_v4  ;;  %v1250_v50 = vadd.f32 %v1249_v1, %v983_v0  ;;  %v3941_v27 = vsub.f32 %v3108_v18, %v3646_v49  ;;  %v3944_v10 = vsub.f32 %v3109_v22, %v3646_v49  ;;  %v3110_v1 = vld [vmem:[#allocation2 + $0x338] sm:$0xff] }
 0x113   :  { %6460 = vst [vmem:[#allocation92_spill] sm:$0xff] %v3935_v39  ;;  %6461 = vst [vmem:[#allocation93_spill] sm:$0xff] %v3938_v34  ;;  %v979_v61 = vmul.f32 %v3908_v30, %v3908_v30  ;;  %v980_v21 = vmul.f32 %v3917_v31, %v3917_v31  ;;  %v1244_v20 = vadd.f32 %v1243_v5, %v978_v17  ;;  %v3115_v30 = vld [vmem:[#allocation2 + $0x390] sm:$0xff] }
 0x114   :  { %6462 = vst [vmem:[#allocation94_spill] sm:$0xff] %v3941_v27  ;;  %6463 = vst [vmem:[#allocation95_spill] sm:$0xff] %v3944_v10  ;;  %v3951_v0 = vsub.f32 %v3110_v1, %v3651_v3  ;;  %v985_v6 = vmul.f32 %v3924_v23, %v3924_v23  ;;  %v1251_v63 = vadd.f32 %v1250_v50, %v984_v55  ;;  %v541_v1 = vpop.xlane.xlu1 %540  ;;  %v532_v23 = vpop.xlane.xlu0 %531  ;;  %v3111_v55 = vld [vmem:[#allocation2 + $0x360] sm:$0xff] }
 0x115   :  { %v989_v58 = vmul.f32 %v3935_v39, %v3935_v39  ;;  %v990_v18 = vmul.f32 %v3938_v34, %v3938_v34  ;;  %v1245_v22 = vadd.f32 %v1244_v20, %v979_v61  ;;  %v986_v46 = vmul.f32 %v3929_v14, %v3929_v14  ;;  %v3112_v39 = vld [vmem:[#allocation2 + $0x368] sm:$0xff] }
 0x116   :  { %6464 = vst [vmem:[#allocation96_spill] sm:$0xff] %v3951_v0  ;;  %v987_v5 = vmul.f32 %v3932_v4, %v3932_v4  ;;  %v991_v3 = vmul.f32 %v3941_v27, %v3941_v27  ;;  %v1252_v17 = vadd.f32 %v1251_v63, %v985_v6  ;;  %v3966_v50 = vsub.f32 %v3111_v55, %v3646_v49  ;;  %v3113_v4 = vld [vmem:[#allocation2 + $0x380] sm:$0xff]  ;;  %v3114_v6 = vld [vmem:[#allocation2 + $0x388] sm:$0xff] }
 0x117   :  { %v3969_v34 = vsub.f32 %v3112_v39, %v3646_v49  ;;  %v992_v61 = vmul.f32 %v3944_v10, %v3944_v10  ;;  %v1246_v20 = vadd.f32 %v1245_v22, %v980_v21  ;;  %v1258_v14 = vadd.f32 %v990_v18, %v989_v58  ;;  %v3117_v18 = vld [vmem:[#allocation2 + $0x370] sm:$0xff] }
 0x118   :  { %6465 = vst [vmem:[#allocation97_spill] sm:$0xff] %v3966_v50  ;;  %v3974_v31 = vsub.f32 %v3113_v4, %v3692_v25  ;;  %v3977_v63 = vsub.f32 %v3114_v6, %v3692_v25  ;;  %v988_v55 = vmul.f32 %v3951_v0, %v3951_v0  ;;  %v1253_v27 = vadd.f32 %v1252_v17, %v986_v46  ;;  %v3118_v17 = vld [vmem:[#allocation2 + $0x378] sm:$0xff] }
 0x119   :  { %6466 = vst [vmem:[#allocation98_spill] sm:$0xff] %v3969_v34  ;;  %v3982_v39 = vsub.f32 %v3115_v30, %v3692_v25  ;;  %v3985_v21 = vsub.f32 %v3116_v11, %v3692_v25  ;;  %1247 = vadd.xlane.f32.xlu1 %v1246_v20  ;;  %v3987_v58 = vmul.f32 0.0009765625, %v541_v1  ;;  %v3989_v4 = vmul.f32 0.0009765625, %v532_v23  ;;  %v3132_v0 = vld [vmem:[#allocation2 + $0x418] sm:$0xff] }
 0x11a   :  { %6467 = vst [vmem:[#allocation99_spill] sm:$0xff] %v3974_v31  ;;  %6468 = vst [vmem:[#allocation100_spill] sm:$0xff] %v3977_v63  ;;  %v3992_v22 = vsub.f32 %v3117_v18, %v3646_v49  ;;  %v1259_v6 = vadd.f32 %v1258_v14, %v991_v3  ;;  %v1254_v10 = vadd.f32 %v1253_v27, %v987_v5  ;;  %v3119_v3 = vld [vmem:[#allocation2 + $0x3a0] sm:$0xff] }
 0x11b   :  { %6469 = vst [vmem:[#allocation101_spill] sm:$0xff] %v3982_v39  ;;  %6470 = vst [vmem:[#allocation102_spill] sm:$0xff] %v3985_v21  ;;  %v997_v46 = vmul.f32 %v3974_v31, %v3974_v31  ;;  %v998_v30 = vmul.f32 %v3977_v63, %v3977_v63  ;;  %v999_v11 = vmul.f32 %v3982_v39, %v3982_v39  ;;  %v3120_v31 = vld [vmem:[#allocation2 + $0x3a8] sm:$0xff] }
 0x11c   :  { %6471 = vst [vmem:[#allocation103_spill] sm:$0xff] %v3992_v22  ;;  %v4001_v1 = vsub.f32 %v3118_v17, %v3646_v49  ;;  %v993_v23 = vmul.f32 %v3966_v50, %v3966_v50  ;;  %v994_v14 = vmul.f32 %v3969_v34, %v3969_v34  ;;  %v1260_v27 = vadd.f32 %v1259_v6, %v992_v61  ;;  %v3121_v17 = vld [vmem:[#allocation2 + $0x3b0] sm:$0xff]  ;;  %v3122_v34 = vld [vmem:[#allocation2 + $0x3c0] sm:$0xff] }
 0x11d   :  { %v1255_v5 = vadd.f32 %v1254_v10, %v988_v55  ;;  %v4008_v20 = vsub.f32 %v3119_v3, %v3692_v25  ;;  %v1000_v18 = vmul.f32 %v3985_v21, %v3985_v21  ;;  %v1267_v39 = vadd.f32 %v998_v30, %v997_v46  ;;  %v3123_v55 = vld [vmem:[#allocation2 + $0x3c8] sm:$0xff]  ;;  %v3124_v46 = vld [vmem:[#allocation2 + $0x3d0] sm:$0xff] }
 0x11e   :  { %6472 = vst [vmem:[#allocation104_spill] sm:$0xff] %v4001_v1  ;;  %v1261_v63 = vadd.f32 %v1260_v27, %v993_v23  ;;  %v4013_v49 = vsub.f32 %v3120_v31, %v3692_v25  ;;  %v4016_v50 = vsub.f32 %v3121_v17, %v3692_v25  ;;  %v4019_v10 = vsub.f32 %v3122_v34, %v3687_v8  ;;  %v3125_v31 = vld [vmem:[#allocation2 + $0x3d8] sm:$0xff] }
 0x11f   :  { %6473 = vst [vmem:[#allocation105_spill] sm:$0xff] %v4008_v20  ;;  %1256 = vadd.xlane.f32.xlu0 %v1255_v5  ;;  %v1268_v61 = vadd.f32 %v1267_v39, %v999_v11  ;;  %v4022_v6 = vsub.f32 %v3123_v55, %v3687_v8  ;;  %v4025_v30 = vsub.f32 %v3124_v46, %v3687_v8  ;;  %v3126_v39 = vld [vmem:[#allocation2 + $0x3b8] sm:$0xff] }
 0x120   :  { %6474 = vst [vmem:[#allocation106_spill] sm:$0xff] %v4013_v49  ;;  %6475 = vst [vmem:[#allocation107_spill] sm:$0xff] %v4016_v50  ;;  %v4028_v23 = vsub.f32 %v3125_v31, %v3687_v8  ;;  %v995_v27 = vmul.f32 %v3992_v22, %v3992_v22  ;;  %v996_v34 = vmul.f32 %v4001_v1, %v4001_v1  ;;  %v3131_v22 = vld [vmem:[#allocation2 + $0x410] sm:$0xff] }
 0x121   :  { %6476 = vst [vmem:[#allocation108_spill] sm:$0xff] %v4019_v10  ;;  %6477 = vst [vmem:[#allocation109_spill] sm:$0xff] %v4022_v6  ;;  %v1262_v5 = vadd.f32 %v1261_v63, %v994_v14  ;;  %v4035_v11 = vsub.f32 %v3126_v39, %v3692_v25  ;;  %v1001_v3 = vmul.f32 %v4008_v20, %v4008_v20  ;;  %v559_v39 = vpop.xlane.xlu1 %558  ;;  %v550_v20 = vpop.xlane.xlu0 %549 }
 0x122   :  { %6478 = vst [vmem:[#allocation110_spill] sm:$0xff] %v4025_v30  ;;  %6479 = vst [vmem:[#allocation111_spill] sm:$0xff] %v4028_v23  ;;  %v1269_v17 = vadd.f32 %v1268_v61, %v1000_v18  ;;  %v1005_v55 = vmul.f32 %v4019_v10, %v4019_v10  ;;  %v1006_v46 = vmul.f32 %v4022_v6, %v4022_v6  ;;  %v3127_v18 = vld [vmem:[#allocation2 + $0x3e0] sm:$0xff]  ;;  %v3128_v10 = vld [vmem:[#allocation2 + $0x3e8] sm:$0xff] }
 0x123   :  { %6480 = vst [vmem:[#allocation112_spill] sm:$0xff] %v4035_v11  ;;  %v1263_v31 = vadd.f32 %v1262_v5, %v995_v27  ;;  %v1002_v21 = vmul.f32 %v4013_v49, %v4013_v49  ;;  %v1003_v63 = vmul.f32 %v4016_v50, %v4016_v50  ;;  %v1007_v25 = vmul.f32 %v4025_v30, %v4025_v30  ;;  %v3129_v50 = vld [vmem:[#allocation2 + $0x400] sm:$0xff] }
 0x124   :  { %v1270_v14 = vadd.f32 %v1269_v17, %v1001_v3  ;;  %v4050_v61 = vsub.f32 %v3127_v18, %v3687_v8  ;;  %v4053_v6 = vsub.f32 %v3128_v10, %v3687_v8  ;;  %v1008_v27 = vmul.f32 %v4028_v23, %v4028_v23  ;;  %v3130_v3 = vld [vmem:[#allocation2 + $0x408] sm:$0xff] }
 0x125   :  { %v1264_v5 = vadd.f32 %v1263_v31, %v996_v34  ;;  %v1276_v49 = vadd.f32 %v1006_v46, %v1005_v55  ;;  %v4058_v1 = vsub.f32 %v3129_v50, %v3736_v47  ;;  %v4061_v17 = vsub.f32 %v3130_v3, %v3736_v47  ;;  %v3133_v46 = vld [vmem:[#allocation2 + $0x3f0] sm:$0xff] }
 0x126   :  { %6481 = vst [vmem:[#allocation113_spill] sm:$0xff] %v4050_v61  ;;  %6482 = vst [vmem:[#allocation114_spill] sm:$0xff] %v4053_v6  ;;  %v1004_v18 = vmul.f32 %v4035_v11, %v4035_v11  ;;  %v1271_v30 = vadd.f32 %v1270_v14, %v1002_v21  ;;  %v4066_v10 = vsub.f32 %v3131_v22, %v3736_v47  ;;  %v4071_v55 = vmul.f32 0.0009765625, %v559_v39  ;;  %v3134_v14 = vld [vmem:[#allocation2 + $0x3f8] sm:$0xff] }
 0x127   :  { %6483 = vst [vmem:[#allocation115_spill] sm:$0xff] %v4058_v1  ;;  %6484 = vst [vmem:[#allocation116_spill] sm:$0xff] %v4061_v17  ;;  %v4069_v34 = vsub.f32 %v3132_v0, %v3736_v47  ;;  %1265 = vadd.xlane.f32.xlu1 %v1264_v5  ;;  %v4073_v50 = vmul.f32 0.0009765625, %v550_v20  ;;  %v4076_v31 = vsub.f32 %v3133_v46, %v3687_v8  ;;  %v3148_v11 = vld [vmem:[#allocation2 + $0x498] sm:$0xff] }
 0x128   :  { %6485 = vst [vmem:[#allocation117_spill] sm:$0xff] %v4066_v10  ;;  %v1277_v3 = vadd.f32 %v1276_v49, %v1007_v25  ;;  %v1272_v23 = vadd.f32 %v1271_v30, %v1003_v63  ;;  %v1013_v21 = vmul.f32 %v4058_v1, %v4058_v1  ;;  %v1014_v22 = vmul.f32 %v4061_v17, %v4061_v17  ;;  %v3135_v25 = vld [vmem:[#allocation2 + $0x420] sm:$0xff]  ;;  %v3136_v1 = vld [vmem:[#allocation2 + $0x428] sm:$0xff] }
 0x129   :  { %6486 = vst [vmem:[#allocation118_spill] sm:$0xff] %v4069_v34  ;;  %6487 = vst [vmem:[#allocation119_spill] sm:$0xff] %v4076_v31  ;;  %v1015_v0 = vmul.f32 %v4066_v10, %v4066_v10  ;;  %v4085_v39 = vsub.f32 %v3134_v14, %v3687_v8  ;;  %v1009_v20 = vmul.f32 %v4050_v61, %v4050_v61  ;;  %v3137_v14 = vld [vmem:[#allocation2 + $0x430] sm:$0xff] }
 0x12a   :  { %v1010_v49 = vmul.f32 %v4053_v6, %v4053_v6  ;;  %v1278_v30 = vadd.f32 %v1277_v3, %v1008_v27  ;;  %v1273_v63 = vadd.f32 %v1272_v23, %v1004_v18  ;;  %v4092_v5 = vsub.f32 %v3135_v25, %v3736_v47  ;;  %v3138_v6 = vld [vmem:[#allocation2 + $0x440] sm:$0xff]  ;;  %v3139_v18 = vld [vmem:[#allocation2 + $0x448] sm:$0xff] }
 0x12b   :  { %6488 = vst [vmem:[#allocation120_spill] sm:$0xff] %v4085_v39  ;;  %v1016_v46 = vmul.f32 %v4069_v34, %v4069_v34  ;;  %v1285_v10 = vadd.f32 %v1014_v22, %v1013_v21  ;;  %v4097_v8 = vsub.f32 %v3136_v1, %v3736_v47  ;;  %v4100_v61 = vsub.f32 %v3137_v14, %v3736_v47  ;;  %v3140_v21 = vld [vmem:[#allocation2 + $0x450] sm:$0xff]  ;;  %v3141_v1 = vld [vmem:[#allocation2 + $0x458] sm:$0xff] }
 0x12c   :  { %6489 = vst [vmem:[#allocation121_spill] sm:$0xff] %v4092_v5  ;;  %v1279_v17 = vadd.f32 %v1278_v30, %v1009_v20  ;;  %v4103_v23 = vsub.f32 %v3138_v6, %v3729_v7  ;;  %1274 = vadd.xlane.f32.xlu0 %v1273_v63  ;;  %v4106_v3 = vsub.f32 %v3139_v18, %v3729_v7 }
 0x12d   :  { %6490 = vst [vmem:[#allocation122_spill] sm:$0xff] %v4097_v8  ;;  %6491 = vst [vmem:[#allocation123_spill] sm:$0xff] %v4100_v61  ;;  %v1286_v27 = vadd.f32 %v1285_v10, %v1015_v0  ;;  %v4109_v22 = vsub.f32 %v3140_v21, %v3729_v7  ;;  %v4112_v20 = vsub.f32 %v3141_v1, %v3729_v7  ;;  %v3142_v10 = vld [vmem:[#allocation2 + $0x438] sm:$0xff] }
 0x12e   :  { %6492 = vst [vmem:[#allocation124_spill] sm:$0xff] %v4103_v23  ;;  %6493 = vst [vmem:[#allocation125_spill] sm:$0xff] %v4106_v3  ;;  %v1011_v30 = vmul.f32 %v4076_v31, %v4076_v31  ;;  %v1012_v6 = vmul.f32 %v4085_v39, %v4085_v39  ;;  %v1280_v63 = vadd.f32 %v1279_v17, %v1010_v49  ;;  %v3147_v31 = vld [vmem:[#allocation2 + $0x490] sm:$0xff] }
 0x12f   :  { %6494 = vst [vmem:[#allocation126_spill] sm:$0xff] %v4109_v22  ;;  %6495 = vst [vmem:[#allocation127_spill] sm:$0xff] %v4112_v20  ;;  %v4119_v0 = vsub.f32 %v3142_v10, %v3736_v47  ;;  %v1017_v25 = vmul.f32 %v4092_v5, %v4092_v5  ;;  %v1287_v14 = vadd.f32 %v1286_v27, %v1016_v46  ;;  %v577_v10 = vpop.xlane.xlu1 %576  ;;  %v568_v5 = vpop.xlane.xlu0 %567  ;;  %v3143_v46 = vld [vmem:[#allocation2 + $0x460] sm:$0xff] }
 0x130   :  { %v1021_v18 = vmul.f32 %v4103_v23, %v4103_v23  ;;  %v1022_v21 = vmul.f32 %v4106_v3, %v4106_v3  ;;  %v1281_v1 = vadd.f32 %v1280_v63, %v1011_v30  ;;  %v1018_v34 = vmul.f32 %v4097_v8, %v4097_v8  ;;  %v3144_v23 = vld [vmem:[#allocation2 + $0x468] sm:$0xff] }
 0x131   :  { %6496 = vst [vmem:[#allocation128_spill] sm:$0xff] %v4119_v0  ;;  %v1019_v17 = vmul.f32 %v4100_v61, %v4100_v61  ;;  %v1023_v47 = vmul.f32 %v4109_v22, %v4109_v22  ;;  %v1288_v49 = vadd.f32 %v1287_v14, %v1017_v25  ;;  %v4134_v27 = vsub.f32 %v3143_v46, %v3729_v7  ;;  %v3145_v61 = vld [vmem:[#allocation2 + $0x480] sm:$0xff]  ;;  %v3146_v25 = vld [vmem:[#allocation2 + $0x488] sm:$0xff] }
 0x132   :  { %v4137_v3 = vsub.f32 %v3144_v23, %v3729_v7  ;;  %v1024_v30 = vmul.f32 %v4112_v20, %v4112_v20  ;;  %v1282_v63 = vadd.f32 %v1281_v1, %v1012_v6  ;;  %v1294_v8 = vadd.f32 %v1022_v21, %v1021_v18  ;;  %v3149_v21 = vld [vmem:[#allocation2 + $0x470] sm:$0xff] }
 0x133   :  { %6497 = vst [vmem:[#allocation129_spill] sm:$0xff] %v4134_v27  ;;  %v4142_v39 = vsub.f32 %v3145_v61, %v3778_v12  ;;  %v4145_v14 = vsub.f32 %v3146_v25, %v3778_v12  ;;  %v1020_v46 = vmul.f32 %v4119_v0, %v4119_v0  ;;  %v1289_v22 = vadd.f32 %v1288_v49, %v1018_v34  ;;  %v3150_v49 = vld [vmem:[#allocation2 + $0x478] sm:$0xff] }
 0x134   :  { %6498 = vst [vmem:[#allocation130_spill] sm:$0xff] %v4137_v3  ;;  %v4150_v23 = vsub.f32 %v3147_v31, %v3778_v12  ;;  %v4153_v6 = vsub.f32 %v3148_v11, %v3778_v12  ;;  %1283 = vadd.xlane.f32.xlu1 %v1282_v63  ;;  %v4155_v18 = vmul.f32 0.0009765625, %v577_v10  ;;  %v4157_v61 = vmul.f32 0.0009765625, %v568_v5 }
 0x135   :  { %6499 = vst [vmem:[#allocation131_spill] sm:$0xff] %v4142_v39  ;;  %6500 = vst [vmem:[#allocation132_spill] sm:$0xff] %v4145_v14  ;;  %v4160_v1 = vsub.f32 %v3149_v21, %v3729_v7  ;;  %v1295_v25 = vadd.f32 %v1294_v8, %v1023_v47  ;;  %v1290_v20 = vadd.f32 %v1289_v22, %v1019_v17  ;;  %v3151_v47 = vld [vmem:[#allocation2 + $0x4a0] sm:$0xff] }
 0x136   :  { %6501 = vst [vmem:[#allocation133_spill] sm:$0xff] %v4150_v23  ;;  %6502 = vst [vmem:[#allocation134_spill] sm:$0xff] %v4153_v6  ;;  %v1029_v34 = vmul.f32 %v4142_v39, %v4142_v39  ;;  %v1030_v31 = vmul.f32 %v4145_v14, %v4145_v14  ;;  %v1031_v11 = vmul.f32 %v4150_v23, %v4150_v23  ;;  %v3152_v14 = vld [vmem:[#allocation2 + $0x4a8] sm:$0xff] }
 0x137   :  { %6503 = vst [vmem:[#allocation135_spill] sm:$0xff] %v4160_v1  ;;  %v4169_v10 = vsub.f32 %v3150_v49, %v3729_v7  ;;  %v1025_v5 = vmul.f32 %v4134_v27, %v4134_v27  ;;  %v1026_v8 = vmul.f32 %v4137_v3, %v4137_v3  ;;  %v1296_v22 = vadd.f32 %v1295_v25, %v1024_v30  ;;  %v3153_v27 = vld [vmem:[#allocation2 + $0x4c0] sm:$0xff]  ;;  %v3165_v3 = vld [vmem:[#allocation2 + $0x518] sm:$0xff] }
 0x138   :  { %v1291_v17 = vadd.f32 %v1290_v20, %v1020_v46  ;;  %v4176_v63 = vsub.f32 %v3151_v47, %v3778_v12  ;;  %v1032_v21 = vmul.f32 %v4153_v6, %v4153_v6  ;;  %v1303_v23 = vadd.f32 %v1030_v31, %v1029_v34  ;;  %v3154_v46 = vld [vmem:[#allocation2 + $0x4c8] sm:$0xff]  ;;  %v3155_v47 = vld [vmem:[#allocation2 + $0x4d0] sm:$0xff]  ;;  %v3156_v31 = vld [vmem:[#allocation2 + $0x4d8] sm:$0xff] }
 0x139   :  { %6504 = vst [vmem:[#allocation136_spill] sm:$0xff] %v4169_v10  ;;  %v1027_v7 = vmul.f32 %v4160_v1, %v4160_v1  ;;  %v1297_v49 = vadd.f32 %v1296_v22, %v1025_v5  ;;  %v4183_v39 = vsub.f32 %v3152_v14, %v3778_v12  ;;  %v4186_v30 = vsub.f32 %v3153_v27, %v3738_v57  ;;  %v3157_v27 = vld [vmem:[#allocation2 + $0x4b0] sm:$0xff]  ;;  %v3163_v1 = vld [vmem:[#allocation2 + $0x508] sm:$0xff] }
 0x13a   :  { %6505 = vst [vmem:[#allocation137_spill] sm:$0xff] %v4176_v63  ;;  %1292 = vadd.xlane.f32.xlu0 %v1291_v17  ;;  %v1304_v20 = vadd.f32 %v1303_v23, %v1031_v11  ;;  %v4189_v25 = vsub.f32 %v3154_v46, %v3738_v57  ;;  %v4192_v34 = vsub.f32 %v3155_v47, %v3738_v57  ;;  %v3158_v23 = vld [vmem:[#allocation2 + $0x4b8] sm:$0xff] }
 0x13b   :  { %6506 = vst [vmem:[#allocation138_spill] sm:$0xff] %v4183_v39  ;;  %6507 = vst [vmem:[#allocation139_spill] sm:$0xff] %v4186_v30  ;;  %v4195_v5 = vsub.f32 %v3156_v31, %v3738_v57  ;;  %v1028_v14 = vmul.f32 %v4169_v10, %v4169_v10  ;;  %v1298_v22 = vadd.f32 %v1297_v49, %v1026_v8  ;;  %v3159_v49 = vld [vmem:[#allocation2 + $0x4e0] sm:$0xff] }
 0x13c   :  { %6508 = vst [vmem:[#allocation140_spill] sm:$0xff] %v4189_v25  ;;  %6509 = vst [vmem:[#allocation141_spill] sm:$0xff] %v4192_v34  ;;  %v4200_v17 = vsub.f32 %v3157_v27, %v3778_v12  ;;  %v4203_v11 = vsub.f32 %v3158_v23, %v3778_v12  ;;  %v1033_v46 = vmul.f32 %v4176_v63, %v4176_v63  ;;  %v3160_v63 = vld [vmem:[#allocation2 + $0x4e8] sm:$0xff] }
 0x13d   :  { %6510 = vst [vmem:[#allocation142_spill] sm:$0xff] %v4195_v5  ;;  %v1305_v47 = vadd.f32 %v1304_v20, %v1032_v21  ;;  %v1037_v31 = vmul.f32 %v4186_v30, %v4186_v30  ;;  %v1038_v6 = vmul.f32 %v4189_v25, %v4189_v25  ;;  %v1299_v10 = vadd.f32 %v1298_v22, %v1027_v7  ;;  %v3161_v20 = vld [vmem:[#allocation2 + $0x4f0] sm:$0xff] }
 0x13e   :  { %6511 = vst [vmem:[#allocation143_spill] sm:$0xff] %v4200_v17  ;;  %6512 = vst [vmem:[#allocation144_spill] sm:$0xff] %v4203_v11  ;;  %v1034_v8 = vmul.f32 %v4183_v39, %v4183_v39  ;;  %v4214_v27 = vsub.f32 %v3159_v49, %v3738_v57  ;;  %v1039_v12 = vmul.f32 %v4192_v34, %v4192_v34  ;;  %v3162_v39 = vld [vmem:[#allocation2 + $0x500] sm:$0xff]  ;;  %v3164_v34 = vld [vmem:[#allocation2 + $0x510] sm:$0xff] }
 0x13f   :  { %v1306_v23 = vadd.f32 %v1305_v47, %v1033_v46  ;;  %v4219_v21 = vsub.f32 %v3160_v63, %v3738_v57  ;;  %v4222_v30 = vsub.f32 %v3161_v20, %v3738_v57  ;;  %v1040_v7 = vmul.f32 %v4195_v5, %v4195_v5  ;;  %v3167_v5 = vld [vmem:[#allocation2 + $0x520] sm:$0xff] }
 0x140   :  { %6513 = vst [vmem:[#allocation145_spill] sm:$0xff] %v4214_v27  ;;  %v1300_v22 = vadd.f32 %v1299_v10, %v1028_v14  ;;  %v1312_v25 = vadd.f32 %v1038_v6, %v1037_v31  ;;  %v4227_v49 = vsub.f32 %v3162_v39, %v3821_v43  ;;  %v4230_v46 = vsub.f32 %v3163_v1, %v3821_v43  ;;  %v3166_v6 = vld [vmem:[#allocation2 + $0x4f8] sm:$0xff] }
 0x141   :  { %6514 = vst [vmem:[#allocation146_spill] sm:$0xff] %v4219_v21  ;;  %6515 = vst [vmem:[#allocation147_spill] sm:$0xff] %v4222_v30  ;;  %v1035_v63 = vmul.f32 %v4200_v17, %v4200_v17  ;;  %v1307_v47 = vadd.f32 %v1306_v23, %v1034_v8  ;;  %v4235_v20 = vsub.f32 %v3164_v34, %v3821_v43 }
 0x142   :  { %6516 = vst [vmem:[#allocation148_spill] sm:$0xff] %v4227_v49  ;;  %6517 = vst [vmem:[#allocation149_spill] sm:$0xff] %v4230_v46  ;;  %v4238_v10 = vsub.f32 %v3165_v3, %v3821_v43  ;;  %1301 = vadd.xlane.f32.xlu1 %v1300_v22  ;;  %v1036_v39 = vmul.f32 %v4203_v11, %v4203_v11  ;;  %v4243_v1 = vsub.f32 %v3166_v6, %v3738_v57 }
 0x143   :  { %6518 = vst [vmem:[#allocation150_spill] sm:$0xff] %v4235_v20  ;;  %v1041_v14 = vmul.f32 %v4214_v27, %v4214_v27  ;;  %v1313_v31 = vadd.f32 %v1312_v25, %v1039_v12  ;;  %v1308_v8 = vadd.f32 %v1307_v47, %v1035_v63  ;;  %v1045_v34 = vmul.f32 %v4227_v49, %v4227_v49  ;;  %v3168_v63 = vld [vmem:[#allocation2 + $0x528] sm:$0xff]  ;;  %v3169_v27 = vld [vmem:[#allocation2 + $0x540] sm:$0xff] }
 0x144   :  { %6519 = vst [vmem:[#allocation151_spill] sm:$0xff] %v4238_v10  ;;  %6520 = vst [vmem:[#allocation152_spill] sm:$0xff] %v4243_v1  ;;  %v1046_v3 = vmul.f32 %v4230_v46, %v4230_v46  ;;  %v1047_v23 = vmul.f32 %v4235_v20, %v4235_v20  ;;  %v1042_v22 = vmul.f32 %v4219_v21, %v4219_v21 }
 0x145   :  { %v1043_v57 = vmul.f32 %v4222_v30, %v4222_v30  ;;  %v1314_v6 = vadd.f32 %v1313_v31, %v1040_v7  ;;  %v4258_v25 = vsub.f32 %v3167_v5, %v3821_v43  ;;  %v1309_v12 = vadd.f32 %v1308_v8, %v1036_v39  ;;  %v3170_v30 = vld [vmem:[#allocation2 + $0x548] sm:$0xff]  ;;  %v3171_v5 = vld [vmem:[#allocation2 + $0x550] sm:$0xff] }
 0x146   :  { %v4261_v47 = vsub.f32 %v3168_v63, %v3821_v43  ;;  %v1048_v46 = vmul.f32 %v4238_v10, %v4238_v10  ;;  %v1321_v20 = vadd.f32 %v1046_v3, %v1045_v34  ;;  %v4266_v21 = vsub.f32 %v3169_v27, %v3819_v19  ;;  %v3172_v8 = vld [vmem:[#allocation2 + $0x530] sm:$0xff]  ;;  %v3173_v3 = vld [vmem:[#allocation2 + $0x558] sm:$0xff] }
 0x147   :  { %6521 = vst [vmem:[#allocation153_spill] sm:$0xff] %v4258_v25  ;;  %v1315_v49 = vadd.f32 %v1314_v6, %v1041_v14  ;;  %v4269_v7 = vsub.f32 %v3170_v30, %v3819_v19  ;;  %v4272_v39 = vsub.f32 %v3171_v5, %v3819_v19  ;;  %1310 = vadd.xlane.f32.xlu0 %v1309_v12  ;;  %v3174_v30 = vld [vmem:[#allocation2 + $0x538] sm:$0xff] }
 0x148   :  { %6522 = vst [vmem:[#allocation154_spill] sm:$0xff] %v4261_v47  ;;  %6523 = vst [vmem:[#allocation155_spill] sm:$0xff] %v4266_v21  ;;  %v1044_v31 = vmul.f32 %v4243_v1, %v4243_v1  ;;  %v4277_v34 = vsub.f32 %v3172_v8, %v3821_v43  ;;  %v1322_v14 = vadd.f32 %v1321_v20, %v1047_v23 }
 0x149   :  { %6524 = vst [vmem:[#allocation156_spill] sm:$0xff] %v4269_v7  ;;  %6525 = vst [vmem:[#allocation157_spill] sm:$0xff] %v4272_v39  ;;  %v4280_v27 = vsub.f32 %v3173_v3, %v3819_v19  ;;  %v1316_v6 = vadd.f32 %v1315_v49, %v1042_v22  ;;  %v4283_v63 = vsub.f32 %v3174_v30, %v3821_v43  ;;  %v3175_v22 = vld [vmem:[#allocation2 + $0x560] sm:$0xff]  ;;  %v3176_v3 = vld [vmem:[#allocation2 + $0x568] sm:$0xff] }
 0x14a   :  { %6526 = vst [vmem:[#allocation158_spill] sm:$0xff] %v4277_v34  ;;  %v1049_v12 = vmul.f32 %v4258_v25, %v4258_v25  ;;  %v1053_v5 = vmul.f32 %v4266_v21, %v4266_v21  ;;  %v1050_v8 = vmul.f32 %v4261_v47, %v4261_v47  ;;  %v1323_v10 = vadd.f32 %v1322_v14, %v1048_v46  ;;  %v3177_v21 = vld [vmem:[#allocation2 + $0x570] sm:$0xff]  ;;  %v3178_v47 = vld [vmem:[#allocation2 + $0x580] sm:$0xff] }
 0x14b   :  { %6527 = vst [vmem:[#allocation159_spill] sm:$0xff] %v4280_v27  ;;  %6528 = vst [vmem:[#allocation160_spill] sm:$0xff] %v4283_v63  ;;  %v1054_v20 = vmul.f32 %v4269_v7, %v4269_v7  ;;  %v1055_v49 = vmul.f32 %v4272_v39, %v4272_v39  ;;  %v1317_v23 = vadd.f32 %v1316_v6, %v1043_v57 }
 0x14c   :  { %v4296_v43 = vsub.f32 %v3175_v22, %v3819_v19  ;;  %v4299_v30 = vsub.f32 %v3176_v3, %v3819_v19  ;;  %v4302_v25 = vsub.f32 %v3177_v21, %v3819_v19  ;;  %v1324_v46 = vadd.f32 %v1323_v10, %v1049_v12  ;;  %v3179_v22 = vld [vmem:[#allocation2 + $0x588] sm:$0xff]  ;;  %v3180_v3 = vld [vmem:[#allocation2 + $0x590] sm:$0xff]  ;;  %v3181_v21 = vld [vmem:[#allocation2 + $0x598] sm:$0xff] }
 0x14d   :  { %v1056_v14 = vmul.f32 %v4280_v27, %v4280_v27  ;;  %v1330_v7 = vadd.f32 %v1054_v20, %v1053_v5  ;;  %v4307_v57 = vsub.f32 %v3178_v47, %v3905_v13  ;;  %v1318_v6 = vadd.f32 %v1317_v23, %v1044_v31  ;;  %v3182_v20 = vld [vmem:[#allocation2 + $0x578] sm:$0xff] }
 0x14e   :  { %6529 = vst [vmem:[#allocation161_spill] sm:$0xff] %v4296_v43  ;;  %6530 = vst [vmem:[#allocation162_spill] sm:$0xff] %v4299_v30  ;;  %v4310_v39 = vsub.f32 %v3179_v22, %v3905_v13  ;;  %v4313_v1 = vsub.f32 %v3180_v3, %v3905_v13  ;;  %v4316_v10 = vsub.f32 %v3181_v21, %v3905_v13 }
 0x14f   :  { %6531 = vst [vmem:[#allocation163_spill] sm:$0xff] %v4302_v25  ;;  %6532 = vst [vmem:[#allocation164_spill] sm:$0xff] %v4307_v57  ;;  %v1051_v12 = vmul.f32 %v4277_v34, %v4277_v34  ;;  %v1052_v47 = vmul.f32 %v4283_v63, %v4283_v63  ;;  %v1325_v5 = vadd.f32 %v1324_v46, %v1050_v8  ;;  %1319 = vadd.xlane.f32.xlu1 %v1318_v6  ;;  %v3184_v6 = vld [vmem:[#allocation2 + $0x5a8] sm:$0xff] }
 0x150   :  { %6533 = vst [vmem:[#allocation165_spill] sm:$0xff] %v4310_v39  ;;  %6534 = vst [vmem:[#allocation166_spill] sm:$0xff] %v4313_v1  ;;  %v1331_v31 = vadd.f32 %v1330_v7, %v1055_v49  ;;  %v4323_v23 = vsub.f32 %v3182_v20, %v3819_v19  ;;  %v1057_v22 = vmul.f32 %v4296_v43, %v4296_v43  ;;  %v3183_v49 = vld [vmem:[#allocation2 + $0x5a0] sm:$0xff]  ;;  %v3188_v43 = vld [vmem:[#allocation2 + $0x5d8] sm:$0xff] }
 0x151   :  { %6535 = vst [vmem:[#allocation167_spill] sm:$0xff] %v4316_v10  ;;  %v1061_v3 = vmul.f32 %v4307_v57, %v4307_v57  ;;  %v1062_v21 = vmul.f32 %v4310_v39, %v4310_v39  ;;  %v1326_v27 = vadd.f32 %v1325_v5, %v1051_v12  ;;  %v1058_v63 = vmul.f32 %v4299_v30, %v4299_v30  ;;  %v3187_v30 = vld [vmem:[#allocation2 + $0x5d0] sm:$0xff] }
 0x152   :  { %6536 = vst [vmem:[#allocation168_spill] sm:$0xff] %v4323_v23  ;;  %v1332_v8 = vadd.f32 %v1331_v31, %v1056_v14  ;;  %v1063_v7 = vmul.f32 %v4313_v1, %v4313_v1  ;;  %v1059_v19 = vmul.f32 %v4302_v25, %v4302_v25  ;;  %v4338_v46 = vsub.f32 %v3183_v49, %v3905_v13  ;;  %v3185_v31 = vld [vmem:[#allocation2 + $0x5c0] sm:$0xff]  ;;  %v3186_v25 = vld [vmem:[#allocation2 + $0x5c8] sm:$0xff] }
 0x153   :  { %v4341_v20 = vsub.f32 %v3184_v6, %v3905_v13  ;;  %v1064_v12 = vmul.f32 %v4316_v10, %v4316_v10  ;;  %v1327_v5 = vadd.f32 %v1326_v27, %v1052_v47  ;;  %v1339_v14 = vadd.f32 %v1062_v21, %v1061_v3  ;;  %v3190_v21 = vld [vmem:[#allocation2 + $0x5b8] sm:$0xff] }
 0x154   :  { %6537 = vst [vmem:[#allocation169_spill] sm:$0xff] %v4338_v46  ;;  %v1333_v39 = vadd.f32 %v1332_v8, %v1057_v22  ;;  %v4346_v1 = vsub.f32 %v3185_v31, %v3903_v48  ;;  %v1060_v57 = vmul.f32 %v4323_v23, %v4323_v23  ;;  %v4351_v49 = vsub.f32 %v3186_v25, %v3903_v48  ;;  %v3189_v22 = vld [vmem:[#allocation2 + $0x5b0] sm:$0xff] }
 0x155   :  { %6538 = vst [vmem:[#allocation170_spill] sm:$0xff] %v4341_v20  ;;  %v4354_v6 = vsub.f32 %v3187_v30, %v3903_v48  ;;  %v4357_v27 = vsub.f32 %v3188_v43, %v3903_v48  ;;  %1328 = vadd.xlane.f32.xlu0 %v1327_v5  ;;  %v4360_v3 = vsub.f32 %v3189_v22, %v3905_v13 }
 0x156   :  { %6539 = vst [vmem:[#allocation171_spill] sm:$0xff] %v4346_v1  ;;  %6540 = vst [vmem:[#allocation172_spill] sm:$0xff] %v4351_v49  ;;  %v1334_v47 = vadd.f32 %v1333_v39, %v1058_v63  ;;  %v4363_v8 = vsub.f32 %v3190_v21, %v3905_v13  ;;  %v1340_v25 = vadd.f32 %v1339_v14, %v1063_v7  ;;  %v3191_v13 = vld [vmem:[#allocation2 + $0x5e0] sm:$0xff]  ;;  %v3192_v14 = vld [vmem:[#allocation2 + $0x5e8] sm:$0xff] }
 0x157   :  { %6541 = vst [vmem:[#allocation173_spill] sm:$0xff] %v4354_v6  ;;  %6542 = vst [vmem:[#allocation174_spill] sm:$0xff] %v4357_v27  ;;  %v1065_v31 = vmul.f32 %v4338_v46, %v4338_v46  ;;  %v1069_v30 = vmul.f32 %v4346_v1, %v4346_v1  ;;  %v1070_v43 = vmul.f32 %v4351_v49, %v4351_v49  ;;  %v3193_v1 = vld [vmem:[#allocation2 + $0x5f0] sm:$0xff] }
 0x158   :  { %6543 = vst [vmem:[#allocation175_spill] sm:$0xff] %v4360_v3  ;;  %6544 = vst [vmem:[#allocation176_spill] sm:$0xff] %v4363_v8  ;;  %v1071_v39 = vmul.f32 %v4354_v6, %v4354_v6  ;;  %v1335_v63 = vadd.f32 %v1334_v47, %v1059_v19  ;;  %v1066_v5 = vmul.f32 %v4341_v20, %v4341_v20  ;;  %v3194_v20 = vld [vmem:[#allocation2 + $0x600] sm:$0xff] }
 0x159   :  { %v1341_v22 = vadd.f32 %v1340_v25, %v1064_v12  ;;  %v4376_v7 = vsub.f32 %v3191_v13, %v3903_v48  ;;  %v4379_v21 = vsub.f32 %v3192_v14, %v3903_v48  ;;  %v4382_v46 = vsub.f32 %v3193_v1, %v3903_v48  ;;  %v3195_v25 = vld [vmem:[#allocation2 + $0x608] sm:$0xff]  ;;  %v3196_v1 = vld [vmem:[#allocation2 + $0x610] sm:$0xff] }
 0x15a   :  { %v1072_v6 = vmul.f32 %v4357_v27, %v4357_v27  ;;  %v1348_v19 = vadd.f32 %v1070_v43, %v1069_v30  ;;  %v1336_v47 = vadd.f32 %v1335_v63, %v1060_v57  ;;  %v4387_v12 = vsub.f32 %v3194_v20, %v3989_v4  ;;  %v3197_v27 = vld [vmem:[#allocation2 + $0x618] sm:$0xff] }
 0x15b   :  { %6545 = vst [vmem:[#allocation177_spill] sm:$0xff] %v4376_v7  ;;  %6546 = vst [vmem:[#allocation178_spill] sm:$0xff] %v4379_v21  ;;  %v1342_v49 = vadd.f32 %v1341_v22, %v1065_v31  ;;  %v4390_v13 = vsub.f32 %v3195_v25, %v3989_v4  ;;  %v1067_v14 = vmul.f32 %v4360_v3, %v4360_v3  ;;  %v3198_v30 = vld [vmem:[#allocation2 + $0x5f8] sm:$0xff] }
 0x15c   :  { %6547 = vst [vmem:[#allocation179_spill] sm:$0xff] %v4382_v46  ;;  %6548 = vst [vmem:[#allocation180_spill] sm:$0xff] %v4387_v12  ;;  %v1349_v10 = vadd.f32 %v1348_v19, %v1071_v39  ;;  %v4395_v23 = vsub.f32 %v3196_v1, %v3989_v4  ;;  %v4398_v57 = vsub.f32 %v3197_v27, %v3989_v4  ;;  %1337 = vadd.xlane.f32.xlu1 %v1336_v47 }
 0x15d   :  { %6549 = vst [vmem:[#allocation181_spill] sm:$0xff] %v4390_v13  ;;  %v1068_v20 = vmul.f32 %v4363_v8, %v4363_v8  ;;  %v1343_v31 = vadd.f32 %v1342_v49, %v1066_v5  ;;  %v4403_v43 = vsub.f32 %v3198_v30, %v3903_v48  ;;  %v1073_v39 = vmul.f32 %v4376_v7, %v4376_v7  ;;  %v3199_v5 = vld [vmem:[#allocation2 + $0x620] sm:$0xff] }
 0x15e   :  { %6550 = vst [vmem:[#allocation182_spill] sm:$0xff] %v4395_v23  ;;  %6551 = vst [vmem:[#allocation183_spill] sm:$0xff] %v4398_v57  ;;  %v1350_v63 = vadd.f32 %v1349_v10, %v1072_v6  ;;  %v1077_v22 = vmul.f32 %v4387_v12, %v4387_v12  ;;  %v1078_v27 = vmul.f32 %v4390_v13, %v4390_v13  ;;  %v3200_v6 = vld [vmem:[#allocation2 + $0x628] sm:$0xff] }
 0x15f   :  { %6552 = vst [vmem:[#allocation184_spill] sm:$0xff] %v4403_v43  ;;  %v1079_v19 = vmul.f32 %v4395_v23, %v4395_v23  ;;  %v1344_v47 = vadd.f32 %v1343_v31, %v1067_v14  ;;  %v1074_v49 = vmul.f32 %v4379_v21, %v4379_v21  ;;  %v1075_v48 = vmul.f32 %v4382_v46, %v4382_v46  ;;  %v3201_v31 = vld [vmem:[#allocation2 + $0x640] sm:$0xff]  ;;  %v3202_v12 = vld [vmem:[#allocation2 + $0x648] sm:$0xff] }
 0x160   :  { %v4418_v25 = vsub.f32 %v3199_v5, %v3989_v4  ;;  %v1351_v10 = vadd.f32 %v1350_v63, %v1073_v39  ;;  %v4421_v1 = vsub.f32 %v3200_v6, %v3989_v4  ;;  %v1080_v30 = vmul.f32 %v4398_v57, %v4398_v57  ;;  %v3203_v5 = vld [vmem:[#allocation2 + $0x650] sm:$0xff]  ;;  %v3204_v57 = vld [vmem:[#allocation2 + $0x658] sm:$0xff] }
 0x161   :  { %v1357_v23 = vadd.f32 %v1078_v27, %v1077_v22  ;;  %v1345_v14 = vadd.f32 %v1344_v47, %v1068_v20  ;;  %v4426_v13 = vsub.f32 %v3201_v31, %v3987_v58  ;;  %v4429_v46 = vsub.f32 %v3202_v12, %v3987_v58  ;;  %v3205_v22 = vld [vmem:[#allocation2 + $0x630] sm:$0xff]  ;;  %v3206_v12 = vld [vmem:[#allocation2 + $0x638] sm:$0xff] }
 0x162   :  { %6553 = vst [vmem:[#allocation185_spill] sm:$0xff] %v4418_v25  ;;  %6554 = vst [vmem:[#allocation186_spill] sm:$0xff] %v4421_v1  ;;  %v4432_v39 = vsub.f32 %v3203_v5, %v3987_v58  ;;  %v1076_v63 = vmul.f32 %v4403_v43, %v4403_v43  ;;  %v1352_v6 = vadd.f32 %v1351_v10, %v1074_v49 }
 0x163   :  { %6555 = vst [vmem:[#allocation187_spill] sm:$0xff] %v4426_v13  ;;  %6556 = vst [vmem:[#allocation188_spill] sm:$0xff] %v4429_v46  ;;  %v1358_v21 = vadd.f32 %v1357_v23, %v1079_v19  ;;  %v4437_v20 = vsub.f32 %v3204_v57, %v3987_v58  ;;  %1346 = vadd.xlane.f32.xlu0 %v1345_v14  ;;  %v4440_v27 = vsub.f32 %v3205_v22, %v3989_v4  ;;  %v586_v14 = vpop.xlane.xlu0 %585 }
 0x164   :  { %6557 = vst [vmem:[#allocation189_spill] sm:$0xff] %v4432_v39  ;;  %v4443_v47 = vsub.f32 %v3206_v12, %v3989_v4  ;;  %v1081_v31 = vmul.f32 %v4418_v25, %v4418_v25  ;;  %v1085_v49 = vmul.f32 %v4426_v13, %v4426_v13  ;;  %v1353_v23 = vadd.f32 %v1352_v6, %v1075_v48  ;;  %v3207_v4 = vld [vmem:[#allocation2 + $0x660] sm:$0xff]  ;;  %v3208_v12 = vld [vmem:[#allocation2 + $0x668] sm:$0xff]  ;;  %v3209_v48 = vld [vmem:[#allocation2 + $0x670] sm:$0xff] }
 0x165   :  { %6558 = vst [vmem:[#allocation190_spill] sm:$0xff] %v4437_v20  ;;  %6559 = vst [vmem:[#allocation191_spill] sm:$0xff] %v4440_v27  ;;  %v1359_v19 = vadd.f32 %v1358_v21, %v1080_v30  ;;  %v1086_v57 = vmul.f32 %v4429_v46, %v4429_v46  ;;  %v1087_v10 = vmul.f32 %v4432_v39, %v4432_v39  ;;  %v3210_v13 = vld [vmem:[#allocation2 + $0x680] sm:$0xff] }
 0x166   :  { %6560 = vst [vmem:[#allocation192_spill] sm:$0xff] %v4443_v47  ;;  %v1082_v5 = vmul.f32 %v4421_v1, %v4421_v1  ;;  %v4456_v22 = vsub.f32 %v3207_v4, %v3987_v58  ;;  %v4459_v25 = vsub.f32 %v3208_v12, %v3987_v58  ;;  %v4462_v21 = vsub.f32 %v3209_v48, %v3987_v58  ;;  %v3211_v4 = vld [vmem:[#allocation2 + $0x688] sm:$0xff]  ;;  %v3212_v12 = vld [vmem:[#allocation2 + $0x690] sm:$0xff]  ;;  %v3213_v48 = vld [vmem:[#allocation2 + $0x698] sm:$0xff] }
 0x167   :  { %v1354_v30 = vadd.f32 %v1353_v23, %v1076_v63  ;;  %v1360_v6 = vadd.f32 %v1359_v19, %v1081_v31  ;;  %v1088_v39 = vmul.f32 %v4437_v20, %v4437_v20  ;;  %v1366_v46 = vadd.f32 %v1086_v57, %v1085_v49  ;;  %v3214_v57 = vld [vmem:[#allocation2 + $0x678] sm:$0xff] }
 0x168   :  { %6561 = vst [vmem:[#allocation193_spill] sm:$0xff] %v4456_v22  ;;  %6562 = vst [vmem:[#allocation194_spill] sm:$0xff] %v4459_v25  ;;  %v4467_v1 = vsub.f32 %v3210_v13, %v4073_v50  ;;  %v4470_v43 = vsub.f32 %v3211_v4, %v4073_v50  ;;  %v4473_v7 = vsub.f32 %v3212_v12, %v4073_v50  ;;  %v4478_v31 = vmul.f32 0.0009765625, %v586_v14 }
 0x169   :  { %6563 = vst [vmem:[#allocation195_spill] sm:$0xff] %v4462_v21  ;;  %v4476_v63 = vsub.f32 %v3213_v48, %v4073_v50  ;;  %1355 = vadd.xlane.f32.xlu1 %v1354_v30  ;;  %v1083_v49 = vmul.f32 %v4440_v27, %v4440_v27  ;;  %v1361_v13 = vadd.f32 %v1360_v6, %v1082_v5  ;;  %v3215_v5 = vld [vmem:[#allocation2 + $0x6a0] sm:$0xff] }
 0x16a   :  { %6564 = vst [vmem:[#allocation196_spill] sm:$0xff] %v4467_v1  ;;  %6565 = vst [vmem:[#allocation197_spill] sm:$0xff] %v4470_v43  ;;  %v1367_v23 = vadd.f32 %v1366_v46, %v1087_v10  ;;  %v1084_v19 = vmul.f32 %v4443_v47, %v4443_v47  ;;  %v4485_v4 = vsub.f32 %v3214_v57, %v3987_v58  ;;  %v2304_v47 = vld [vmem:[#allocation7] sm:$0xff] }
 0x16b   :  { %6566 = vst [vmem:[#allocation198_spill] sm:$0xff] %v4473_v7  ;;  %6567 = vst [vmem:[#allocation199_spill] sm:$0xff] %v4476_v63  ;;  %v1093_v12 = vmul.f32 %v4467_v1, %v4467_v1  ;;  %v1094_v14 = vmul.f32 %v4470_v43, %v4470_v43  ;;  %v1362_v48 = vadd.f32 %v1361_v13, %v1083_v49 }
 0x16c   :  { %6568 = vst [vmem:[#allocation200_spill] sm:$0xff] %v4485_v4  ;;  %v1089_v30 = vmul.f32 %v4456_v22, %v4456_v22  ;;  %v1368_v20 = vadd.f32 %v1367_v23, %v1088_v39  ;;  %v1095_v46 = vmul.f32 %v4473_v7, %v4473_v7  ;;  %v1090_v10 = vmul.f32 %v4459_v25, %v4459_v25  ;;  %v3216_v39 = vld [vmem:[#allocation2 + $0x6c0] sm:$0xff]  ;;  %v3217_v7 = vld [vmem:[#allocation2 + $0x6a8] sm:$0xff] }
 0x16d   :  { %v1091_v58 = vmul.f32 %v4462_v21, %v4462_v21  ;;  %v4500_v6 = vsub.f32 %v3215_v5, %v4073_v50  ;;  %v1096_v49 = vmul.f32 %v4476_v63, %v4476_v63  ;;  %v1363_v13 = vadd.f32 %v1362_v48, %v1084_v19  ;;  %v3218_v25 = vld [vmem:[#allocation2 + $0x6c8] sm:$0xff]  ;;  %v3219_v5 = vld [vmem:[#allocation2 + $0x6d0] sm:$0xff]  ;;  %v3220_v63 = vld [vmem:[#allocation2 + $0x6d8] sm:$0xff] }
 0x16e   :  { %v1369_v57 = vadd.f32 %v1368_v20, %v1089_v30  ;;  %v1375_v43 = vadd.f32 %v1094_v14, %v1093_v12  ;;  %v4505_v23 = vsub.f32 %v3216_v39, %v4071_v55  ;;  %v4508_v1 = vsub.f32 %v3217_v7, %v4073_v50  ;;  %v3221_v14 = vld [vmem:[#allocation2 + $0x6b0] sm:$0xff] }
 0x16f   :  { %6569 = vst [vmem:[#allocation201_spill] sm:$0xff] %v4500_v6  ;;  %v4511_v21 = vsub.f32 %v3218_v25, %v4071_v55  ;;  %v4514_v22 = vsub.f32 %v3219_v5, %v4071_v55  ;;  %v4517_v20 = vsub.f32 %v3220_v63, %v4071_v55  ;;  %1364 = vadd.xlane.f32.xlu0 %v1363_v13  ;;  %v3222_v25 = vld [vmem:[#allocation2 + $0x6b8] sm:$0xff] }
 0x170   :  { %6570 = vst [vmem:[#allocation202_spill] sm:$0xff] %v4505_v23  ;;  %6571 = vst [vmem:[#allocation203_spill] sm:$0xff] %v4508_v1  ;;  %v1092_v19 = vmul.f32 %v4485_v4, %v4485_v4  ;;  %v1370_v12 = vadd.f32 %v1369_v57, %v1090_v10  ;;  %v4522_v7 = vsub.f32 %v3221_v14, %v4073_v50  ;;  %v3223_v14 = vld [vmem:[#allocation2 + $0x6e0] sm:$0xff] }
 0x171   :  { %6572 = vst [vmem:[#allocation204_spill] sm:$0xff] %v4511_v21  ;;  %6573 = vst [vmem:[#allocation205_spill] sm:$0xff] %v4514_v22  ;;  %v1376_v48 = vadd.f32 %v1375_v43, %v1095_v46  ;;  %v4525_v30 = vsub.f32 %v3222_v25, %v4073_v50  ;;  %v1101_v39 = vmul.f32 %v4505_v23, %v4505_v23  ;;  %v3224_v46 = vld [vmem:[#allocation2 + $0x6e8] sm:$0xff]  ;;  %v3225_v23 = vld [vmem:[#allocation2 + $0x700] sm:$0xff] }
 0x172   :  { %6574 = vst [vmem:[#allocation206_spill] sm:$0xff] %v4517_v20  ;;  %6575 = vst [vmem:[#allocation207_spill] sm:$0xff] %v4522_v7  ;;  %v1102_v63 = vmul.f32 %v4511_v21, %v4511_v21  ;;  %v1103_v13 = vmul.f32 %v4514_v22, %v4514_v22  ;;  %v1371_v5 = vadd.f32 %v1370_v12, %v1091_v58 }
 0x173   :  { %6576 = vst [vmem:[#allocation208_spill] sm:$0xff] %v4525_v30  ;;  %v1097_v10 = vmul.f32 %v4500_v6, %v4500_v6  ;;  %v1377_v57 = vadd.f32 %v1376_v48, %v1096_v49  ;;  %v4536_v43 = vsub.f32 %v3223_v14, %v4071_v55  ;;  %v1098_v50 = vmul.f32 %v4508_v1, %v4508_v1  ;;  %v3226_v48 = vld [vmem:[#allocation2 + $0x708] sm:$0xff] }
 0x174   :  { %v4541_v25 = vsub.f32 %v3224_v46, %v4071_v55  ;;  %v1104_v21 = vmul.f32 %v4517_v20, %v4517_v20  ;;  %v1384_v22 = vadd.f32 %v1102_v63, %v1101_v39  ;;  %v1372_v58 = vadd.f32 %v1371_v5, %v1092_v19  ;;  %v3227_v46 = vld [vmem:[#allocation2 + $0x710] sm:$0xff]  ;;  %v3228_v20 = vld [vmem:[#allocation2 + $0x718] sm:$0xff] }
 0x175   :  { %6577 = vst [vmem:[#allocation209_spill] sm:$0xff] %v4536_v43  ;;  %v1378_v12 = vadd.f32 %v1377_v57, %v1097_v10  ;;  %v4546_v49 = vsub.f32 %v3225_v23, %v4157_v61  ;;  %v4549_v14 = vsub.f32 %v3226_v48, %v4157_v61  ;;  %v1099_v1 = vmul.f32 %v4522_v7, %v4522_v7  ;;  %v3229_v63 = vld [vmem:[#allocation2 + $0x6f0] sm:$0xff]  ;;  %v3230_v48 = vld [vmem:[#allocation2 + $0x6f8] sm:$0xff] }
 0x176   :  { %6578 = vst [vmem:[#allocation210_spill] sm:$0xff] %v4541_v25  ;;  %v1385_v6 = vadd.f32 %v1384_v22, %v1103_v13  ;;  %v4554_v4 = vsub.f32 %v3227_v46, %v4157_v61  ;;  %v4557_v19 = vsub.f32 %v3228_v20, %v4157_v61  ;;  %1373 = vadd.xlane.f32.xlu1 %v1372_v58  ;;  %v3231_v46 = vld [vmem:[#allocation2 + $0x720] sm:$0xff] }
 0x177   :  { %6579 = vst [vmem:[#allocation211_spill] sm:$0xff] %v4546_v49  ;;  %6580 = vst [vmem:[#allocation212_spill] sm:$0xff] %v4549_v14  ;;  %v1100_v23 = vmul.f32 %v4525_v30, %v4525_v30  ;;  %v1379_v39 = vadd.f32 %v1378_v12, %v1098_v50  ;;  %v4562_v5 = vsub.f32 %v3229_v63, %v4071_v55  ;;  %v3232_v63 = vld [vmem:[#allocation2 + $0x728] sm:$0xff] }
 0x178   :  { %6581 = vst [vmem:[#allocation213_spill] sm:$0xff] %v4554_v4  ;;  %6582 = vst [vmem:[#allocation214_spill] sm:$0xff] %v4557_v19  ;;  %v1105_v22 = vmul.f32 %v4536_v43, %v4536_v43  ;;  %v1386_v13 = vadd.f32 %v1385_v6, %v1104_v21  ;;  %v1109_v10 = vmul.f32 %v4546_v49, %v4546_v49 }
 0x179   :  { %6583 = vst [vmem:[#allocation215_spill] sm:$0xff] %v4562_v5  ;;  %v1110_v20 = vmul.f32 %v4549_v14, %v4549_v14  ;;  %v1111_v57 = vmul.f32 %v4554_v4, %v4554_v4  ;;  %v1380_v58 = vadd.f32 %v1379_v39, %v1099_v1  ;;  %v4573_v50 = vsub.f32 %v3230_v48, %v4071_v55  ;;  %v3233_v14 = vld [vmem:[#allocation2 + $0x740] sm:$0xff]  ;;  %v3234_v48 = vld [vmem:[#allocation2 + $0x748] sm:$0xff] }
 0x17a   :  { %v1106_v12 = vmul.f32 %v4541_v25, %v4541_v25  ;;  %v4578_v21 = vsub.f32 %v3231_v46, %v4157_v61  ;;  %v1387_v6 = vadd.f32 %v1386_v13, %v1105_v22  ;;  %v4581_v49 = vsub.f32 %v3232_v63, %v4157_v61  ;;  %v3235_v46 = vld [vmem:[#allocation2 + $0x750] sm:$0xff] }
 0x17b   :  { %6584 = vst [vmem:[#allocation216_spill] sm:$0xff] %v4573_v50  ;;  %v1112_v4 = vmul.f32 %v4557_v19, %v4557_v19  ;;  %v1393_v1 = vadd.f32 %v1110_v20, %v1109_v10  ;;  %v1381_v39 = vadd.f32 %v1380_v58, %v1100_v23  ;;  %v4586_v55 = vsub.f32 %v3233_v14, %v4155_v18  ;;  %v3236_v19 = vld [vmem:[#allocation2 + $0x758] sm:$0xff]  ;;  %v3237_v10 = vld [vmem:[#allocation2 + $0x730] sm:$0xff] }
 0x17c   :  { %6585 = vst [vmem:[#allocation217_spill] sm:$0xff] %v4578_v21  ;;  %6586 = vst [vmem:[#allocation218_spill] sm:$0xff] %v4581_v49  ;;  %v4589_v25 = vsub.f32 %v3234_v48, %v4155_v18  ;;  %v4592_v22 = vsub.f32 %v3235_v46, %v4155_v18  ;;  %v1107_v13 = vmul.f32 %v4562_v5, %v4562_v5 }
 0x17d   :  { %6587 = vst [vmem:[#allocation219_spill] sm:$0xff] %v4586_v55  ;;  %v1388_v63 = vadd.f32 %v1387_v6, %v1106_v12  ;;  %v1394_v43 = vadd.f32 %v1393_v1, %v1111_v57  ;;  %v4597_v23 = vsub.f32 %v3236_v19, %v4155_v18  ;;  %1382 = vadd.xlane.f32.xlu0 %v1381_v39  ;;  %v595_v1 = vpop.xlane.xlu1 %594  ;;  %v3238_v39 = vld [vmem:[#allocation2 + $0x738] sm:$0xff] }
 0x17e   :  { %6588 = vst [vmem:[#allocation220_spill] sm:$0xff] %v4589_v25  ;;  %6589 = vst [vmem:[#allocation221_spill] sm:$0xff] %v4592_v22  ;;  %v1108_v14 = vmul.f32 %v4573_v50, %v4573_v50  ;;  %v4602_v20 = vsub.f32 %v3237_v10, %v4157_v61  ;;  %v1113_v58 = vmul.f32 %v4578_v21, %v4578_v21  ;;  %v3239_v21 = vld [vmem:[#allocation2 + $0x760] sm:$0xff] }
 0x17f   :  { %6590 = vst [vmem:[#allocation222_spill] sm:$0xff] %v4597_v23  ;;  %v1117_v48 = vmul.f32 %v4586_v55, %v4586_v55  ;;  %v1389_v12 = vadd.f32 %v1388_v63, %v1107_v13  ;;  %v1395_v57 = vadd.f32 %v1394_v43, %v1112_v4  ;;  %v1118_v19 = vmul.f32 %v4589_v25, %v4589_v25  ;;  %v3240_v13 = vld [vmem:[#allocation2 + $0x768] sm:$0xff]  ;;  %v3241_v55 = vld [vmem:[#allocation2 + $0x780] sm:$0xff] }
 0x180   :  { %6591 = vst [vmem:[#allocation223_spill] sm:$0xff] %v4602_v20  ;;  %v1119_v6 = vmul.f32 %v4592_v22, %v4592_v22  ;;  %v4613_v46 = vsub.f32 %v3238_v39, %v4157_v61  ;;  %v1114_v10 = vmul.f32 %v4581_v49, %v4581_v49  ;;  %v4618_v50 = vsub.f32 %v3239_v21, %v4155_v18  ;;  %v3242_v39 = vld [vmem:[#allocation2 + $0x788] sm:$0xff]  ;;  %v3243_v21 = vld [vmem:[#allocation2 + $0x790] sm:$0xff] }
 0x181   :  { %v4621_v4 = vsub.f32 %v3240_v13, %v4155_v18  ;;  %v1390_v43 = vadd.f32 %v1389_v12, %v1108_v14  ;;  %v1396_v63 = vadd.f32 %v1395_v57, %v1113_v58  ;;  %v1120_v22 = vmul.f32 %v4597_v23, %v4597_v23  ;;  %v3244_v13 = vld [vmem:[#allocation2 + $0x798] sm:$0xff] }
 0x182   :  { %6592 = vst [vmem:[#allocation224_spill] sm:$0xff] %v4613_v46  ;;  %6593 = vst [vmem:[#allocation225_spill] sm:$0xff] %v4618_v50  ;;  %v1402_v25 = vadd.f32 %v1118_v19, %v1117_v48  ;;  %v4626_v61 = vsub.f32 %v3241_v55, %v4478_v31  ;;  %v4629_v49 = vsub.f32 %v3242_v39, %v4478_v31  ;;  %v4637_v58 = vmul.f32 0.0009765625, %v595_v1  ;;  %v3245_v19 = vld [vmem:[#allocation2 + $0x770] sm:$0xff] }
 0x183   :  { %6594 = vst [vmem:[#allocation226_spill] sm:$0xff] %v4621_v4  ;;  %v4632_v5 = vsub.f32 %v3243_v21, %v4478_v31  ;;  %v4635_v14 = vsub.f32 %v3244_v13, %v4478_v31  ;;  %1391 = vadd.xlane.f32.xlu1 %v1390_v43  ;;  %v1115_v48 = vmul.f32 %v4602_v20, %v4602_v20 }
 0x184   :  { %6595 = vst [vmem:[#allocation227_spill] sm:$0xff] %v4626_v61  ;;  %6596 = vst [vmem:[#allocation228_spill] sm:$0xff] %v4629_v49  ;;  %v1397_v55 = vadd.f32 %v1396_v63, %v1114_v10  ;;  %v1403_v12 = vadd.f32 %v1402_v25, %v1119_v6  ;;  %v1116_v57 = vmul.f32 %v4613_v46, %v4613_v46  ;;  %v3246_v6 = vld [vmem:[#allocation2 + $0x778] sm:$0xff] }
 0x185   :  { %6597 = vst [vmem:[#allocation229_spill] sm:$0xff] %v4632_v5  ;;  %6598 = vst [vmem:[#allocation230_spill] sm:$0xff] %v4635_v14  ;;  %v4644_v39 = vsub.f32 %v3245_v19, %v4155_v18  ;;  %v1125_v21 = vmul.f32 %v4626_v61, %v4626_v61  ;;  %v1126_v1 = vmul.f32 %v4629_v49, %v4629_v49  ;;  %v3247_v19 = vld [vmem:[#allocation2 + $0x7a0] sm:$0xff] }
 0x186   :  { %v1398_v13 = vadd.f32 %v1397_v55, %v1115_v48  ;;  %v1121_v43 = vmul.f32 %v4618_v50, %v4618_v50  ;;  %v1404_v23 = vadd.f32 %v1403_v12, %v1120_v22  ;;  %v1127_v25 = vmul.f32 %v4632_v5, %v4632_v5  ;;  %v3248_v12 = vld [vmem:[#allocation2 + $0x7c0] sm:$0xff]  ;;  %v1149_v50 = vpop.xlane.xlu0 %1148 }
 0x187   :  { %6599 = vst [vmem:[#allocation231_spill] sm:$0xff] %v4644_v39  ;;  %v4655_v10 = vsub.f32 %v3246_v6, %v4155_v18  ;;  %v1122_v63 = vmul.f32 %v4621_v4, %v4621_v4  ;;  %v4660_v61 = vsub.f32 %v3247_v19, %v4478_v31  ;;  %v1128_v48 = vmul.f32 %v4635_v14, %v4635_v14  ;;  %v3249_v18 = vld [vmem:[#allocation2 + $0x7c8] sm:$0xff]  ;;  %v3250_v4 = vld [vmem:[#allocation2 + $0x7d0] sm:$0xff]  ;;  %v3251_v19 = vld [vmem:[#allocation2 + $0x7d8] sm:$0xff] }
 0x188   :  { %v1399_v55 = vadd.f32 %v1398_v13, %v1116_v57  ;;  %v1405_v49 = vadd.f32 %v1404_v23, %v1121_v43  ;;  %v1411_v22 = vadd.f32 %v1126_v1, %v1125_v21  ;;  %v4665_v5 = vsub.f32 %v3248_v12, %v4637_v58  ;;  %v1158_v57 = vpop.xlane.xlu1 %1157  ;;  %v3252_v1 = vld [vmem:[#allocation2 + $0x7a8] sm:$0xff]  ;;  %v3253_v14 = vld [vmem:[#allocation2 + $0x7b0] sm:$0xff] }
 0x189   :  { %6600 = vst [vmem:[#allocation232_spill] sm:$0xff] %v4655_v10  ;;  %6601 = vst [vmem:[#allocation233_spill] sm:$0xff] %v4660_v61  ;;  %v4668_v6 = vsub.f32 %v3249_v18, %v4637_v58  ;;  %v4671_v46 = vsub.f32 %v3250_v4, %v4637_v58  ;;  %v4674_v20 = vsub.f32 %v3251_v19, %v4637_v58 }
 0x18a   :  { %6602 = vst [vmem:[#allocation234_spill] sm:$0xff] %v4665_v5  ;;  %1400 = vadd.xlane.f32.xlu0 %v1399_v55  ;;  %v1123_v23 = vmul.f32 %v4644_v39, %v4644_v39  ;;  %v1406_v21 = vadd.f32 %v1405_v49, %v1122_v63  ;;  %v4679_v13 = vsub.f32 %v3252_v1, %v4478_v31  ;;  %v4704_v39 = vmul.f32 0.0009775171, %v1149_v50 }
 0x18b   :  { %6603 = vst [vmem:[#allocation235_spill] sm:$0xff] %v4668_v6  ;;  %6604 = vst [vmem:[#allocation236_spill] sm:$0xff] %v4671_v46  ;;  %v1412_v43 = vadd.f32 %v1411_v22, %v1127_v25  ;;  %v1124_v12 = vmul.f32 %v4655_v10, %v4655_v10  ;;  %v1133_v4 = vmul.f32 %v4665_v5, %v4665_v5  ;;  %v3254_v22 = vld [vmem:[#allocation2 + $0x7b8] sm:$0xff]  ;;  %v3255_v5 = vld [vmem:[#allocation2 + $0x7e0] sm:$0xff] }
 0x18c   :  { %6605 = vst [vmem:[#allocation237_spill] sm:$0xff] %v4674_v20  ;;  %6606 = vst [vmem:[#allocation238_spill] sm:$0xff] %v4679_v13  ;;  %v1134_v18 = vmul.f32 %v4668_v6, %v4668_v6  ;;  %v1135_v55 = vmul.f32 %v4671_v46, %v4671_v46  ;;  %v1407_v19 = vadd.f32 %v1406_v21, %v1123_v23  ;;  %2882 = vrsqrt.f32 %v4704_v39 }
 0x18d   :  { %v4690_v49 = vsub.f32 %v3253_v14, %v4478_v31  ;;  %v1129_v25 = vmul.f32 %v4660_v61, %v4660_v61  ;;  %v1413_v63 = vadd.f32 %v1412_v43, %v1128_v48  ;;  %v4695_v1 = vsub.f32 %v3254_v22, %v4478_v31  ;;  %v1167_v48 = vpop.xlane.xlu0 %1166  ;;  %v3256_v43 = vld [vmem:[#allocation2 + $0x7e8] sm:$0xff] }
 0x18e   :  { %v4698_v10 = vsub.f32 %v3255_v5, %v4637_v58  ;;  %v1136_v46 = vmul.f32 %v4674_v20, %v4674_v20  ;;  %v1420_v23 = vadd.f32 %v1134_v18, %v1133_v4  ;;  %v1408_v21 = vadd.f32 %v1407_v19, %v1124_v12  ;;  %v1176_v5 = vpop.xlane.xlu1 %1175  ;;  %v3257_v18 = vld [vmem:[#allocation2 + $0x7f0] sm:$0xff] }
 0x18f   :  { %6607 = vst [vmem:[#allocation239_spill] sm:$0xff] %v4690_v49  ;;  %6608 = vst [vmem:[#allocation240_spill] sm:$0xff] %v4695_v1  ;;  %v1130_v14 = vmul.f32 %v4679_v13, %v4679_v13  ;;  %v1414_v6 = vadd.f32 %v1413_v63, %v1129_v25  ;;  %v4707_v31 = vsub.f32 %v3256_v43, %v4637_v58  ;;  %v4709_v61 = vmul.f32 0.0009775171, %v1158_v57 }
 0x190   :  { %6609 = vst [vmem:[#allocation241_spill] sm:$0xff] %v4698_v10  ;;  %v1421_v22 = vadd.f32 %v1420_v23, %v1135_v55  ;;  %1409 = vadd.xlane.f32.xlu1 %v1408_v21  ;;  %v1131_v4 = vmul.f32 %v4690_v49, %v4690_v49  ;;  %v4714_v19 = vsub.f32 %v3257_v18, %v4637_v58  ;;  %v2008_v63 = vlaneseq  ;;  %v3258_v23 = vld [vmem:[#allocation2 + $0x7f8] sm:$0xff] }
 0x191   :  { %6610 = vst [vmem:[#allocation242_spill] sm:$0xff] %v4707_v31  ;;  %v1415_v12 = vadd.f32 %v1414_v6, %v1130_v14  ;;  %v1137_v50 = vmul.f32 %v4698_v10, %v4698_v10  ;;  %2884 = vrsqrt.f32 %v4709_v61  ;;  %v1132_v57 = vmul.f32 %v4695_v1, %v4695_v1  ;;  %v1185_v18 = vpop.xlane.xlu0 %1184 }
 0x192   :  { %6611 = vst [vmem:[#allocation243_spill] sm:$0xff] %v4714_v19  ;;  %v1422_v25 = vadd.f32 %v1421_v22, %v1136_v46  ;;  %v4723_v6 = vsub.f32 %v3258_v23, %v4637_v58  ;;  %v1138_v21 = vmul.f32 %v4707_v31, %v4707_v31  ;;  %v1139_v46 = vmul.f32 %v4714_v19, %v4714_v19  ;;  %v1194_v20 = vpop.xlane.xlu1 %1193 }
 0x193   :  { %v1416_v55 = vadd.f32 %v1415_v12, %v1131_v4  ;;  %v4729_v10 = vshrl.u32 %v2008_v63, 7  ;;  %v4731_v1 = vmul.f32 0.0009775171, %v1167_v48  ;;  %v4735_v12 = vmul.f32 0.0009775171, %v1176_v5 }
 0x194   :  { %6612 = vst [vmem:[#allocation244_spill] sm:$0xff] %v4723_v6  ;;  %v1423_v14 = vadd.f32 %v1422_v25, %v1137_v50  ;;  %v1140_v58 = vmul.f32 %v4723_v6, %v4723_v6  ;;  %vm1464_vm0 = vcmp.eq.f32.partialorder %v4704_v39, inf  ;;  %vm1466_vm1 = vcmp.eq.f32.partialorder %v4704_v39, 0.0 }
 0x195   :  { %v1417_v43 = vadd.f32 %v1416_v55, %v1132_v57  ;;  %v2010_v50 = vsub.s32 0, %v4729_v10  ;;  %v2014_v25 = vsub.s32 1, %v4729_v10  ;;  %v2018_v57 = vsub.s32 2, %v4729_v10  ;;  %v2006_v55 = vld [vmem:[#allocation5] sm:$0xff]  ;;  %v1203_v48 = vpop.xlane.xlu0 %1202 }
 0x196   :  { %v1424_v22 = vadd.f32 %v1423_v14, %v1138_v21  ;;  %v2022_v63 = vsub.s32 3, %v4729_v10  ;;  %2886 = vrsqrt.f32 %v4731_v1  ;;  %v2026_v21 = vsub.s32 4, %v4729_v10  ;;  %v1212_v5 = vpop.xlane.xlu1 %1211 }
 0x197   :  { %1418 = vadd.xlane.f32.xlu0 %v1417_v43  ;;  %2888 = vrsqrt.f32 %v4735_v12  ;;  %v2030_v14 = vsub.s32 5, %v4729_v10  ;;  %v1467_v43 = vand.u32 2147483648, %v4704_v39  ;;  %v4756_v6 = vrot.slane %v2006_v55, %v2018_v57 }
 0x198   :  { %v1425_v4 = vadd.f32 %v1424_v22, %v1139_v46  ;;  %v4748_v46 = vmul.f32 0.0009775171, %v1185_v18  ;;  %v4750_v22 = vmul.f32 0.0009775171, %v1194_v20  ;;  %v4758_v19 = vmul.f32 0.0009775171, %v1203_v48 }
 0x199   :  { %v4760_v49 = vrot.slane %v2006_v55, %v2022_v63  ;;  %v4764_v18 = vmul.f32 0.0009775171, %v1212_v5  ;;  %v4766_v20 = vrot.slane %v2006_v55, %v2026_v21  ;;  %v2034_v30 = vsub.s32 6, %v4729_v10 }
 0x19a   :  { %v1426_v23 = vadd.f32 %v1425_v4, %v1140_v58  ;;  %v2883_v58 = vpop.eup %2882  ;;  %v4752_v4 = vrot.slane %v2006_v55, %v2010_v50  ;;  %2890 = vrsqrt.f32 %v4748_v46  ;;  %vm1471_vm2 = vcmp.eq.f32.partialorder %v4709_v61, inf }
 0x19b   :  { %v1463_v13 = vmul.f32 %v2883_v58, %v4704_v39  ;;  %2892 = vrsqrt.f32 %v4750_v22  ;;  %v1474_v58 = vand.u32 2147483648, %v4709_v61  ;;  %v2038_v5 = vsub.s32 7, %v4729_v10 }
 0x19c   :  { %1427 = vadd.xlane.f32.xlu1 %v1426_v23  ;;  %v4754_v23 = vrot.slane %v2006_v55, %v2014_v25  ;;  %2894 = vrsqrt.f32 %v4758_v19  ;;  %vm1473_vm3 = vcmp.eq.f32.partialorder %v4709_v61, 0.0  ;;  %v4782_v8 = vrot.slane %v2006_v55, %v2030_v14 }
 0x19d   :  { %v1465_v48 = vsel %vm1464_vm0, %v4704_v39, %v1463_v13  ;;  %2896 = vrsqrt.f32 %v4764_v18  ;;  %v4785_v13 = vrot.slane %v2304_v47, %v2010_v50  ;;  %v4787_v11 = vrot.slane %v2304_v47, %v2014_v25  ;;  %v1221_v39 = vpop.xlane.xlu0 %1220 }
 0x19e   :  { %v2885_v31 = vpop.eup %2884  ;;  %v1468_v27 = vsel %vm1466_vm1, %v1467_v43, %v1465_v48  ;;  %v4789_v17 = vrot.slane %v2304_v47, %v2018_v57  ;;  %v4791_v10 = vrot.slane %v2304_v47, %v2022_v63  ;;  %v4793_v43 = vrot.slane %v2006_v55, %v2034_v30  ;;  %v1230_v57 = vpop.xlane.xlu1 %1229 }
 0x19f   :  { %v1470_v7 = vmul.f32 %v2885_v31, %v4709_v61  ;;  %v1686_v3 = vadd.f32 1e-05, %v1468_v27  ;;  %v4797_v48 = vrot.slane %v2006_v55, %v2038_v5  ;;  %v4799_v27 = vrot.slane %v2304_v47, %v2030_v14 }
 0x1a0   :  { %v4803_v50 = vrot.slane %v2304_v47, %v2038_v5  ;;  %vm1478_vm4 = vcmp.eq.f32.partialorder %v4731_v1, inf  ;;  %vm1480_vm5 = vcmp.eq.f32.partialorder %v4731_v1, 0.0  ;;  %v1481_v25 = vand.u32 2147483648, %v4731_v1 }
 0x1a1   :  { %v1472_v31 = vsel %vm1471_vm2, %v4709_v61, %v1470_v7  ;;  %v4795_v7 = vrot.slane %v2304_v47, %v2026_v21  ;;  %2898 = vrcp.f32 %v1686_v3  ;;  %vm1485_vm6 = vcmp.eq.f32.partialorder %v4735_v12, inf  ;;  %v1239_v5 = vpop.xlane.xlu0 %1238 }
 0x1a2   :  { %v1475_v34 = vsel %vm1473_vm3, %v1474_v58, %v1472_v31  ;;  %v4801_v58 = vrot.slane %v2304_v47, %v2034_v30  ;;  %vm1487_vm7 = vcmp.eq.f32.partialorder %v4735_v12, 0.0  ;;  %vm1492_vm8 = vcmp.eq.f32.partialorder %v4748_v46, inf }
 0x1a3   :  { %v1687_v61 = vadd.f32 1e-05, %v1475_v34  ;;  %v2887_v63 = vpop.eup %2886  ;;  %v1488_v34 = vand.u32 2147483648, %v4735_v12  ;;  %vm1494_vm9 = vcmp.eq.f32.partialorder %v4748_v46, 0.0  ;;  %v1495_v30 = vand.u32 2147483648, %v4748_v46 }
 0x1a4   :  { %v2889_v3 = vpop.eup %2888  ;;  %v1477_v47 = vmul.f32 %v2887_v63, %v4731_v1  ;;  %v4815_v55 = vmul.f32 0.0009775171, %v1221_v39  ;;  %vm1499_vm10 = vcmp.eq.f32.partialorder %v4750_v22, inf  ;;  %vm1501_vm11 = vcmp.eq.f32.partialorder %v4750_v22, 0.0 }
 0x1a5   :  { %2900 = vrcp.f32 %v1687_v61  ;;  %v1484_v21 = vmul.f32 %v2889_v3, %v4735_v12  ;;  %v4820_v14 = vmul.f32 0.0009775171, %v1230_v57  ;;  %v1502_v61 = vand.u32 2147483648, %v4750_v22 }
 0x1a6   :  { %v1479_v31 = vsel %vm1478_vm4, %v4731_v1, %v1477_v47  ;;  %vm1506_vm12 = vcmp.eq.f32.partialorder %v4758_v19, inf  ;;  %vm1508_vm13 = vcmp.eq.f32.partialorder %v4758_v19, 0.0  ;;  %v1509_v3 = vand.u32 2147483648, %v4758_v19 }
 0x1a7   :  { %v2891_v39 = vpop.eup %2890  ;;  %v1482_v63 = vsel %vm1480_vm5, %v1481_v25, %v1479_v31  ;;  %v1486_v57 = vsel %vm1485_vm6, %v4735_v12, %v1484_v21  ;;  %v4834_v0 = vmul.f32 0.0009775171, %v1239_v5  ;;  %2902 = vrsqrt.f32 %v4815_v55 }
 0x1a8   :  { %v2893_v33 = vpop.eup %2892  ;;  %v1688_v47 = vadd.f32 1e-05, %v1482_v63  ;;  %v1489_v59 = vsel %vm1487_vm7, %v1488_v34, %v1486_v57  ;;  %v1491_v56 = vmul.f32 %v2891_v39, %v4748_v46  ;;  %v1516_v31 = vand.u32 2147483648, %v4764_v18 }
 0x1a9   :  { %v2895_v62 = vpop.eup %2894  ;;  %v1689_v1 = vadd.f32 1e-05, %v1489_v59  ;;  %v1498_v25 = vmul.f32 %v2893_v33, %v4750_v22  ;;  %2904 = vrsqrt.f32 %v4820_v14  ;;  %v1523_v34 = vand.u32 2147483648, %v4815_v55 }
 0x1aa   :  { %2906 = vrcp.f32 %v1688_v47  ;;  %v1493_v21 = vsel %vm1492_vm8, %v4748_v46, %v1491_v56  ;;  %v1505_v12 = vmul.f32 %v2895_v62, %v4758_v19  ;;  %v2897_v5 = vpop.eup %2896  ;;  %v1530_v33 = vand.u32 2147483648, %v4820_v14  ;;  %v1248_v46 = vpop.xlane.xlu1 %1247 }
 0x1ab   :  { %v1496_v39 = vsel %vm1494_vm9, %v1495_v30, %v1493_v21  ;;  %v1500_v59 = vsel %vm1499_vm10, %v4750_v22, %v1498_v25  ;;  %2908 = vrsqrt.f32 %v4834_v0  ;;  %v4869_v25 = vmul.f32 %v2897_v5, %v4764_v18 }
 0x1ac   :  { %2910 = vrcp.f32 %v1689_v1  ;;  %v4855_v63 = vadd.f32 1e-05, %v1496_v39  ;;  %v1503_v62 = vsel %vm1501_vm11, %v1502_v61, %v1500_v59  ;;  %v1507_v56 = vsel %vm1506_vm12, %v4758_v19, %v1505_v12 }
 0x1ad   :  { %v4862_v57 = vadd.f32 1e-05, %v1503_v62  ;;  %v4866_v47 = vsel %vm1508_vm13, %v1509_v3, %v1507_v56  ;;  %v4871_v1 = vmul.f32 0.0009775171, %v1248_v46  ;;  %vm1513_vm14 = vcmp.eq.f32.partialorder %v4764_v18, inf }
 0x1ae   :  { %v2899_v30 = vpop.eup %2898  ;;  %vm1515_vm15 = vcmp.eq.f32.partialorder %v4764_v18, 0.0  ;;  %vm1520_vm0 = vcmp.eq.f32.partialorder %v4815_v55, inf  ;;  %vm1522_vm1 = vcmp.eq.f32.partialorder %v4815_v55, 0.0  ;;  %vm1527_vm2 = vcmp.eq.f32.partialorder %v4820_v14, inf }
 0x1af   :  { %v1719_v22 = vmul.f32 %v2899_v30, %v3408_v29  ;;  %v1720_v61 = vmul.f32 %v2899_v30, %v3410_v32  ;;  %v1721_v21 = vmul.f32 %v2899_v30, %v3412_v35  ;;  %v1722_v12 = vmul.f32 %v2899_v30, %v3417_v38 }
 0x1b0   :  { %v1723_v39 = vmul.f32 %v2899_v30, %v3434_v51  ;;  %v1724_v59 = vmul.f32 %v2899_v30, %v3437_v15  ;;  %v1725_v19 = vmul.f32 %v2899_v30, %v3440_v52  ;;  %v1726_v3 = vmul.f32 %v2899_v30, %v3443_v53 }
 0x1b1   :  { %v2048_v5 = vmul.f32 %v4752_v4, %v1719_v22  ;;  %v2049_v62 = vmul.f32 %v4754_v23, %v1720_v61  ;;  %v2050_v29 = vmul.f32 %v4756_v6, %v1721_v21  ;;  %v2051_v32 = vmul.f32 %v4760_v49, %v1722_v12 }
 0x1b2   :  { %v2901_v56 = vpop.eup %2900  ;;  %v2052_v35 = vmul.f32 %v4766_v20, %v1723_v39  ;;  %v2053_v38 = vmul.f32 %v4782_v8, %v1724_v59  ;;  %v2054_v51 = vmul.f32 %v4793_v43, %v1725_v19  ;;  %v2055_v15 = vmul.f32 %v4797_v48, %v1726_v3 }
 0x1b3   :  { %v2346_v52 = vadd.f32 %v4785_v13, %v2048_v5  ;;  %v2347_v53 = vadd.f32 %v4787_v11, %v2049_v62  ;;  %v2348_v46 = vadd.f32 %v4789_v17, %v2050_v29  ;;  %v2349_v30 = vadd.f32 %v4791_v10, %v2051_v32 }
 0x1b4   :  { %v2350_v22 = vadd.f32 %v4795_v7, %v2052_v35  ;;  %v2351_v61 = vadd.f32 %v4799_v27, %v2053_v38  ;;  %v2352_v21 = vadd.f32 %v4801_v58, %v2054_v51  ;;  %v2353_v12 = vadd.f32 %v4803_v50, %v2055_v15  ;;  %v4901_v5 = vpop.eup %2902 }
 0x1b5   :  { %2602 = vst [vmem:[#allocation8] sm:$0xff] %v2346_v52  ;;  %2603 = vst [vmem:[#allocation8 + $0x8] sm:$0xff] %v2347_v53  ;;  %v1728_v39 = vmul.f32 %v2901_v56, %v3459_v2  ;;  %v1729_v59 = vmul.f32 %v2901_v56, %v3467_v9  ;;  %v1730_v19 = vmul.f32 %v2901_v56, %v3471_v16  ;;  %vm1534_vm3 = vcmp.eq.f32.partialorder %v4834_v0, inf }
 0x1b6   :  { %2604 = vst [vmem:[#allocation8 + $0x10] sm:$0xff] %v2348_v46  ;;  %2605 = vst [vmem:[#allocation8 + $0x18] sm:$0xff] %v2349_v30  ;;  %v1731_v3 = vmul.f32 %v2901_v56, %v3483_v28  ;;  %v1732_v62 = vmul.f32 %v2901_v56, %v3487_v36  ;;  %v1733_v29 = vmul.f32 %v2901_v56, %v3489_v41  ;;  %v4907_v35 = vpop.eup %2904  ;;  %vm1529_vm4 = vcmp.eq.f32.partialorder %v4820_v14, 0.0 }
 0x1b7   :  { %2606 = vst [vmem:[#allocation8 + $0x20] sm:$0xff] %v2350_v22  ;;  %2607 = vst [vmem:[#allocation8 + $0x28] sm:$0xff] %v2351_v61  ;;  %v1734_v32 = vmul.f32 %v2901_v56, %v3492_v45  ;;  %v1735_v2 = vmul.f32 %v2901_v56, %v3497_v54  ;;  %v2056_v9 = vmul.f32 %v4752_v4, %v1728_v39  ;;  %v2907_v51 = vpop.eup %2906  ;;  %2912 = vrcp.f32 %v4855_v63 }
 0x1b8   :  { %2608 = vst [vmem:[#allocation8 + $0x30] sm:$0xff] %v2352_v21  ;;  %2609 = vst [vmem:[#allocation8 + $0x38] sm:$0xff] %v2353_v12  ;;  %v2057_v16 = vmul.f32 %v4754_v23, %v1729_v59  ;;  %v2058_v28 = vmul.f32 %v4756_v6, %v1730_v19  ;;  %v2059_v38 = vmul.f32 %v4760_v49, %v1731_v3  ;;  %v4917_v54 = vpop.eup %2908  ;;  %vm1536_vm5 = vcmp.eq.f32.partialorder %v4834_v0, 0.0 }
 0x1b9   :  { %v2060_v15 = vmul.f32 %v4766_v20, %v1732_v62  ;;  %v2061_v36 = vmul.f32 %v4782_v8, %v1733_v29  ;;  %v2062_v41 = vmul.f32 %v4793_v43, %v1734_v32  ;;  %v2063_v45 = vmul.f32 %v4797_v48, %v1735_v2  ;;  %v2911_v30 = vpop.eup %2910  ;;  %v6613_v2 = vld [vmem:[#allocation12_spill] sm:$0xff] }
 0x1ba   :  { %v2354_v56 = vadd.f32 %v4785_v13, %v2056_v9  ;;  %v2355_v52 = vadd.f32 %v4787_v11, %v2057_v16  ;;  %v2356_v53 = vadd.f32 %v4789_v17, %v2058_v28  ;;  %v2357_v46 = vadd.f32 %v4791_v10, %v2059_v38 }
 0x1bb   :  { %v2358_v22 = vadd.f32 %v4795_v7, %v2060_v15  ;;  %v2359_v61 = vadd.f32 %v4799_v27, %v2061_v36  ;;  %v2360_v21 = vadd.f32 %v4801_v58, %v2062_v41  ;;  %v2361_v12 = vadd.f32 %v4803_v50, %v2063_v45 }
 0x1bc   :  { %2610 = vst [vmem:[#allocation8 + $0x40] sm:$0xff] %v2354_v56  ;;  %2611 = vst [vmem:[#allocation8 + $0x48] sm:$0xff] %v2355_v52  ;;  %v1737_v39 = vmul.f32 %v2907_v51, %v3404_v24  ;;  %v1738_v59 = vmul.f32 %v2907_v51, %v3406_v26  ;;  %v1739_v19 = vmul.f32 %v2907_v51, %v3414_v37  ;;  %v6614_v52 = vld [vmem:[#allocation13_spill] sm:$0xff]  ;;  %2914 = vrcp.f32 %v4862_v57 }
 0x1bd   :  { %2612 = vst [vmem:[#allocation8 + $0x50] sm:$0xff] %v2356_v53  ;;  %2613 = vst [vmem:[#allocation8 + $0x58] sm:$0xff] %v2357_v46  ;;  %v1740_v3 = vmul.f32 %v2907_v51, %v3419_v40  ;;  %v1741_v62 = vmul.f32 %v2907_v51, %v3421_v42  ;;  %v1742_v29 = vmul.f32 %v2907_v51, %v3424_v44  ;;  %v6615_v46 = vld [vmem:[#allocation14_spill] sm:$0xff]  ;;  %vm1541_vm6 = vcmp.eq.f32.partialorder %v4871_v1, inf }
 0x1be   :  { %2614 = vst [vmem:[#allocation8 + $0x60] sm:$0xff] %v2358_v22  ;;  %2615 = vst [vmem:[#allocation8 + $0x68] sm:$0xff] %v2359_v61  ;;  %v1743_v32 = vmul.f32 %v2907_v51, %v3453_v60  ;;  %v1744_v9 = vmul.f32 %v2907_v51, %v6613_v2  ;;  %v2064_v24 = vmul.f32 %v4752_v4, %v1737_v39  ;;  %v6616_v61 = vld [vmem:[#allocation15_spill] sm:$0xff]  ;;  %vm1543_vm10 = vcmp.eq.f32.partialorder %v4871_v1, 0.0 }
 0x1bf   :  { %2616 = vst [vmem:[#allocation8 + $0x70] sm:$0xff] %v2360_v21  ;;  %2617 = vst [vmem:[#allocation8 + $0x78] sm:$0xff] %v2361_v12  ;;  %v2065_v26 = vmul.f32 %v4754_v23, %v1738_v59  ;;  %v2066_v37 = vmul.f32 %v4756_v6, %v1739_v19  ;;  %v2067_v40 = vmul.f32 %v4760_v49, %v1740_v3  ;;  %v6617_v12 = vld [vmem:[#allocation16_spill] sm:$0xff]  ;;  %v1257_v59 = vpop.xlane.xlu0 %1256  ;;  %v6618_v19 = vld [vmem:[#allocation17_spill] sm:$0xff] }
 0x1c0   :  { %v2068_v16 = vmul.f32 %v4766_v20, %v1741_v62  ;;  %v2069_v28 = vmul.f32 %v4782_v8, %v1742_v29  ;;  %v2070_v42 = vmul.f32 %v4793_v43, %v1743_v32  ;;  %v2071_v44 = vmul.f32 %v4797_v48, %v1744_v9  ;;  %v6619_v62 = vld [vmem:[#allocation18_spill] sm:$0xff]  ;;  %v6621_v9 = vld [vmem:[#allocation24_spill] sm:$0xff] }
 0x1c1   :  { %v2362_v60 = vadd.f32 %v4785_v13, %v2064_v24  ;;  %v2363_v38 = vadd.f32 %v4787_v11, %v2065_v26  ;;  %v2364_v51 = vadd.f32 %v4789_v17, %v2066_v37  ;;  %v2365_v15 = vadd.f32 %v4791_v10, %v2067_v40  ;;  %v6620_v32 = vld [vmem:[#allocation22_spill] sm:$0xff] }
 0x1c2   :  { %v2366_v36 = vadd.f32 %v4795_v7, %v2068_v16  ;;  %v2367_v41 = vadd.f32 %v4799_v27, %v2069_v28  ;;  %v2368_v45 = vadd.f32 %v4801_v58, %v2070_v42  ;;  %v2369_v56 = vadd.f32 %v4803_v50, %v2071_v44 }
 0x1c3   :  { %2618 = vst [vmem:[#allocation8 + $0x80] sm:$0xff] %v2362_v60  ;;  %2619 = vst [vmem:[#allocation8 + $0x88] sm:$0xff] %v2363_v38  ;;  %v1746_v53 = vmul.f32 %v2911_v30, %v6614_v52  ;;  %v1747_v22 = vmul.f32 %v2911_v30, %v6615_v46  ;;  %v1748_v21 = vmul.f32 %v2911_v30, %v6616_v61  ;;  %v1275_v61 = vpop.xlane.xlu0 %1274 }
 0x1c4   :  { %2620 = vst [vmem:[#allocation8 + $0x90] sm:$0xff] %v2364_v51  ;;  %2621 = vst [vmem:[#allocation8 + $0x98] sm:$0xff] %v2365_v15  ;;  %v1749_v39 = vmul.f32 %v2911_v30, %v6617_v12  ;;  %v1750_v3 = vmul.f32 %v2911_v30, %v6618_v19  ;;  %v1751_v29 = vmul.f32 %v2911_v30, %v6619_v62  ;;  %v1537_v12 = vand.u32 2147483648, %v4834_v0 }
 0x1c5   :  { %2622 = vst [vmem:[#allocation8 + $0xa0] sm:$0xff] %v2366_v36  ;;  %2623 = vst [vmem:[#allocation8 + $0xa8] sm:$0xff] %v2367_v41  ;;  %v1752_v2 = vmul.f32 %v2911_v30, %v6620_v32  ;;  %v1753_v24 = vmul.f32 %v2911_v30, %v6621_v9  ;;  %v2072_v26 = vmul.f32 %v4752_v4, %v1746_v53  ;;  %v1266_v36 = vpop.xlane.xlu1 %1265  ;;  %v1692_v53 = vadd.f32 1e-05, %v4866_v47 }
 0x1c6   :  { %2624 = vst [vmem:[#allocation8 + $0xb0] sm:$0xff] %v2368_v45  ;;  %2625 = vst [vmem:[#allocation8 + $0xb8] sm:$0xff] %v2369_v56  ;;  %v2073_v37 = vmul.f32 %v4754_v23, %v1747_v22  ;;  %v2074_v40 = vmul.f32 %v4756_v6, %v1748_v21  ;;  %v2075_v16 = vmul.f32 %v4760_v49, %v1749_v39  ;;  %v5021_v62 = vmul.f32 0.0009775171, %v1266_v36  ;;  %v6626_v36 = vld [vmem:[#allocation25_spill] sm:$0xff] }
 0x1c7   :  { %v2076_v28 = vmul.f32 %v4766_v20, %v1750_v3  ;;  %v2077_v42 = vmul.f32 %v4782_v8, %v1751_v29  ;;  %v2078_v44 = vmul.f32 %v4793_v43, %v1752_v2  ;;  %v2079_v60 = vmul.f32 %v4797_v48, %v1753_v24  ;;  %v1293_v29 = vpop.xlane.xlu0 %1292  ;;  %v2913_v24 = vpop.eup %2912 }
 0x1c8   :  { %v2370_v30 = vadd.f32 %v4785_v13, %v2072_v26  ;;  %v2371_v38 = vadd.f32 %v4787_v11, %v2073_v37  ;;  %v2372_v51 = vadd.f32 %v4789_v17, %v2074_v40  ;;  %v2373_v15 = vadd.f32 %v4791_v10, %v2075_v16  ;;  %v6622_v16 = vld [vmem:[#allocation19_spill] sm:$0xff] }
 0x1c9   :  { %v2374_v41 = vadd.f32 %v4795_v7, %v2076_v28  ;;  %v2375_v45 = vadd.f32 %v4799_v27, %v2077_v42  ;;  %v2376_v56 = vadd.f32 %v4801_v58, %v2078_v44  ;;  %v2377_v52 = vadd.f32 %v4803_v50, %v2079_v60  ;;  %v1284_v19 = vpop.xlane.xlu1 %1283  ;;  %v6623_v42 = vld [vmem:[#allocation20_spill] sm:$0xff]  ;;  %v6624_v60 = vld [vmem:[#allocation21_spill] sm:$0xff] }
 0x1ca   :  { %2626 = vst [vmem:[#allocation8 + $0xc0] sm:$0xff] %v2370_v30  ;;  %2627 = vst [vmem:[#allocation8 + $0xc8] sm:$0xff] %v2371_v38  ;;  %v1514_v46 = vsel %vm1513_vm14, %v4764_v18, %v4869_v25  ;;  %v1519_v22 = vmul.f32 %v4901_v5, %v4815_v55  ;;  %v1526_v47 = vmul.f32 %v4907_v35, %v4820_v14  ;;  %2916 = vrcp.f32 %v1692_v53  ;;  %v6625_v38 = vld [vmem:[#allocation23_spill] sm:$0xff] }
 0x1cb   :  { %2628 = vst [vmem:[#allocation8 + $0xd0] sm:$0xff] %v2372_v51  ;;  %2629 = vst [vmem:[#allocation8 + $0xd8] sm:$0xff] %v2373_v15  ;;  %v1517_v63 = vsel %vm1515_vm15, %v1516_v31, %v1514_v46  ;;  %v1533_v21 = vmul.f32 %v4917_v54, %v4834_v0  ;;  %2918 = vrsqrt.f32 %v4871_v1  ;;  %v5019_v3 = vmul.f32 0.0009775171, %v1257_v59  ;;  %v2915_v15 = vpop.eup %2914  ;;  %v6629_v46 = vld [vmem:[#allocation31_spill] sm:$0xff] }
 0x1cc   :  { %2630 = vst [vmem:[#allocation8 + $0xe0] sm:$0xff] %v2374_v41  ;;  %2631 = vst [vmem:[#allocation8 + $0xe8] sm:$0xff] %v2375_v45  ;;  %v1693_v25 = vadd.f32 1e-05, %v1517_v63  ;;  %v1521_v5 = vsel %vm1520_vm0, %v4815_v55, %v1519_v22  ;;  %v1528_v31 = vsel %vm1527_vm2, %v4820_v14, %v1526_v47  ;;  %v5025_v32 = vmul.f32 0.0009775171, %v1284_v19 }
 0x1cd   :  { %2632 = vst [vmem:[#allocation8 + $0xf0] sm:$0xff] %v2376_v56  ;;  %2633 = vst [vmem:[#allocation8 + $0xf8] sm:$0xff] %v2377_v52  ;;  %v1524_v18 = vsel %vm1522_vm1, %v1523_v34, %v1521_v5  ;;  %v1535_v57 = vsel %vm1534_vm3, %v4834_v0, %v1533_v21  ;;  %v1531_v54 = vsel %vm1529_vm4, %v1530_v33, %v1528_v31  ;;  %v5023_v0 = vmul.f32 0.0009775171, %v1275_v61  ;;  %v1302_v33 = vpop.xlane.xlu1 %1301  ;;  %v6627_v45 = vld [vmem:[#allocation26_spill] sm:$0xff]  ;;  %v6628_v52 = vld [vmem:[#allocation27_spill] sm:$0xff] }
 0x1ce   :  { %v1694_v35 = vadd.f32 1e-05, %v1524_v18  ;;  %v1538_v39 = vsel %vm1536_vm5, %v1537_v12, %v1535_v57  ;;  %2920 = vrcp.f32 %v1693_v25  ;;  %v1695_v55 = vadd.f32 1e-05, %v1531_v54 }
 0x1cf   :  { %v1696_v34 = vadd.f32 1e-05, %v1538_v39  ;;  %v5028_v14 = vmul.f32 0.0009775171, %v1293_v29  ;;  %v1544_v59 = vand.u32 2147483648, %v4871_v1  ;;  %v1551_v2 = vand.u32 2147483648, %v5019_v3 }
 0x1d0   :  { %2922 = vrcp.f32 %v1694_v35  ;;  %v1558_v9 = vand.u32 2147483648, %v5021_v62  ;;  %v1565_v26 = vand.u32 2147483648, %v5023_v0  ;;  %v1572_v37 = vand.u32 2147483648, %v5025_v32 }
 0x1d1   :  { %2924 = vrcp.f32 %v1695_v55  ;;  %v5039_v40 = vmul.f32 0.0009775171, %v1302_v33  ;;  %v1755_v28 = vmul.f32 %v2913_v24, %v6622_v16  ;;  %v1756_v44 = vmul.f32 %v2913_v24, %v6623_v42  ;;  %v6630_v42 = vld [vmem:[#allocation28_spill] sm:$0xff] }
 0x1d2   :  { %2926 = vrcp.f32 %v1696_v34  ;;  %v1757_v30 = vmul.f32 %v2913_v24, %v6624_v60  ;;  %v1758_v51 = vmul.f32 %v2913_v24, %v6625_v38  ;;  %v1759_v41 = vmul.f32 %v2913_v24, %v6626_v36  ;;  %v6631_v60 = vld [vmem:[#allocation29_spill] sm:$0xff]  ;;  %v6632_v38 = vld [vmem:[#allocation30_spill] sm:$0xff]  ;;  %v6633_v36 = vld [vmem:[#allocation32_spill] sm:$0xff] }
 0x1d3   :  { %2928 = vrsqrt.f32 %v5019_v3  ;;  %v1760_v56 = vmul.f32 %v2913_v24, %v6627_v45  ;;  %v1761_v53 = vmul.f32 %v2913_v24, %v6628_v52  ;;  %v1762_v22 = vmul.f32 %v2913_v24, %v6629_v46 }
 0x1d4   :  { %2930 = vrsqrt.f32 %v5021_v62  ;;  %v2080_v63 = vmul.f32 %v4752_v4, %v1755_v28  ;;  %v2081_v47 = vmul.f32 %v4754_v23, %v1756_v44  ;;  %v2082_v21 = vmul.f32 %v4756_v6, %v1757_v30 }
 0x1d5   :  { %2932 = vrsqrt.f32 %v5023_v0  ;;  %v2083_v25 = vmul.f32 %v4760_v49, %v1758_v51  ;;  %v2084_v12 = vmul.f32 %v4766_v20, %v1759_v41  ;;  %v2085_v18 = vmul.f32 %v4782_v8, %v1760_v56  ;;  %v6634_v56 = vld [vmem:[#allocation33_spill] sm:$0xff] }
 0x1d6   :  { %2934 = vrsqrt.f32 %v5025_v32  ;;  %v2086_v31 = vmul.f32 %v4793_v43, %v1761_v53  ;;  %v2087_v57 = vmul.f32 %v4797_v48, %v1762_v22  ;;  %v2378_v54 = vadd.f32 %v4785_v13, %v2080_v63  ;;  %v6635_v53 = vld [vmem:[#allocation34_spill] sm:$0xff]  ;;  %v6636_v22 = vld [vmem:[#allocation36_spill] sm:$0xff] }
 0x1d7   :  { %2936 = vrsqrt.f32 %v5028_v14  ;;  %v5049_v61 = vpop.eup %2916  ;;  %v2379_v39 = vadd.f32 %v4787_v11, %v2081_v47  ;;  %v2380_v19 = vadd.f32 %v4789_v17, %v2082_v21  ;;  %v2381_v55 = vadd.f32 %v4791_v10, %v2083_v25  ;;  %v6637_v47 = vld [vmem:[#allocation37_spill] sm:$0xff] }
 0x1d8   :  { %v5055_v5 = vpop.eup %2918  ;;  %v2382_v29 = vadd.f32 %v4795_v7, %v2084_v12  ;;  %v2383_v33 = vadd.f32 %v4799_v27, %v2085_v18  ;;  %v2384_v24 = vadd.f32 %v4801_v58, %v2086_v31  ;;  %v2385_v16 = vadd.f32 %v4803_v50, %v2087_v57  ;;  %2634 = vst [vmem:[#allocation8 + $0x100] sm:$0xff] %v2378_v54 }
 0x1d9   :  { %2635 = vst [vmem:[#allocation8 + $0x108] sm:$0xff] %v2379_v39  ;;  %2636 = vst [vmem:[#allocation8 + $0x110] sm:$0xff] %v2380_v19  ;;  %v1764_v44 = vmul.f32 %v2915_v15, %v6630_v42  ;;  %v1765_v30 = vmul.f32 %v2915_v15, %v6631_v60  ;;  %v1766_v51 = vmul.f32 %v2915_v15, %v6632_v38  ;;  %vm1548_vm7 = vcmp.eq.f32.partialorder %v5019_v3, inf }
 0x1da   :  { %2637 = vst [vmem:[#allocation8 + $0x118] sm:$0xff] %v2381_v55  ;;  %v1767_v41 = vmul.f32 %v2915_v15, %v6633_v36  ;;  %2638 = vst [vmem:[#allocation8 + $0x120] sm:$0xff] %v2382_v29  ;;  %v1768_v52 = vmul.f32 %v2915_v15, %v6634_v56  ;;  %v1769_v46 = vmul.f32 %v2915_v15, %v6635_v53  ;;  %vm1555_vm8 = vcmp.eq.f32.partialorder %v5021_v62, inf }
 0x1db   :  { %v5061_v35 = vpop.eup %2920  ;;  %2639 = vst [vmem:[#allocation8 + $0x128] sm:$0xff] %v2383_v33  ;;  %2640 = vst [vmem:[#allocation8 + $0x130] sm:$0xff] %v2384_v24  ;;  %v1770_v63 = vmul.f32 %v2915_v15, %v6636_v22  ;;  %v1771_v21 = vmul.f32 %v2915_v15, %v6637_v47  ;;  %v2088_v12 = vmul.f32 %v4752_v4, %v1764_v44  ;;  %vm1562_vm9 = vcmp.eq.f32.partialorder %v5023_v0, inf }
 0x1dc   :  { %2641 = vst [vmem:[#allocation8 + $0x138] sm:$0xff] %v2385_v16  ;;  %v2089_v18 = vmul.f32 %v4754_v23, %v1765_v30  ;;  %v2090_v31 = vmul.f32 %v4756_v6, %v1766_v51  ;;  %v2091_v57 = vmul.f32 %v4760_v49, %v1767_v41  ;;  %v2092_v39 = vmul.f32 %v4766_v20, %v1768_v52  ;;  %v6638_v41 = vld [vmem:[#allocation35_spill] sm:$0xff]  ;;  %v6639_v52 = vld [vmem:[#allocation38_spill] sm:$0xff] }
 0x1dd   :  { %v5067_v34 = vpop.eup %2922  ;;  %v2093_v19 = vmul.f32 %v4782_v8, %v1769_v46  ;;  %v2094_v55 = vmul.f32 %v4793_v43, %v1770_v63  ;;  %v2095_v15 = vmul.f32 %v4797_v48, %v1771_v21  ;;  %v2386_v33 = vadd.f32 %v4785_v13, %v2088_v12  ;;  %v6640_v46 = vld [vmem:[#allocation39_spill] sm:$0xff]  ;;  %v6641_v63 = vld [vmem:[#allocation40_spill] sm:$0xff]  ;;  %v6642_v21 = vld [vmem:[#allocation41_spill] sm:$0xff] }
 0x1de   :  { %v5073_v28 = vpop.eup %2924  ;;  %v2387_v24 = vadd.f32 %v4787_v11, %v2089_v18  ;;  %v2388_v16 = vadd.f32 %v4789_v17, %v2090_v31  ;;  %v2389_v42 = vadd.f32 %v4791_v10, %v2091_v57  ;;  %v2390_v60 = vadd.f32 %v4795_v7, %v2092_v39  ;;  %v6643_v18 = vld [vmem:[#allocation42_spill] sm:$0xff]  ;;  %v6644_v57 = vld [vmem:[#allocation43_spill] sm:$0xff] }
 0x1df   :  { %v5079_v45 = vpop.eup %2926  ;;  %v2391_v30 = vadd.f32 %v4799_v27, %v2093_v19  ;;  %v2392_v38 = vadd.f32 %v4801_v58, %v2094_v55  ;;  %v2393_v51 = vadd.f32 %v4803_v50, %v2095_v15  ;;  %2642 = vst [vmem:[#allocation8 + $0x140] sm:$0xff] %v2386_v33  ;;  %v1773_v56 = vmul.f32 %v5049_v61, %v6638_v41  ;;  %v6645_v19 = vld [vmem:[#allocation48_spill] sm:$0xff] }
 0x1e0   :  { %v5085_v25 = vpop.eup %2928  ;;  %2643 = vst [vmem:[#allocation8 + $0x148] sm:$0xff] %v2387_v24  ;;  %2644 = vst [vmem:[#allocation8 + $0x150] sm:$0xff] %v2388_v16  ;;  %v1774_v53 = vmul.f32 %v5049_v61, %v6639_v52  ;;  %v1775_v22 = vmul.f32 %v5049_v61, %v6640_v46  ;;  %v1776_v47 = vmul.f32 %v5049_v61, %v6641_v63  ;;  %v6646_v63 = vld [vmem:[#allocation44_spill] sm:$0xff]  ;;  %vm1550_vm11 = vcmp.eq.f32.partialorder %v5019_v3, 0.0 }
 0x1e1   :  { %v5091_v54 = vpop.eup %2930  ;;  %2645 = vst [vmem:[#allocation8 + $0x158] sm:$0xff] %v2389_v42  ;;  %2646 = vst [vmem:[#allocation8 + $0x160] sm:$0xff] %v2390_v60  ;;  %v1777_v12 = vmul.f32 %v5049_v61, %v6642_v21  ;;  %v1778_v31 = vmul.f32 %v5049_v61, %v6643_v18  ;;  %v1779_v39 = vmul.f32 %v5049_v61, %v6644_v57  ;;  %v6647_v21 = vld [vmem:[#allocation45_spill] sm:$0xff]  ;;  %v6648_v18 = vld [vmem:[#allocation46_spill] sm:$0xff]  ;;  %vm1557_vm12 = vcmp.eq.f32.partialorder %v5021_v62, 0.0 }
 0x1e2   :  { %v5097_v29 = vpop.eup %2932  ;;  %2647 = vst [vmem:[#allocation8 + $0x168] sm:$0xff] %v2391_v30  ;;  %2648 = vst [vmem:[#allocation8 + $0x170] sm:$0xff] %v2392_v38  ;;  %v1780_v55 = vmul.f32 %v5049_v61, %v6645_v19  ;;  %v2096_v15 = vmul.f32 %v4752_v4, %v1773_v56  ;;  %v2097_v33 = vmul.f32 %v4754_v23, %v1774_v53  ;;  %v6649_v57 = vld [vmem:[#allocation47_spill] sm:$0xff]  ;;  %v6650_v19 = vld [vmem:[#allocation49_spill] sm:$0xff]  ;;  %vm1564_vm13 = vcmp.eq.f32.partialorder %v5023_v0, 0.0 }
 0x1e3   :  { %v5103_v44 = vpop.eup %2934  ;;  %2649 = vst [vmem:[#allocation8 + $0x178] sm:$0xff] %v2393_v51  ;;  %v2098_v24 = vmul.f32 %v4756_v6, %v1775_v22  ;;  %v2099_v16 = vmul.f32 %v4760_v49, %v1776_v47  ;;  %v2100_v42 = vmul.f32 %v4766_v20, %v1777_v12  ;;  %v2101_v60 = vmul.f32 %v4782_v8, %v1778_v31 }
 0x1e4   :  { %v5109_v36 = vpop.eup %2936  ;;  %v2102_v30 = vmul.f32 %v4793_v43, %v1779_v39  ;;  %v2103_v38 = vmul.f32 %v4797_v48, %v1780_v55  ;;  %v2394_v51 = vadd.f32 %v4785_v13, %v2096_v15  ;;  %v2395_v61 = vadd.f32 %v4787_v11, %v2097_v33  ;;  %v6651_v15 = vld [vmem:[#allocation50_spill] sm:$0xff] }
 0x1e5   :  { %v2396_v41 = vadd.f32 %v4789_v17, %v2098_v24  ;;  %v2397_v56 = vadd.f32 %v4791_v10, %v2099_v16  ;;  %v2398_v52 = vadd.f32 %v4795_v7, %v2100_v42  ;;  %v2399_v53 = vadd.f32 %v4799_v27, %v2101_v60  ;;  %v6652_v24 = vld [vmem:[#allocation51_spill] sm:$0xff]  ;;  %v6653_v42 = vld [vmem:[#allocation56_spill] sm:$0xff] }
 0x1e6   :  { %v2400_v46 = vadd.f32 %v4801_v58, %v2102_v30  ;;  %v2401_v22 = vadd.f32 %v4803_v50, %v2103_v38  ;;  %2650 = vst [vmem:[#allocation8 + $0x180] sm:$0xff] %v2394_v51  ;;  %2651 = vst [vmem:[#allocation8 + $0x188] sm:$0xff] %v2395_v61  ;;  %v1782_v47 = vmul.f32 %v5061_v35, %v6646_v63  ;;  %vm1569_vm14 = vcmp.eq.f32.partialorder %v5025_v32, inf }
 0x1e7   :  { %2652 = vst [vmem:[#allocation8 + $0x190] sm:$0xff] %v2396_v41  ;;  %2653 = vst [vmem:[#allocation8 + $0x198] sm:$0xff] %v2397_v56  ;;  %v1783_v12 = vmul.f32 %v5061_v35, %v6647_v21  ;;  %v1784_v31 = vmul.f32 %v5061_v35, %v6648_v18  ;;  %v1785_v39 = vmul.f32 %v5061_v35, %v6649_v57  ;;  %vm1571_vm15 = vcmp.eq.f32.partialorder %v5025_v32, 0.0 }
 0x1e8   :  { %2654 = vst [vmem:[#allocation8 + $0x1a0] sm:$0xff] %v2398_v52  ;;  %2655 = vst [vmem:[#allocation8 + $0x1a8] sm:$0xff] %v2399_v53  ;;  %v1786_v55 = vmul.f32 %v5061_v35, %v6650_v19  ;;  %v1787_v33 = vmul.f32 %v5061_v35, %v6651_v15  ;;  %v1788_v16 = vmul.f32 %v5061_v35, %v6652_v24  ;;  %vm1576_vm0 = vcmp.eq.f32.partialorder %v5028_v14, inf }
 0x1e9   :  { %2656 = vst [vmem:[#allocation8 + $0x1b0] sm:$0xff] %v2400_v46  ;;  %2657 = vst [vmem:[#allocation8 + $0x1b8] sm:$0xff] %v2401_v22  ;;  %v1789_v60 = vmul.f32 %v5061_v35, %v6653_v42  ;;  %v2104_v30 = vmul.f32 %v4752_v4, %v1782_v47  ;;  %v2105_v38 = vmul.f32 %v4754_v23, %v1783_v12  ;;  %2938 = vrsqrt.f32 %v5039_v40 }
 0x1ea   :  { %v2106_v51 = vmul.f32 %v4756_v6, %v1784_v31  ;;  %v2107_v61 = vmul.f32 %v4760_v49, %v1785_v39  ;;  %v2108_v41 = vmul.f32 %v4766_v20, %v1786_v55  ;;  %v2109_v56 = vmul.f32 %v4782_v8, %v1787_v33  ;;  %v6654_v31 = vld [vmem:[#allocation52_spill] sm:$0xff]  ;;  %v6655_v39 = vld [vmem:[#allocation53_spill] sm:$0xff]  ;;  %v6656_v55 = vld [vmem:[#allocation54_spill] sm:$0xff] }
 0x1eb   :  { %v2110_v52 = vmul.f32 %v4793_v43, %v1788_v16  ;;  %v2111_v53 = vmul.f32 %v4797_v48, %v1789_v60  ;;  %v2402_v46 = vadd.f32 %v4785_v13, %v2104_v30  ;;  %v2403_v35 = vadd.f32 %v4787_v11, %v2105_v38  ;;  %v6657_v33 = vld [vmem:[#allocation55_spill] sm:$0xff]  ;;  %v6658_v16 = vld [vmem:[#allocation57_spill] sm:$0xff]  ;;  %v6659_v60 = vld [vmem:[#allocation58_spill] sm:$0xff] }
 0x1ec   :  { %v2404_v22 = vadd.f32 %v4789_v17, %v2106_v51  ;;  %v2405_v63 = vadd.f32 %v4791_v10, %v2107_v61  ;;  %v2406_v47 = vadd.f32 %v4795_v7, %v2108_v41  ;;  %v2407_v21 = vadd.f32 %v4799_v27, %v2109_v56  ;;  %v6660_v38 = vld [vmem:[#allocation59_spill] sm:$0xff]  ;;  %v6661_v61 = vld [vmem:[#allocation64_spill] sm:$0xff] }
 0x1ed   :  { %v2408_v12 = vadd.f32 %v4801_v58, %v2110_v52  ;;  %v2409_v18 = vadd.f32 %v4803_v50, %v2111_v53  ;;  %2658 = vst [vmem:[#allocation8 + $0x1c0] sm:$0xff] %v2402_v46  ;;  %2659 = vst [vmem:[#allocation8 + $0x1c8] sm:$0xff] %v2403_v35  ;;  %v1791_v57 = vmul.f32 %v5067_v34, %v6654_v31  ;;  %vm1578_vm1 = vcmp.eq.f32.partialorder %v5028_v14, 0.0 }
 0x1ee   :  { %2660 = vst [vmem:[#allocation8 + $0x1d0] sm:$0xff] %v2404_v22  ;;  %2661 = vst [vmem:[#allocation8 + $0x1d8] sm:$0xff] %v2405_v63  ;;  %v1792_v19 = vmul.f32 %v5067_v34, %v6655_v39  ;;  %v1793_v15 = vmul.f32 %v5067_v34, %v6656_v55  ;;  %v1794_v24 = vmul.f32 %v5067_v34, %v6657_v33  ;;  %v6662_v55 = vld [vmem:[#allocation60_spill] sm:$0xff]  ;;  %v6663_v33 = vld [vmem:[#allocation61_spill] sm:$0xff]  ;;  %vm1583_vm2 = vcmp.eq.f32.partialorder %v5039_v40, inf }
 0x1ef   :  { %2662 = vst [vmem:[#allocation8 + $0x1e0] sm:$0xff] %v2406_v47  ;;  %2663 = vst [vmem:[#allocation8 + $0x1e8] sm:$0xff] %v2407_v21  ;;  %v1795_v42 = vmul.f32 %v5067_v34, %v6658_v16  ;;  %v1796_v30 = vmul.f32 %v5067_v34, %v6659_v60  ;;  %v1797_v51 = vmul.f32 %v5067_v34, %v6660_v38  ;;  %v6664_v16 = vld [vmem:[#allocation62_spill] sm:$0xff]  ;;  %v6665_v60 = vld [vmem:[#allocation63_spill] sm:$0xff]  ;;  %vm1585_vm3 = vcmp.eq.f32.partialorder %v5039_v40, 0.0 }
 0x1f0   :  { %2664 = vst [vmem:[#allocation8 + $0x1f0] sm:$0xff] %v2408_v12  ;;  %2665 = vst [vmem:[#allocation8 + $0x1f8] sm:$0xff] %v2409_v18  ;;  %v1798_v41 = vmul.f32 %v5067_v34, %v6661_v61  ;;  %v2112_v56 = vmul.f32 %v4752_v4, %v1791_v57  ;;  %v2113_v52 = vmul.f32 %v4754_v23, %v1792_v19  ;;  %v6666_v38 = vld [vmem:[#allocation65_spill] sm:$0xff]  ;;  %v6667_v61 = vld [vmem:[#allocation66_spill] sm:$0xff] }
 0x1f1   :  { %v2114_v53 = vmul.f32 %v4756_v6, %v1793_v15  ;;  %v2115_v46 = vmul.f32 %v4760_v49, %v1794_v24  ;;  %v2116_v35 = vmul.f32 %v4766_v20, %v1795_v42  ;;  %v2117_v22 = vmul.f32 %v4782_v8, %v1796_v30 }
 0x1f2   :  { %v2118_v63 = vmul.f32 %v4793_v43, %v1797_v51  ;;  %v2119_v47 = vmul.f32 %v4797_v48, %v1798_v41  ;;  %v2410_v21 = vadd.f32 %v4785_v13, %v2112_v56  ;;  %v2411_v34 = vadd.f32 %v4787_v11, %v2113_v52  ;;  %v6668_v56 = vld [vmem:[#allocation71_spill] sm:$0xff] }
 0x1f3   :  { %v2412_v12 = vadd.f32 %v4789_v17, %v2114_v53  ;;  %v2413_v18 = vadd.f32 %v4791_v10, %v2115_v46  ;;  %v2414_v31 = vadd.f32 %v4795_v7, %v2116_v35  ;;  %v2415_v57 = vadd.f32 %v4799_v27, %v2117_v22  ;;  %v6669_v53 = vld [vmem:[#allocation72_spill] sm:$0xff] }
 0x1f4   :  { %v2416_v39 = vadd.f32 %v4801_v58, %v2118_v63  ;;  %v2417_v19 = vadd.f32 %v4803_v50, %v2119_v47  ;;  %2666 = vst [vmem:[#allocation8 + $0x200] sm:$0xff] %v2410_v21  ;;  %2667 = vst [vmem:[#allocation8 + $0x208] sm:$0xff] %v2411_v34  ;;  %v1800_v15 = vmul.f32 %v5073_v28, %v6662_v55 }
 0x1f5   :  { %2668 = vst [vmem:[#allocation8 + $0x210] sm:$0xff] %v2412_v12  ;;  %2669 = vst [vmem:[#allocation8 + $0x218] sm:$0xff] %v2413_v18  ;;  %v1801_v24 = vmul.f32 %v5073_v28, %v6663_v33  ;;  %v1802_v42 = vmul.f32 %v5073_v28, %v6664_v16  ;;  %v1803_v30 = vmul.f32 %v5073_v28, %v6665_v60  ;;  %v6670_v16 = vld [vmem:[#allocation67_spill] sm:$0xff]  ;;  %v6671_v60 = vld [vmem:[#allocation68_spill] sm:$0xff] }
 0x1f6   :  { %2670 = vst [vmem:[#allocation8 + $0x220] sm:$0xff] %v2414_v31  ;;  %2671 = vst [vmem:[#allocation8 + $0x228] sm:$0xff] %v2415_v57  ;;  %v1804_v51 = vmul.f32 %v5073_v28, %v6666_v38  ;;  %v1805_v41 = vmul.f32 %v5073_v28, %v6667_v61  ;;  %v1806_v52 = vmul.f32 %v5073_v28, %v6668_v56  ;;  %v6672_v38 = vld [vmem:[#allocation69_spill] sm:$0xff]  ;;  %v6673_v61 = vld [vmem:[#allocation70_spill] sm:$0xff]  ;;  %v5257_v56 = vpop.xlane.xlu1 %1319 }
 0x1f7   :  { %2672 = vst [vmem:[#allocation8 + $0x230] sm:$0xff] %v2416_v39  ;;  %2673 = vst [vmem:[#allocation8 + $0x238] sm:$0xff] %v2417_v19  ;;  %v1807_v46 = vmul.f32 %v5073_v28, %v6669_v53  ;;  %v2120_v35 = vmul.f32 %v4752_v4, %v1800_v15  ;;  %v2121_v22 = vmul.f32 %v4754_v23, %v1801_v24  ;;  %v5243_v24 = vpop.xlane.xlu0 %1310 }
 0x1f8   :  { %v2122_v63 = vmul.f32 %v4756_v6, %v1802_v42  ;;  %v2123_v47 = vmul.f32 %v4760_v49, %v1803_v30  ;;  %v2124_v21 = vmul.f32 %v4766_v20, %v1804_v51  ;;  %v2125_v34 = vmul.f32 %v4782_v8, %v1805_v41 }
 0x1f9   :  { %v2126_v12 = vmul.f32 %v4793_v43, %v1806_v52  ;;  %v2127_v18 = vmul.f32 %v4797_v48, %v1807_v46  ;;  %v2418_v31 = vadd.f32 %v4785_v13, %v2120_v35  ;;  %v2419_v28 = vadd.f32 %v4787_v11, %v2121_v22  ;;  %v6674_v52 = vld [vmem:[#allocation73_spill] sm:$0xff]  ;;  %v6675_v46 = vld [vmem:[#allocation74_spill] sm:$0xff]  ;;  %v6676_v22 = vld [vmem:[#allocation75_spill] sm:$0xff] }
 0x1fa   :  { %v2420_v57 = vadd.f32 %v4789_v17, %v2122_v63  ;;  %v2421_v39 = vadd.f32 %v4791_v10, %v2123_v47  ;;  %v2422_v19 = vadd.f32 %v4795_v7, %v2124_v21  ;;  %v2423_v55 = vadd.f32 %v4799_v27, %v2125_v34  ;;  %v6677_v47 = vld [vmem:[#allocation80_spill] sm:$0xff] }
 0x1fb   :  { %v2424_v15 = vadd.f32 %v4801_v58, %v2126_v12  ;;  %v2425_v33 = vadd.f32 %v4803_v50, %v2127_v18  ;;  %2674 = vst [vmem:[#allocation8 + $0x240] sm:$0xff] %v2418_v31  ;;  %2675 = vst [vmem:[#allocation8 + $0x248] sm:$0xff] %v2419_v28  ;;  %v1809_v42 = vmul.f32 %v5079_v45, %v6670_v16 }
 0x1fc   :  { %2676 = vst [vmem:[#allocation8 + $0x250] sm:$0xff] %v2420_v57  ;;  %2677 = vst [vmem:[#allocation8 + $0x258] sm:$0xff] %v2421_v39  ;;  %v1810_v30 = vmul.f32 %v5079_v45, %v6671_v60  ;;  %v1811_v51 = vmul.f32 %v5079_v45, %v6672_v38  ;;  %v1812_v41 = vmul.f32 %v5079_v45, %v6673_v61  ;;  %v1329_v38 = vpop.xlane.xlu0 %1328 }
 0x1fd   :  { %2678 = vst [vmem:[#allocation8 + $0x260] sm:$0xff] %v2422_v19  ;;  %2679 = vst [vmem:[#allocation8 + $0x268] sm:$0xff] %v2423_v55  ;;  %v1813_v53 = vmul.f32 %v5079_v45, %v6674_v52  ;;  %v1814_v35 = vmul.f32 %v5079_v45, %v6675_v46  ;;  %v1815_v63 = vmul.f32 %v5079_v45, %v6676_v22 }
 0x1fe   :  { %2680 = vst [vmem:[#allocation8 + $0x270] sm:$0xff] %v2424_v15  ;;  %2681 = vst [vmem:[#allocation8 + $0x278] sm:$0xff] %v2425_v33  ;;  %v1816_v21 = vmul.f32 %v5079_v45, %v6677_v47  ;;  %v2128_v34 = vmul.f32 %v4752_v4, %v1809_v42  ;;  %v2129_v12 = vmul.f32 %v4754_v23, %v1810_v30 }
 0x1ff   :  { %v2130_v18 = vmul.f32 %v4756_v6, %v1811_v51  ;;  %v2131_v31 = vmul.f32 %v4760_v49, %v1812_v41  ;;  %v2132_v28 = vmul.f32 %v4766_v20, %v1813_v53  ;;  %v2133_v57 = vmul.f32 %v4782_v8, %v1814_v35  ;;  %v1338_v53 = vpop.xlane.xlu1 %1337 }
 0x200   :  { %v2134_v45 = vmul.f32 %v4793_v43, %v1815_v63  ;;  %v2135_v39 = vmul.f32 %v4797_v48, %v1816_v21  ;;  %v2426_v19 = vadd.f32 %v4785_v13, %v2128_v34  ;;  %v2427_v55 = vadd.f32 %v4787_v11, %v2129_v12 }
 0x201   :  { %v2428_v15 = vadd.f32 %v4789_v17, %v2130_v18  ;;  %v2429_v33 = vadd.f32 %v4791_v10, %v2131_v31  ;;  %v2430_v16 = vadd.f32 %v4795_v7, %v2132_v28  ;;  %v2431_v42 = vadd.f32 %v4799_v27, %v2133_v57 }
 0x202   :  { %v2432_v60 = vadd.f32 %v4801_v58, %v2134_v45  ;;  %v2433_v30 = vadd.f32 %v4803_v50, %v2135_v39  ;;  %2682 = vst [vmem:[#allocation8 + $0x280] sm:$0xff] %v2426_v19  ;;  %2683 = vst [vmem:[#allocation8 + $0x288] sm:$0xff] %v2427_v55  ;;  %v1540_v51 = vmul.f32 %v5055_v5, %v4871_v1  ;;  %v1579_v35 = vand.u32 2147483648, %v5028_v14 }
 0x203   :  { %2684 = vst [vmem:[#allocation8 + $0x290] sm:$0xff] %v2428_v15  ;;  %2685 = vst [vmem:[#allocation8 + $0x298] sm:$0xff] %v2429_v33  ;;  %v1547_v61 = vmul.f32 %v5085_v25, %v5019_v3  ;;  %v1554_v41 = vmul.f32 %v5091_v54, %v5021_v62  ;;  %v1561_v52 = vmul.f32 %v5097_v29, %v5023_v0  ;;  %v5340_v31 = vmul.f32 0.0009775171, %v5243_v24  ;;  %v2939_v24 = vpop.eup %2938 }
 0x204   :  { %2686 = vst [vmem:[#allocation8 + $0x2a0] sm:$0xff] %v2430_v16  ;;  %2687 = vst [vmem:[#allocation8 + $0x2a8] sm:$0xff] %v2431_v42  ;;  %v1568_v46 = vmul.f32 %v5103_v44, %v5025_v32  ;;  %v1575_v5 = vmul.f32 %v5109_v36, %v5028_v14  ;;  %v1542_v25 = vsel %vm1541_vm6, %v4871_v1, %v1540_v51  ;;  %v1586_v15 = vand.u32 2147483648, %v5039_v40 }
 0x205   :  { %2688 = vst [vmem:[#allocation8 + $0x2b0] sm:$0xff] %v2432_v60  ;;  %2689 = vst [vmem:[#allocation8 + $0x2b8] sm:$0xff] %v2433_v30  ;;  %v1549_v54 = vsel %vm1548_vm7, %v5019_v3, %v1547_v61  ;;  %v1556_v29 = vsel %vm1555_vm8, %v5021_v62, %v1554_v41  ;;  %v1563_v44 = vsel %vm1562_vm9, %v5023_v0, %v1561_v52  ;;  %v1347_v0 = vpop.xlane.xlu0 %1346  ;;  %v1593_v33 = vand.u32 2147483648, %v5340_v31 }
 0x206   :  { %v1545_v36 = vsel %vm1543_vm10, %v1544_v59, %v1542_v25  ;;  %v1552_v22 = vsel %vm1550_vm11, %v1551_v2, %v1549_v54  ;;  %v1559_v63 = vsel %vm1557_vm12, %v1558_v9, %v1556_v29  ;;  %v1566_v47 = vsel %vm1564_vm13, %v1565_v26, %v1563_v44  ;;  %v1356_v26 = vpop.xlane.xlu1 %1355  ;;  %v6680_v54 = vld [vmem:[#allocation78_spill] sm:$0xff]  ;;  %v6681_v44 = vld [vmem:[#allocation79_spill] sm:$0xff] }
 0x207   :  { %v1697_v21 = vadd.f32 1e-05, %v1545_v36  ;;  %v1698_v34 = vadd.f32 1e-05, %v1552_v22  ;;  %v1699_v12 = vadd.f32 1e-05, %v1559_v63  ;;  %v1570_v1 = vsel %vm1569_vm14, %v5025_v32, %v1568_v46 }
 0x208   :  { %v1700_v59 = vadd.f32 1e-05, %v1566_v47  ;;  %v1573_v3 = vsel %vm1571_vm15, %v1572_v37, %v1570_v1  ;;  %v1577_v62 = vsel %vm1576_vm0, %v5028_v14, %v1575_v5  ;;  %v5343_v32 = vmul.f32 0.0009775171, %v5257_v56  ;;  %v6678_v46 = vld [vmem:[#allocation76_spill] sm:$0xff]  ;;  %v6682_v63 = vld [vmem:[#allocation81_spill] sm:$0xff] }
 0x209   :  { %2940 = vrcp.f32 %v1697_v21  ;;  %v1701_v2 = vadd.f32 1e-05, %v1573_v3  ;;  %v1580_v9 = vsel %vm1578_vm1, %v1579_v35, %v1577_v62  ;;  %v5345_v37 = vmul.f32 0.0009775171, %v1329_v38  ;;  %v1365_v28 = vpop.xlane.xlu0 %1364  ;;  %v6679_v35 = vld [vmem:[#allocation77_spill] sm:$0xff]  ;;  %v6683_v21 = vld [vmem:[#allocation82_spill] sm:$0xff] }
 0x20a   :  { %2942 = vrcp.f32 %v1698_v34  ;;  %v1702_v18 = vadd.f32 1e-05, %v1580_v9  ;;  %v5347_v14 = vmul.f32 0.0009775171, %v1338_v53  ;;  %v5350_v57 = vmul.f32 0.0009775171, %v1347_v0  ;;  %v1374_v45 = vpop.xlane.xlu1 %1373 }
 0x20b   :  { %2944 = vrcp.f32 %v1699_v12  ;;  %v5354_v39 = vmul.f32 0.0009775171, %v1356_v26  ;;  %v5356_v56 = vmul.f32 0.0009775171, %v1365_v28  ;;  %v1582_v19 = vmul.f32 %v2939_v24, %v5039_v40  ;;  %v6684_v12 = vld [vmem:[#allocation87_spill] sm:$0xff] }
 0x20c   :  { %2946 = vrcp.f32 %v1700_v59  ;;  %v5361_v55 = vmul.f32 0.0009775171, %v1374_v45  ;;  %v1600_v42 = vand.u32 2147483648, %v5343_v32  ;;  %v1607_v60 = vand.u32 2147483648, %v5345_v37  ;;  %v6685_v59 = vld [vmem:[#allocation88_spill] sm:$0xff] }
 0x20d   :  { %2948 = vrcp.f32 %v1701_v2  ;;  %v1584_v16 = vsel %vm1583_vm2, %v5039_v40, %v1582_v19  ;;  %v1614_v38 = vand.u32 2147483648, %v5347_v14  ;;  %v1621_v51 = vand.u32 2147483648, %v5350_v57 }
 0x20e   :  { %2950 = vrcp.f32 %v1702_v18  ;;  %v1587_v30 = vsel %vm1585_vm3, %v1586_v15, %v1584_v16  ;;  %v1628_v52 = vand.u32 2147483648, %v5354_v39  ;;  %v1635_v40 = vand.u32 2147483648, %v5356_v56 }
 0x20f   :  { %2952 = vrsqrt.f32 %v5340_v31  ;;  %v5374_v41 = vadd.f32 1e-05, %v1587_v30  ;;  %vm1590_vm4 = vcmp.eq.f32.partialorder %v5340_v31, inf  ;;  %vm1597_vm5 = vcmp.eq.f32.partialorder %v5343_v32, inf }
 0x210   :  { %2954 = vrsqrt.f32 %v5343_v32  ;;  %vm1604_vm6 = vcmp.eq.f32.partialorder %v5345_v37, inf  ;;  %vm1592_vm7 = vcmp.eq.f32.partialorder %v5340_v31, 0.0  ;;  %vm1599_vm8 = vcmp.eq.f32.partialorder %v5343_v32, 0.0 }
 0x211   :  { %2956 = vrsqrt.f32 %v5345_v37  ;;  %vm1606_vm9 = vcmp.eq.f32.partialorder %v5345_v37, 0.0  ;;  %vm1611_vm10 = vcmp.eq.f32.partialorder %v5347_v14, inf  ;;  %vm1613_vm11 = vcmp.eq.f32.partialorder %v5347_v14, 0.0 }
 0x212   :  { %2958 = vrsqrt.f32 %v5347_v14  ;;  %vm1618_vm12 = vcmp.eq.f32.partialorder %v5350_v57, inf  ;;  %vm1625_vm13 = vcmp.eq.f32.partialorder %v5354_v39, inf  ;;  %vm1632_vm14 = vcmp.eq.f32.partialorder %v5356_v56, inf }
 0x213   :  { %2960 = vrsqrt.f32 %v5350_v57  ;;  %vm1620_vm15 = vcmp.eq.f32.partialorder %v5350_v57, 0.0  ;;  %vm1627_vm0 = vcmp.eq.f32.partialorder %v5354_v39, 0.0  ;;  %vm1634_vm1 = vcmp.eq.f32.partialorder %v5356_v56, 0.0 }
 0x214   :  { %2962 = vrsqrt.f32 %v5354_v39  ;;  %vm1639_vm2 = vcmp.eq.f32.partialorder %v5361_v55, inf  ;;  %vm1641_vm3 = vcmp.eq.f32.partialorder %v5361_v55, 0.0 }
 0x215   :  { %2964 = vrsqrt.f32 %v5356_v56 }
 0x216   :  { %v2941_v61 = vpop.eup %2940  ;;  %2966 = vrsqrt.f32 %v5361_v55 }
 0x217   :  { %v2943_v53 = vpop.eup %2942  ;;  %v1818_v5 = vmul.f32 %v2941_v61, %v6678_v46  ;;  %v1819_v25 = vmul.f32 %v2941_v61, %v6679_v35  ;;  %v1820_v29 = vmul.f32 %v2941_v61, %v6680_v54  ;;  %v1821_v36 = vmul.f32 %v2941_v61, %v6681_v44 }
 0x218   :  { %v5383_v22 = vpop.eup %2944  ;;  %v1822_v47 = vmul.f32 %v2941_v61, %v6682_v63  ;;  %v1823_v34 = vmul.f32 %v2941_v61, %v6683_v21  ;;  %v1824_v1 = vmul.f32 %v2941_v61, %v6684_v12  ;;  %v1825_v3 = vmul.f32 %v2941_v61, %v6685_v59 }
 0x219   :  { %v5389_v62 = vpop.eup %2946  ;;  %v2136_v0 = vmul.f32 %v4752_v4, %v1818_v5  ;;  %v2137_v2 = vmul.f32 %v4754_v23, %v1819_v25  ;;  %v2138_v9 = vmul.f32 %v4756_v6, %v1820_v29  ;;  %v2139_v26 = vmul.f32 %v4760_v49, %v1821_v36  ;;  %v6686_v36 = vld [vmem:[#allocation83_spill] sm:$0xff] }
 0x21a   :  { %v5395_v18 = vpop.eup %2948  ;;  %v2140_v28 = vmul.f32 %v4766_v20, %v1822_v47  ;;  %v2141_v45 = vmul.f32 %v4782_v8, %v1823_v34  ;;  %v2142_v24 = vmul.f32 %v4793_v43, %v1824_v1  ;;  %v2143_v19 = vmul.f32 %v4797_v48, %v1825_v3  ;;  %v6687_v47 = vld [vmem:[#allocation84_spill] sm:$0xff]  ;;  %v6688_v34 = vld [vmem:[#allocation85_spill] sm:$0xff]  ;;  %v6689_v1 = vld [vmem:[#allocation86_spill] sm:$0xff] }
 0x21b   :  { %v5401_v15 = vpop.eup %2950  ;;  %v2434_v16 = vadd.f32 %v4785_v13, %v2136_v0  ;;  %v2435_v30 = vadd.f32 %v4787_v11, %v2137_v2  ;;  %v2436_v61 = vadd.f32 %v4789_v17, %v2138_v9  ;;  %v2437_v46 = vadd.f32 %v4791_v10, %v2139_v26  ;;  %v6690_v0 = vld [vmem:[#allocation89_spill] sm:$0xff]  ;;  %v6691_v9 = vld [vmem:[#allocation90_spill] sm:$0xff] }
 0x21c   :  { %v5407_v5 = vpop.eup %2952  ;;  %v2438_v35 = vadd.f32 %v4795_v7, %v2140_v28  ;;  %v2439_v25 = vadd.f32 %v4799_v27, %v2141_v45  ;;  %v2440_v54 = vadd.f32 %v4801_v58, %v2142_v24  ;;  %v2441_v29 = vadd.f32 %v4803_v50, %v2143_v19  ;;  %v6692_v28 = vld [vmem:[#allocation91_spill] sm:$0xff]  ;;  %v6693_v24 = vld [vmem:[#allocation96_spill] sm:$0xff] }
 0x21d   :  { %v5413_v44 = vpop.eup %2954  ;;  %2690 = vst [vmem:[#allocation8 + $0x2c0] sm:$0xff] %v2434_v16  ;;  %2691 = vst [vmem:[#allocation8 + $0x2c8] sm:$0xff] %v2435_v30  ;;  %v1827_v63 = vmul.f32 %v2943_v53, %v6686_v36  ;;  %v1828_v21 = vmul.f32 %v2943_v53, %v6687_v47  ;;  %v1829_v12 = vmul.f32 %v2943_v53, %v6688_v34  ;;  %2968 = vrcp.f32 %v5374_v41 }
 0x21e   :  { %2692 = vst [vmem:[#allocation8 + $0x2d0] sm:$0xff] %v2436_v61  ;;  %2693 = vst [vmem:[#allocation8 + $0x2d8] sm:$0xff] %v2437_v46  ;;  %v1830_v59 = vmul.f32 %v2943_v53, %v6689_v1  ;;  %v5419_v3 = vpop.eup %2956  ;;  %v1831_v2 = vmul.f32 %v2943_v53, %v6690_v0  ;;  %v1832_v26 = vmul.f32 %v2943_v53, %v6691_v9 }
 0x21f   :  { %2694 = vst [vmem:[#allocation8 + $0x2e0] sm:$0xff] %v2438_v35  ;;  %2695 = vst [vmem:[#allocation8 + $0x2e8] sm:$0xff] %v2439_v25  ;;  %v1833_v45 = vmul.f32 %v2943_v53, %v6692_v28  ;;  %v1834_v19 = vmul.f32 %v2943_v53, %v6693_v24  ;;  %v5425_v16 = vpop.eup %2958  ;;  %v2144_v30 = vmul.f32 %v4752_v4, %v1827_v63  ;;  %v6694_v28 = vld [vmem:[#allocation92_spill] sm:$0xff]  ;;  %v6695_v24 = vld [vmem:[#allocation93_spill] sm:$0xff] }
 0x220   :  { %2696 = vst [vmem:[#allocation8 + $0x2f0] sm:$0xff] %v2440_v54  ;;  %2697 = vst [vmem:[#allocation8 + $0x2f8] sm:$0xff] %v2441_v29  ;;  %v2145_v61 = vmul.f32 %v4754_v23, %v1828_v21  ;;  %v2146_v46 = vmul.f32 %v4756_v6, %v1829_v12  ;;  %v2147_v35 = vmul.f32 %v4760_v49, %v1830_v59  ;;  %v5431_v25 = vpop.eup %2960 }
 0x221   :  { %v2148_v54 = vmul.f32 %v4766_v20, %v1831_v2  ;;  %v2149_v29 = vmul.f32 %v4782_v8, %v1832_v26  ;;  %v2150_v36 = vmul.f32 %v4793_v43, %v1833_v45  ;;  %v2151_v53 = vmul.f32 %v4797_v48, %v1834_v19  ;;  %v5437_v47 = vpop.eup %2962 }
 0x222   :  { %v2442_v63 = vadd.f32 %v4785_v13, %v2144_v30  ;;  %v2443_v21 = vadd.f32 %v4787_v11, %v2145_v61  ;;  %v2444_v34 = vadd.f32 %v4789_v17, %v2146_v46  ;;  %v2445_v12 = vadd.f32 %v4791_v10, %v2147_v35  ;;  %v5443_v1 = vpop.eup %2964  ;;  %v6696_v30 = vld [vmem:[#allocation94_spill] sm:$0xff]  ;;  %v6697_v46 = vld [vmem:[#allocation95_spill] sm:$0xff] }
 0x223   :  { %v2446_v59 = vadd.f32 %v4795_v7, %v2148_v54  ;;  %v2447_v0 = vadd.f32 %v4799_v27, %v2149_v29  ;;  %v2448_v2 = vadd.f32 %v4801_v58, %v2150_v36  ;;  %v2449_v9 = vadd.f32 %v4803_v50, %v2151_v53  ;;  %v5449_v26 = vpop.eup %2966  ;;  %v6698_v54 = vld [vmem:[#allocation97_spill] sm:$0xff]  ;;  %v6699_v36 = vld [vmem:[#allocation98_spill] sm:$0xff] }
 0x224   :  { %2698 = vst [vmem:[#allocation8 + $0x300] sm:$0xff] %v2442_v63  ;;  %2699 = vst [vmem:[#allocation8 + $0x308] sm:$0xff] %v2443_v21  ;;  %v1836_v45 = vmul.f32 %v5383_v22, %v6694_v28  ;;  %v1837_v19 = vmul.f32 %v5383_v22, %v6695_v24  ;;  %v1838_v61 = vmul.f32 %v5383_v22, %v6696_v30  ;;  %v6700_v63 = vld [vmem:[#allocation103_spill] sm:$0xff] }
 0x225   :  { %2700 = vst [vmem:[#allocation8 + $0x310] sm:$0xff] %v2444_v34  ;;  %2701 = vst [vmem:[#allocation8 + $0x318] sm:$0xff] %v2445_v12  ;;  %v1839_v35 = vmul.f32 %v5383_v22, %v6697_v46  ;;  %v1840_v29 = vmul.f32 %v5383_v22, %v6698_v54  ;;  %v1841_v53 = vmul.f32 %v5383_v22, %v6699_v36  ;;  %v6701_v34 = vld [vmem:[#allocation104_spill] sm:$0xff] }
 0x226   :  { %2702 = vst [vmem:[#allocation8 + $0x320] sm:$0xff] %v2446_v59  ;;  %2703 = vst [vmem:[#allocation8 + $0x328] sm:$0xff] %v2447_v0  ;;  %v1842_v21 = vmul.f32 %v5383_v22, %v6700_v63  ;;  %v1843_v12 = vmul.f32 %v5383_v22, %v6701_v34  ;;  %v2152_v28 = vmul.f32 %v4752_v4, %v1836_v45 }
 0x227   :  { %2704 = vst [vmem:[#allocation8 + $0x330] sm:$0xff] %v2448_v2  ;;  %2705 = vst [vmem:[#allocation8 + $0x338] sm:$0xff] %v2449_v9  ;;  %v2153_v24 = vmul.f32 %v4754_v23, %v1837_v19  ;;  %v2154_v59 = vmul.f32 %v4756_v6, %v1838_v61  ;;  %v2155_v0 = vmul.f32 %v4760_v49, %v1839_v35 }
 0x228   :  { %v2156_v2 = vmul.f32 %v4766_v20, %v1840_v29  ;;  %v2157_v9 = vmul.f32 %v4782_v8, %v1841_v53  ;;  %v2158_v30 = vmul.f32 %v4793_v43, %v1842_v21  ;;  %v2159_v46 = vmul.f32 %v4797_v48, %v1843_v12  ;;  %v6702_v53 = vld [vmem:[#allocation99_spill] sm:$0xff]  ;;  %v6703_v21 = vld [vmem:[#allocation100_spill] sm:$0xff]  ;;  %v6704_v12 = vld [vmem:[#allocation101_spill] sm:$0xff] }
 0x229   :  { %v2450_v54 = vadd.f32 %v4785_v13, %v2152_v28  ;;  %v2451_v22 = vadd.f32 %v4787_v11, %v2153_v24  ;;  %v2452_v45 = vadd.f32 %v4789_v17, %v2154_v59  ;;  %v2453_v19 = vadd.f32 %v4791_v10, %v2155_v0  ;;  %v6705_v24 = vld [vmem:[#allocation102_spill] sm:$0xff]  ;;  %v6706_v0 = vld [vmem:[#allocation105_spill] sm:$0xff] }
 0x22a   :  { %v2454_v61 = vadd.f32 %v4795_v7, %v2156_v2  ;;  %v2455_v35 = vadd.f32 %v4799_v27, %v2157_v9  ;;  %v2456_v29 = vadd.f32 %v4801_v58, %v2158_v30  ;;  %v2457_v36 = vadd.f32 %v4803_v50, %v2159_v46  ;;  %v6707_v9 = vld [vmem:[#allocation106_spill] sm:$0xff]  ;;  %v6708_v46 = vld [vmem:[#allocation107_spill] sm:$0xff] }
 0x22b   :  { %2706 = vst [vmem:[#allocation8 + $0x340] sm:$0xff] %v2450_v54  ;;  %2707 = vst [vmem:[#allocation8 + $0x348] sm:$0xff] %v2451_v22  ;;  %v1845_v63 = vmul.f32 %v5389_v62, %v6702_v53  ;;  %v1846_v34 = vmul.f32 %v5389_v62, %v6703_v21  ;;  %v1847_v28 = vmul.f32 %v5389_v62, %v6704_v12  ;;  %v6709_v22 = vld [vmem:[#allocation112_spill] sm:$0xff] }
 0x22c   :  { %2708 = vst [vmem:[#allocation8 + $0x350] sm:$0xff] %v2452_v45  ;;  %2709 = vst [vmem:[#allocation8 + $0x358] sm:$0xff] %v2453_v19  ;;  %v1848_v59 = vmul.f32 %v5389_v62, %v6705_v24  ;;  %v1849_v2 = vmul.f32 %v5389_v62, %v6706_v0  ;;  %v1850_v30 = vmul.f32 %v5389_v62, %v6707_v9  ;;  %v6710_v9 = vld [vmem:[#allocation108_spill] sm:$0xff] }
 0x22d   :  { %2710 = vst [vmem:[#allocation8 + $0x360] sm:$0xff] %v2454_v61  ;;  %2711 = vst [vmem:[#allocation8 + $0x368] sm:$0xff] %v2455_v35  ;;  %v1851_v54 = vmul.f32 %v5389_v62, %v6708_v46  ;;  %v1852_v45 = vmul.f32 %v5389_v62, %v6709_v22  ;;  %v2160_v19 = vmul.f32 %v4752_v4, %v1845_v63  ;;  %v6711_v46 = vld [vmem:[#allocation109_spill] sm:$0xff]  ;;  %v6712_v22 = vld [vmem:[#allocation110_spill] sm:$0xff] }
 0x22e   :  { %2712 = vst [vmem:[#allocation8 + $0x370] sm:$0xff] %v2456_v29  ;;  %2713 = vst [vmem:[#allocation8 + $0x378] sm:$0xff] %v2457_v36  ;;  %v2161_v53 = vmul.f32 %v4754_v23, %v1846_v34  ;;  %v2162_v61 = vmul.f32 %v4756_v6, %v1847_v28  ;;  %v2163_v35 = vmul.f32 %v4760_v49, %v1848_v59 }
 0x22f   :  { %v2164_v29 = vmul.f32 %v4766_v20, %v1849_v2  ;;  %v2165_v36 = vmul.f32 %v4782_v8, %v1850_v30  ;;  %v2166_v21 = vmul.f32 %v4793_v43, %v1851_v54  ;;  %v2167_v12 = vmul.f32 %v4797_v48, %v1852_v45 }
 0x230   :  { %v2458_v24 = vadd.f32 %v4785_v13, %v2160_v19  ;;  %v2459_v62 = vadd.f32 %v4787_v11, %v2161_v53  ;;  %v2460_v63 = vadd.f32 %v4789_v17, %v2162_v61  ;;  %v2461_v34 = vadd.f32 %v4791_v10, %v2163_v35  ;;  %v6713_v19 = vld [vmem:[#allocation111_spill] sm:$0xff]  ;;  %v6714_v61 = vld [vmem:[#allocation113_spill] sm:$0xff] }
 0x231   :  { %v2462_v28 = vadd.f32 %v4795_v7, %v2164_v29  ;;  %v2463_v59 = vadd.f32 %v4799_v27, %v2165_v36  ;;  %v2464_v0 = vadd.f32 %v4801_v58, %v2166_v21  ;;  %v2465_v2 = vadd.f32 %v4803_v50, %v2167_v12  ;;  %v6715_v29 = vld [vmem:[#allocation114_spill] sm:$0xff]  ;;  %v6716_v21 = vld [vmem:[#allocation119_spill] sm:$0xff] }
 0x232   :  { %2714 = vst [vmem:[#allocation8 + $0x380] sm:$0xff] %v2458_v24  ;;  %2715 = vst [vmem:[#allocation8 + $0x388] sm:$0xff] %v2459_v62  ;;  %v1854_v30 = vmul.f32 %v5395_v18, %v6710_v9  ;;  %v1855_v54 = vmul.f32 %v5395_v18, %v6711_v46  ;;  %v1856_v45 = vmul.f32 %v5395_v18, %v6712_v22  ;;  %v6717_v24 = vld [vmem:[#allocation120_spill] sm:$0xff] }
 0x233   :  { %2716 = vst [vmem:[#allocation8 + $0x390] sm:$0xff] %v2460_v63  ;;  %2717 = vst [vmem:[#allocation8 + $0x398] sm:$0xff] %v2461_v34  ;;  %v1857_v53 = vmul.f32 %v5395_v18, %v6713_v19  ;;  %v1858_v35 = vmul.f32 %v5395_v18, %v6714_v61  ;;  %v1859_v36 = vmul.f32 %v5395_v18, %v6715_v29 }
 0x234   :  { %2718 = vst [vmem:[#allocation8 + $0x3a0] sm:$0xff] %v2462_v28  ;;  %2719 = vst [vmem:[#allocation8 + $0x3a8] sm:$0xff] %v2463_v59  ;;  %v1860_v12 = vmul.f32 %v5395_v18, %v6716_v21  ;;  %v1861_v62 = vmul.f32 %v5395_v18, %v6717_v24  ;;  %v2168_v63 = vmul.f32 %v4752_v4, %v1854_v30 }
 0x235   :  { %2720 = vst [vmem:[#allocation8 + $0x3b0] sm:$0xff] %v2464_v0  ;;  %2721 = vst [vmem:[#allocation8 + $0x3b8] sm:$0xff] %v2465_v2  ;;  %v2169_v34 = vmul.f32 %v4754_v23, %v1855_v54  ;;  %v2170_v28 = vmul.f32 %v4756_v6, %v1856_v45  ;;  %v2171_v59 = vmul.f32 %v4760_v49, %v1857_v53 }
 0x236   :  { %v2172_v0 = vmul.f32 %v4766_v20, %v1858_v35  ;;  %v2173_v2 = vmul.f32 %v4782_v8, %v1859_v36  ;;  %v2174_v9 = vmul.f32 %v4793_v43, %v1860_v12  ;;  %v2175_v46 = vmul.f32 %v4797_v48, %v1861_v62  ;;  %v6718_v35 = vld [vmem:[#allocation115_spill] sm:$0xff]  ;;  %v6719_v36 = vld [vmem:[#allocation116_spill] sm:$0xff]  ;;  %v6720_v12 = vld [vmem:[#allocation117_spill] sm:$0xff] }
 0x237   :  { %v2466_v22 = vadd.f32 %v4785_v13, %v2168_v63  ;;  %v2467_v18 = vadd.f32 %v4787_v11, %v2169_v34  ;;  %v2468_v30 = vadd.f32 %v4789_v17, %v2170_v28  ;;  %v2469_v54 = vadd.f32 %v4791_v10, %v2171_v59  ;;  %v6721_v62 = vld [vmem:[#allocation118_spill] sm:$0xff]  ;;  %v6722_v34 = vld [vmem:[#allocation121_spill] sm:$0xff] }
 0x238   :  { %v2470_v45 = vadd.f32 %v4795_v7, %v2172_v0  ;;  %v2471_v19 = vadd.f32 %v4799_v27, %v2173_v2  ;;  %v2472_v53 = vadd.f32 %v4801_v58, %v2174_v9  ;;  %v2473_v61 = vadd.f32 %v4803_v50, %v2175_v46  ;;  %v6723_v59 = vld [vmem:[#allocation122_spill] sm:$0xff]  ;;  %v6724_v2 = vld [vmem:[#allocation123_spill] sm:$0xff]  ;;  %v6725_v46 = vld [vmem:[#allocation128_spill] sm:$0xff] }
 0x239   :  { %2722 = vst [vmem:[#allocation8 + $0x3c0] sm:$0xff] %v2466_v22  ;;  %2723 = vst [vmem:[#allocation8 + $0x3c8] sm:$0xff] %v2467_v18  ;;  %v1863_v29 = vmul.f32 %v5401_v15, %v6718_v35  ;;  %v1864_v21 = vmul.f32 %v5401_v15, %v6719_v36  ;;  %v1865_v24 = vmul.f32 %v5401_v15, %v6720_v12 }
 0x23a   :  { %2724 = vst [vmem:[#allocation8 + $0x3d0] sm:$0xff] %v2468_v30  ;;  %2725 = vst [vmem:[#allocation8 + $0x3d8] sm:$0xff] %v2469_v54  ;;  %v1866_v63 = vmul.f32 %v5401_v15, %v6721_v62  ;;  %v1867_v28 = vmul.f32 %v5401_v15, %v6722_v34  ;;  %v1868_v0 = vmul.f32 %v5401_v15, %v6723_v59 }
 0x23b   :  { %2726 = vst [vmem:[#allocation8 + $0x3e0] sm:$0xff] %v2470_v45  ;;  %2727 = vst [vmem:[#allocation8 + $0x3e8] sm:$0xff] %v2471_v19  ;;  %v1869_v9 = vmul.f32 %v5401_v15, %v6724_v2  ;;  %v1870_v22 = vmul.f32 %v5401_v15, %v6725_v46  ;;  %v2176_v18 = vmul.f32 %v4752_v4, %v1863_v29 }
 0x23c   :  { %2728 = vst [vmem:[#allocation8 + $0x3f0] sm:$0xff] %v2472_v53  ;;  %2729 = vst [vmem:[#allocation8 + $0x3f8] sm:$0xff] %v2473_v61  ;;  %v2177_v30 = vmul.f32 %v4754_v23, %v1864_v21  ;;  %v2178_v54 = vmul.f32 %v4756_v6, %v1865_v24  ;;  %v2179_v45 = vmul.f32 %v4760_v49, %v1866_v63 }
 0x23d   :  { %v2180_v19 = vmul.f32 %v4766_v20, %v1867_v28  ;;  %v2181_v15 = vmul.f32 %v4782_v8, %v1868_v0  ;;  %v2182_v53 = vmul.f32 %v4793_v43, %v1869_v9  ;;  %v2183_v61 = vmul.f32 %v4797_v48, %v1870_v22 }
 0x23e   :  { %v2474_v35 = vadd.f32 %v4785_v13, %v2176_v18  ;;  %v2475_v29 = vadd.f32 %v4787_v11, %v2177_v30  ;;  %v2476_v36 = vadd.f32 %v4789_v17, %v2178_v54  ;;  %v2477_v21 = vadd.f32 %v4791_v10, %v2179_v45 }
 0x23f   :  { %v2478_v12 = vadd.f32 %v4795_v7, %v2180_v19  ;;  %v2479_v24 = vadd.f32 %v4799_v27, %v2181_v15  ;;  %v2480_v62 = vadd.f32 %v4801_v58, %v2182_v53  ;;  %v2481_v63 = vadd.f32 %v4803_v50, %v2183_v61  ;;  %v2969_v61 = vpop.eup %2968 }
 0x240   :  { %2730 = vst [vmem:[#allocation8 + $0x400] sm:$0xff] %v2474_v35  ;;  %2731 = vst [vmem:[#allocation8 + $0x408] sm:$0xff] %v2475_v29  ;;  %v1589_v34 = vmul.f32 %v5407_v5, %v5340_v31  ;;  %v1596_v28 = vmul.f32 %v5413_v44, %v5343_v32  ;;  %v1603_v59 = vmul.f32 %v5419_v3, %v5345_v37  ;;  %v1642_v15 = vand.u32 2147483648, %v5361_v55 }
 0x241   :  { %2732 = vst [vmem:[#allocation8 + $0x410] sm:$0xff] %v2476_v36  ;;  %2733 = vst [vmem:[#allocation8 + $0x418] sm:$0xff] %v2477_v21  ;;  %v1610_v0 = vmul.f32 %v5425_v16, %v5347_v14  ;;  %v1617_v2 = vmul.f32 %v5431_v25, %v5350_v57  ;;  %v1624_v41 = vmul.f32 %v5437_v47, %v5354_v39  ;;  %v6726_v21 = vld [vmem:[#allocation124_spill] sm:$0xff] }
 0x242   :  { %2734 = vst [vmem:[#allocation8 + $0x420] sm:$0xff] %v2478_v12  ;;  %2735 = vst [vmem:[#allocation8 + $0x428] sm:$0xff] %v2479_v24  ;;  %v1631_v5 = vmul.f32 %v5443_v1, %v5356_v56  ;;  %v1591_v44 = vsel %vm1590_vm4, %v5340_v31, %v1589_v34  ;;  %v1598_v3 = vsel %vm1597_vm5, %v5343_v32, %v1596_v28  ;;  %v1392_v32 = vpop.xlane.xlu1 %1391  ;;  %v6727_v12 = vld [vmem:[#allocation125_spill] sm:$0xff]  ;;  %v6729_v34 = vld [vmem:[#allocation127_spill] sm:$0xff] }
 0x243   :  { %2736 = vst [vmem:[#allocation8 + $0x430] sm:$0xff] %v2480_v62  ;;  %2737 = vst [vmem:[#allocation8 + $0x438] sm:$0xff] %v2481_v63  ;;  %v1605_v16 = vsel %vm1604_vm6, %v5345_v37, %v1603_v59  ;;  %v1638_v25 = vmul.f32 %v5449_v26, %v5361_v55  ;;  %v1594_v47 = vsel %vm1592_vm7, %v1593_v33, %v1591_v44  ;;  %v1383_v33 = vpop.xlane.xlu0 %1382  ;;  %v5667_v35 = vmul.f32 0.0009775171, %v1392_v32  ;;  %v6728_v62 = vld [vmem:[#allocation126_spill] sm:$0xff]  ;;  %v6730_v59 = vld [vmem:[#allocation129_spill] sm:$0xff] }
 0x244   :  { %v1601_v1 = vsel %vm1599_vm8, %v1600_v42, %v1598_v3  ;;  %v1608_v9 = vsel %vm1606_vm9, %v1607_v60, %v1605_v16  ;;  %v1612_v46 = vsel %vm1611_vm10, %v5347_v14, %v1610_v0  ;;  %v1704_v26 = vadd.f32 1e-05, %v1594_v47  ;;  %v6733_v3 = vld [vmem:[#allocation136_spill] sm:$0xff] }
 0x245   :  { %v1705_v22 = vadd.f32 1e-05, %v1601_v1  ;;  %v1706_v18 = vadd.f32 1e-05, %v1608_v9  ;;  %v1615_v31 = vsel %vm1613_vm11, %v1614_v38, %v1612_v46  ;;  %v1619_v37 = vsel %vm1618_vm12, %v5350_v57, %v1617_v2  ;;  %v6731_v2 = vld [vmem:[#allocation130_spill] sm:$0xff] }
 0x246   :  { %v1707_v42 = vadd.f32 1e-05, %v1615_v31  ;;  %v1626_v60 = vsel %vm1625_vm13, %v5354_v39, %v1624_v41  ;;  %v1633_v30 = vsel %vm1632_vm14, %v5356_v56, %v1631_v5  ;;  %2970 = vrcp.f32 %v1704_v26  ;;  %v1410_v56 = vpop.xlane.xlu1 %1409  ;;  %v6732_v5 = vld [vmem:[#allocation135_spill] sm:$0xff] }
 0x247   :  { %v1622_v14 = vsel %vm1620_vm15, %v1621_v51, %v1619_v37  ;;  %v1629_v38 = vsel %vm1627_vm0, %v1628_v52, %v1626_v60  ;;  %v1636_v54 = vsel %vm1634_vm1, %v1635_v40, %v1633_v30  ;;  %2972 = vrcp.f32 %v1705_v22  ;;  %v1401_v52 = vpop.xlane.xlu0 %1400 }
 0x248   :  { %v1708_v45 = vadd.f32 1e-05, %v1622_v14  ;;  %v1709_v19 = vadd.f32 1e-05, %v1629_v38  ;;  %2974 = vrcp.f32 %v1706_v18  ;;  %v1710_v53 = vadd.f32 1e-05, %v1636_v54 }
 0x249   :  { %v1640_v57 = vsel %vm1639_vm2, %v5361_v55, %v1638_v25  ;;  %2976 = vrcp.f32 %v1707_v42  ;;  %v5665_v40 = vmul.f32 0.0009775171, %v1383_v33  ;;  %v5669_v29 = vmul.f32 0.0009775171, %v1401_v52 }
 0x24a   :  { %v1643_v39 = vsel %vm1641_vm3, %v1642_v15, %v1640_v57  ;;  %2978 = vrcp.f32 %v1708_v45  ;;  %v5671_v36 = vmul.f32 0.0009775171, %v1410_v56  ;;  %v1872_v55 = vmul.f32 %v2969_v61, %v6726_v21  ;;  %v6734_v45 = vld [vmem:[#allocation131_spill] sm:$0xff]  ;;  %v6735_v15 = vld [vmem:[#allocation132_spill] sm:$0xff]  ;;  %v6736_v57 = vld [vmem:[#allocation133_spill] sm:$0xff] }
 0x24b   :  { %v1711_v51 = vadd.f32 1e-05, %v1643_v39  ;;  %2980 = vrcp.f32 %v1709_v19  ;;  %v1873_v24 = vmul.f32 %v2969_v61, %v6727_v12  ;;  %v1874_v63 = vmul.f32 %v2969_v61, %v6728_v62 }
 0x24c   :  { %2982 = vrcp.f32 %v1710_v53  ;;  %v1875_v28 = vmul.f32 %v2969_v61, %v6729_v34  ;;  %v1876_v0 = vmul.f32 %v2969_v61, %v6730_v59  ;;  %v1877_v41 = vmul.f32 %v2969_v61, %v6731_v2 }
 0x24d   :  { %2984 = vrcp.f32 %v1711_v51  ;;  %v1878_v44 = vmul.f32 %v2969_v61, %v6732_v5  ;;  %v1879_v16 = vmul.f32 %v2969_v61, %v6733_v3  ;;  %v2184_v25 = vmul.f32 %v4752_v4, %v1872_v55  ;;  %v6737_v51 = vld [vmem:[#allocation134_spill] sm:$0xff]  ;;  %v6738_v61 = vld [vmem:[#allocation137_spill] sm:$0xff] }
 0x24e   :  { %v2185_v47 = vmul.f32 %v4754_v23, %v1873_v24  ;;  %v2186_v1 = vmul.f32 %v4756_v6, %v1874_v63  ;;  %v2187_v9 = vmul.f32 %v4760_v49, %v1875_v28  ;;  %v2188_v46 = vmul.f32 %v4766_v20, %v1876_v0  ;;  %v6739_v55 = vld [vmem:[#allocation138_spill] sm:$0xff]  ;;  %v6740_v24 = vld [vmem:[#allocation143_spill] sm:$0xff]  ;;  %v6741_v63 = vld [vmem:[#allocation144_spill] sm:$0xff] }
 0x24f   :  { %v2189_v26 = vmul.f32 %v4782_v8, %v1877_v41  ;;  %v2190_v22 = vmul.f32 %v4793_v43, %v1878_v44  ;;  %v2191_v18 = vmul.f32 %v4797_v48, %v1879_v16  ;;  %v2482_v31 = vadd.f32 %v4785_v13, %v2184_v25 }
 0x250   :  { %v2483_v33 = vadd.f32 %v4787_v11, %v2185_v47  ;;  %v2484_v32 = vadd.f32 %v4789_v17, %v2186_v1  ;;  %v2485_v42 = vadd.f32 %v4791_v10, %v2187_v9  ;;  %v2486_v60 = vadd.f32 %v4795_v7, %v2188_v46 }
 0x251   :  { %v2487_v30 = vadd.f32 %v4799_v27, %v2189_v26  ;;  %v2488_v14 = vadd.f32 %v4801_v58, %v2190_v22  ;;  %v2489_v38 = vadd.f32 %v4803_v50, %v2191_v18  ;;  %2738 = vst [vmem:[#allocation8 + $0x440] sm:$0xff] %v2482_v31  ;;  %2986 = vrsqrt.f32 %v5665_v40 }
 0x252   :  { %2739 = vst [vmem:[#allocation8 + $0x448] sm:$0xff] %v2483_v33  ;;  %2740 = vst [vmem:[#allocation8 + $0x450] sm:$0xff] %v2484_v32  ;;  %2988 = vrsqrt.f32 %v5667_v35  ;;  %vm1646_vm4 = vcmp.eq.f32.partialorder %v5665_v40, inf  ;;  %vm1648_vm5 = vcmp.eq.f32.partialorder %v5665_v40, 0.0  ;;  %vm1653_vm6 = vcmp.eq.f32.partialorder %v5667_v35, inf }
 0x253   :  { %v2971_v37 = vpop.eup %2970  ;;  %2741 = vst [vmem:[#allocation8 + $0x458] sm:$0xff] %v2485_v42  ;;  %2742 = vst [vmem:[#allocation8 + $0x460] sm:$0xff] %v2486_v60  ;;  %2990 = vrsqrt.f32 %v5669_v29  ;;  %vm1655_vm7 = vcmp.eq.f32.partialorder %v5667_v35, 0.0  ;;  %vm1660_vm8 = vcmp.eq.f32.partialorder %v5669_v29, inf  ;;  %vm1667_vm9 = vcmp.eq.f32.partialorder %v5671_v36, inf }
 0x254   :  { %v2973_v54 = vpop.eup %2972  ;;  %v1881_v19 = vmul.f32 %v2971_v37, %v6734_v45  ;;  %v1882_v53 = vmul.f32 %v2971_v37, %v6735_v15  ;;  %v1883_v39 = vmul.f32 %v2971_v37, %v6736_v57  ;;  %v1884_v52 = vmul.f32 %v2971_v37, %v6737_v51  ;;  %2743 = vst [vmem:[#allocation8 + $0x468] sm:$0xff] %v2487_v30  ;;  %v6743_v30 = vld [vmem:[#allocation140_spill] sm:$0xff] }
 0x255   :  { %v5701_v56 = vpop.eup %2974  ;;  %2744 = vst [vmem:[#allocation8 + $0x470] sm:$0xff] %v2488_v14  ;;  %2745 = vst [vmem:[#allocation8 + $0x478] sm:$0xff] %v2489_v38  ;;  %v1885_v21 = vmul.f32 %v2971_v37, %v6738_v61  ;;  %v1886_v12 = vmul.f32 %v2971_v37, %v6739_v55  ;;  %v1887_v62 = vmul.f32 %v2971_v37, %v6740_v24  ;;  %v6744_v38 = vld [vmem:[#allocation141_spill] sm:$0xff]  ;;  %2992 = vrsqrt.f32 %v5671_v36 }
 0x256   :  { %v1888_v34 = vmul.f32 %v2971_v37, %v6741_v63  ;;  %v5707_v28 = vpop.eup %2976  ;;  %v2192_v59 = vmul.f32 %v4752_v4, %v1881_v19  ;;  %v2193_v0 = vmul.f32 %v4754_v23, %v1882_v53  ;;  %v2194_v2 = vmul.f32 %v4756_v6, %v1883_v39  ;;  %v6742_v37 = vld [vmem:[#allocation139_spill] sm:$0xff]  ;;  %v6745_v19 = vld [vmem:[#allocation142_spill] sm:$0xff]  ;;  %v6746_v53 = vld [vmem:[#allocation145_spill] sm:$0xff] }
 0x257   :  { %v2195_v41 = vmul.f32 %v4760_v49, %v1884_v52  ;;  %v5713_v5 = vpop.eup %2978  ;;  %v2196_v44 = vmul.f32 %v4766_v20, %v1885_v21  ;;  %v2197_v3 = vmul.f32 %v4782_v8, %v1886_v12  ;;  %v2198_v16 = vmul.f32 %v4793_v43, %v1887_v62  ;;  %v6747_v39 = vld [vmem:[#allocation146_spill] sm:$0xff]  ;;  %v6748_v52 = vld [vmem:[#allocation147_spill] sm:$0xff]  ;;  %v6749_v21 = vld [vmem:[#allocation152_spill] sm:$0xff] }
 0x258   :  { %v2199_v25 = vmul.f32 %v4797_v48, %v1888_v34  ;;  %v5719_v47 = vpop.eup %2980  ;;  %v2490_v1 = vadd.f32 %v4785_v13, %v2192_v59  ;;  %v2491_v9 = vadd.f32 %v4787_v11, %v2193_v0  ;;  %v2492_v46 = vadd.f32 %v4789_v17, %v2194_v2 }
 0x259   :  { %v2493_v26 = vadd.f32 %v4791_v10, %v2195_v41  ;;  %v5725_v22 = vpop.eup %2982  ;;  %v2494_v18 = vadd.f32 %v4795_v7, %v2196_v44  ;;  %v2495_v31 = vadd.f32 %v4799_v27, %v2197_v3  ;;  %v2496_v33 = vadd.f32 %v4801_v58, %v2198_v16 }
 0x25a   :  { %v2497_v32 = vadd.f32 %v4803_v50, %v2199_v25  ;;  %v5731_v42 = vpop.eup %2984  ;;  %2746 = vst [vmem:[#allocation8 + $0x480] sm:$0xff] %v2490_v1  ;;  %2747 = vst [vmem:[#allocation8 + $0x488] sm:$0xff] %v2491_v9  ;;  %v1890_v60 = vmul.f32 %v2973_v54, %v6742_v37  ;;  %v1891_v14 = vmul.f32 %v2973_v54, %v6743_v30  ;;  %v6753_v37 = vld [vmem:[#allocation151_spill] sm:$0xff]  ;;  %v6754_v30 = vld [vmem:[#allocation153_spill] sm:$0xff]  ;;  %vm1662_vm11 = vcmp.eq.f32.partialorder %v5669_v29, 0.0 }
 0x25b   :  { %2748 = vst [vmem:[#allocation8 + $0x490] sm:$0xff] %v2492_v46  ;;  %2749 = vst [vmem:[#allocation8 + $0x498] sm:$0xff] %v2493_v26  ;;  %v1892_v45 = vmul.f32 %v2973_v54, %v6744_v38  ;;  %v1893_v15 = vmul.f32 %v2973_v54, %v6745_v19  ;;  %v1894_v57 = vmul.f32 %v2973_v54, %v6746_v53  ;;  %v6750_v46 = vld [vmem:[#allocation148_spill] sm:$0xff]  ;;  %v6755_v38 = vld [vmem:[#allocation154_spill] sm:$0xff]  ;;  %vm1669_vm13 = vcmp.eq.f32.partialorder %v5671_v36, 0.0 }
 0x25c   :  { %2750 = vst [vmem:[#allocation8 + $0x4a0] sm:$0xff] %v2494_v18  ;;  %2751 = vst [vmem:[#allocation8 + $0x4a8] sm:$0xff] %v2495_v31  ;;  %v1895_v51 = vmul.f32 %v2973_v54, %v6747_v39  ;;  %v1896_v61 = vmul.f32 %v2973_v54, %v6748_v52  ;;  %v1897_v55 = vmul.f32 %v2973_v54, %v6749_v21  ;;  %v6751_v18 = vld [vmem:[#allocation149_spill] sm:$0xff]  ;;  %v6756_v19 = vld [vmem:[#allocation158_spill] sm:$0xff] }
 0x25d   :  { %2752 = vst [vmem:[#allocation8 + $0x4b0] sm:$0xff] %v2496_v33  ;;  %2753 = vst [vmem:[#allocation8 + $0x4b8] sm:$0xff] %v2497_v32  ;;  %v2200_v12 = vmul.f32 %v4752_v4, %v1890_v60  ;;  %v2201_v24 = vmul.f32 %v4754_v23, %v1891_v14  ;;  %v2202_v62 = vmul.f32 %v4756_v6, %v1892_v45  ;;  %v6752_v33 = vld [vmem:[#allocation150_spill] sm:$0xff]  ;;  %v6757_v53 = vld [vmem:[#allocation160_spill] sm:$0xff] }
 0x25e   :  { %v2203_v63 = vmul.f32 %v4760_v49, %v1893_v15  ;;  %v2204_v34 = vmul.f32 %v4766_v20, %v1894_v57  ;;  %v2205_v59 = vmul.f32 %v4782_v8, %v1895_v51  ;;  %v2206_v0 = vmul.f32 %v4793_v43, %v1896_v61 }
 0x25f   :  { %v2207_v2 = vmul.f32 %v4797_v48, %v1897_v55  ;;  %v2498_v41 = vadd.f32 %v4785_v13, %v2200_v12  ;;  %v2499_v54 = vadd.f32 %v4787_v11, %v2201_v24  ;;  %v2500_v44 = vadd.f32 %v4789_v17, %v2202_v62 }
 0x260   :  { %v2501_v3 = vadd.f32 %v4791_v10, %v2203_v63  ;;  %v2502_v16 = vadd.f32 %v4795_v7, %v2204_v34  ;;  %v2503_v25 = vadd.f32 %v4799_v27, %v2205_v59  ;;  %v2504_v1 = vadd.f32 %v4801_v58, %v2206_v0 }
 0x261   :  { %v2505_v9 = vadd.f32 %v4803_v50, %v2207_v2  ;;  %2754 = vst [vmem:[#allocation8 + $0x4c0] sm:$0xff] %v2498_v41  ;;  %2755 = vst [vmem:[#allocation8 + $0x4c8] sm:$0xff] %v2499_v54  ;;  %v1899_v26 = vmul.f32 %v5701_v56, %v6750_v46  ;;  %v1900_v31 = vmul.f32 %v5701_v56, %v6751_v18  ;;  %v6758_v54 = vld [vmem:[#allocation155_spill] sm:$0xff] }
 0x262   :  { %2756 = vst [vmem:[#allocation8 + $0x4d0] sm:$0xff] %v2500_v44  ;;  %2757 = vst [vmem:[#allocation8 + $0x4d8] sm:$0xff] %v2501_v3  ;;  %v1901_v32 = vmul.f32 %v5701_v56, %v6752_v33  ;;  %v1902_v60 = vmul.f32 %v5701_v56, %v6753_v37  ;;  %v1903_v14 = vmul.f32 %v5701_v56, %v6754_v30  ;;  %v6759_v3 = vld [vmem:[#allocation156_spill] sm:$0xff] }
 0x263   :  { %2758 = vst [vmem:[#allocation8 + $0x4e0] sm:$0xff] %v2502_v16  ;;  %2759 = vst [vmem:[#allocation8 + $0x4e8] sm:$0xff] %v2503_v25  ;;  %v1904_v45 = vmul.f32 %v5701_v56, %v6755_v38  ;;  %v1905_v15 = vmul.f32 %v5701_v56, %v6756_v19  ;;  %v1906_v57 = vmul.f32 %v5701_v56, %v6757_v53  ;;  %v6760_v25 = vld [vmem:[#allocation157_spill] sm:$0xff] }
 0x264   :  { %2760 = vst [vmem:[#allocation8 + $0x4f0] sm:$0xff] %v2504_v1  ;;  %2761 = vst [vmem:[#allocation8 + $0x4f8] sm:$0xff] %v2505_v9  ;;  %v2208_v39 = vmul.f32 %v4752_v4, %v1899_v26  ;;  %v2209_v51 = vmul.f32 %v4754_v23, %v1900_v31  ;;  %v2210_v52 = vmul.f32 %v4756_v6, %v1901_v32  ;;  %v6761_v9 = vld [vmem:[#allocation159_spill] sm:$0xff]  ;;  %v6762_v26 = vld [vmem:[#allocation161_spill] sm:$0xff] }
 0x265   :  { %v2211_v61 = vmul.f32 %v4760_v49, %v1902_v60  ;;  %v2212_v21 = vmul.f32 %v4766_v20, %v1903_v14  ;;  %v2213_v55 = vmul.f32 %v4782_v8, %v1904_v45  ;;  %v2214_v12 = vmul.f32 %v4793_v43, %v1905_v15  ;;  %v6763_v31 = vld [vmem:[#allocation162_spill] sm:$0xff]  ;;  %v6764_v32 = vld [vmem:[#allocation163_spill] sm:$0xff]  ;;  %v6765_v60 = vld [vmem:[#allocation168_spill] sm:$0xff] }
 0x266   :  { %v2215_v24 = vmul.f32 %v4797_v48, %v1906_v57  ;;  %v2506_v62 = vadd.f32 %v4785_v13, %v2208_v39  ;;  %v2507_v56 = vadd.f32 %v4787_v11, %v2209_v51  ;;  %v2508_v63 = vadd.f32 %v4789_v17, %v2210_v52 }
 0x267   :  { %v2509_v34 = vadd.f32 %v4791_v10, %v2211_v61  ;;  %v2510_v59 = vadd.f32 %v4795_v7, %v2212_v21  ;;  %v2511_v0 = vadd.f32 %v4799_v27, %v2213_v55  ;;  %v2512_v2 = vadd.f32 %v4801_v58, %v2214_v12 }
 0x268   :  { %v2513_v41 = vadd.f32 %v4803_v50, %v2215_v24  ;;  %2762 = vst [vmem:[#allocation8 + $0x500] sm:$0xff] %v2506_v62  ;;  %2763 = vst [vmem:[#allocation8 + $0x508] sm:$0xff] %v2507_v56  ;;  %v1908_v44 = vmul.f32 %v5707_v28, %v6758_v54  ;;  %v1909_v16 = vmul.f32 %v5707_v28, %v6759_v3  ;;  %v6766_v62 = vld [vmem:[#allocation164_spill] sm:$0xff]  ;;  %v6770_v54 = vld [vmem:[#allocation169_spill] sm:$0xff] }
 0x269   :  { %2764 = vst [vmem:[#allocation8 + $0x510] sm:$0xff] %v2508_v63  ;;  %2765 = vst [vmem:[#allocation8 + $0x518] sm:$0xff] %v2509_v34  ;;  %v1910_v1 = vmul.f32 %v5707_v28, %v6760_v25  ;;  %v1911_v46 = vmul.f32 %v5707_v28, %v6761_v9  ;;  %v1912_v18 = vmul.f32 %v5707_v28, %v6762_v26  ;;  %v6767_v63 = vld [vmem:[#allocation165_spill] sm:$0xff]  ;;  %v6771_v3 = vld [vmem:[#allocation170_spill] sm:$0xff] }
 0x26a   :  { %2766 = vst [vmem:[#allocation8 + $0x520] sm:$0xff] %v2510_v59  ;;  %2767 = vst [vmem:[#allocation8 + $0x528] sm:$0xff] %v2511_v0  ;;  %v1913_v33 = vmul.f32 %v5707_v28, %v6763_v31  ;;  %v1914_v37 = vmul.f32 %v5707_v28, %v6764_v32  ;;  %v1915_v30 = vmul.f32 %v5707_v28, %v6765_v60  ;;  %v6768_v59 = vld [vmem:[#allocation166_spill] sm:$0xff]  ;;  %v6772_v25 = vld [vmem:[#allocation175_spill] sm:$0xff] }
 0x26b   :  { %2768 = vst [vmem:[#allocation8 + $0x530] sm:$0xff] %v2512_v2  ;;  %2769 = vst [vmem:[#allocation8 + $0x538] sm:$0xff] %v2513_v41  ;;  %v2216_v14 = vmul.f32 %v4752_v4, %v1908_v44  ;;  %v2217_v38 = vmul.f32 %v4754_v23, %v1909_v16  ;;  %v2218_v45 = vmul.f32 %v4756_v6, %v1910_v1  ;;  %v6769_v2 = vld [vmem:[#allocation167_spill] sm:$0xff]  ;;  %v6773_v9 = vld [vmem:[#allocation176_spill] sm:$0xff] }
 0x26c   :  { %v2219_v19 = vmul.f32 %v4760_v49, %v1911_v46  ;;  %v2220_v15 = vmul.f32 %v4766_v20, %v1912_v18  ;;  %v2221_v53 = vmul.f32 %v4782_v8, %v1913_v33  ;;  %v2222_v57 = vmul.f32 %v4793_v43, %v1914_v37 }
 0x26d   :  { %v2223_v39 = vmul.f32 %v4797_v48, %v1915_v30  ;;  %v2514_v51 = vadd.f32 %v4785_v13, %v2216_v14  ;;  %v2515_v28 = vadd.f32 %v4787_v11, %v2217_v38  ;;  %v2516_v52 = vadd.f32 %v4789_v17, %v2218_v45 }
 0x26e   :  { %v2517_v61 = vadd.f32 %v4791_v10, %v2219_v19  ;;  %v2518_v21 = vadd.f32 %v4795_v7, %v2220_v15  ;;  %v2519_v55 = vadd.f32 %v4799_v27, %v2221_v53  ;;  %v2520_v12 = vadd.f32 %v4801_v58, %v2222_v57 }
 0x26f   :  { %v2521_v24 = vadd.f32 %v4803_v50, %v2223_v39  ;;  %2770 = vst [vmem:[#allocation8 + $0x540] sm:$0xff] %v2514_v51  ;;  %2771 = vst [vmem:[#allocation8 + $0x548] sm:$0xff] %v2515_v28  ;;  %v1917_v56 = vmul.f32 %v5713_v5, %v6766_v62  ;;  %v1918_v34 = vmul.f32 %v5713_v5, %v6767_v63  ;;  %v6774_v39 = vld [vmem:[#allocation171_spill] sm:$0xff]  ;;  %v6775_v28 = vld [vmem:[#allocation172_spill] sm:$0xff] }
 0x270   :  { %2772 = vst [vmem:[#allocation8 + $0x550] sm:$0xff] %v2516_v52  ;;  %2773 = vst [vmem:[#allocation8 + $0x558] sm:$0xff] %v2517_v61  ;;  %v1919_v0 = vmul.f32 %v5713_v5, %v6768_v59  ;;  %v1920_v41 = vmul.f32 %v5713_v5, %v6769_v2  ;;  %v1921_v44 = vmul.f32 %v5713_v5, %v6770_v54  ;;  %v6776_v61 = vld [vmem:[#allocation173_spill] sm:$0xff] }
 0x271   :  { %2774 = vst [vmem:[#allocation8 + $0x560] sm:$0xff] %v2518_v21  ;;  %2775 = vst [vmem:[#allocation8 + $0x568] sm:$0xff] %v2519_v55  ;;  %v1922_v16 = vmul.f32 %v5713_v5, %v6771_v3  ;;  %v1923_v1 = vmul.f32 %v5713_v5, %v6772_v25  ;;  %v1924_v46 = vmul.f32 %v5713_v5, %v6773_v9  ;;  %v6777_v55 = vld [vmem:[#allocation174_spill] sm:$0xff] }
 0x272   :  { %2776 = vst [vmem:[#allocation8 + $0x570] sm:$0xff] %v2520_v12  ;;  %2777 = vst [vmem:[#allocation8 + $0x578] sm:$0xff] %v2521_v24  ;;  %v2224_v26 = vmul.f32 %v4752_v4, %v1917_v56  ;;  %v2225_v18 = vmul.f32 %v4754_v23, %v1918_v34  ;;  %v2226_v31 = vmul.f32 %v4756_v6, %v1919_v0  ;;  %v6778_v24 = vld [vmem:[#allocation177_spill] sm:$0xff]  ;;  %v6779_v56 = vld [vmem:[#allocation178_spill] sm:$0xff] }
 0x273   :  { %v2227_v33 = vmul.f32 %v4760_v49, %v1920_v41  ;;  %v2228_v32 = vmul.f32 %v4766_v20, %v1921_v44  ;;  %v2229_v37 = vmul.f32 %v4782_v8, %v1922_v16  ;;  %v2230_v60 = vmul.f32 %v4793_v43, %v1923_v1  ;;  %v6780_v34 = vld [vmem:[#allocation179_spill] sm:$0xff]  ;;  %v6781_v0 = vld [vmem:[#allocation184_spill] sm:$0xff] }
 0x274   :  { %v2231_v30 = vmul.f32 %v4797_v48, %v1924_v46  ;;  %v2522_v14 = vadd.f32 %v4785_v13, %v2224_v26  ;;  %v2523_v5 = vadd.f32 %v4787_v11, %v2225_v18  ;;  %v2524_v38 = vadd.f32 %v4789_v17, %v2226_v31 }
 0x275   :  { %v2525_v45 = vadd.f32 %v4791_v10, %v2227_v33  ;;  %v2526_v19 = vadd.f32 %v4795_v7, %v2228_v32  ;;  %v2527_v15 = vadd.f32 %v4799_v27, %v2229_v37  ;;  %v2528_v53 = vadd.f32 %v4801_v58, %v2230_v60  ;;  %v6782_v60 = vld [vmem:[#allocation180_spill] sm:$0xff] }
 0x276   :  { %v2529_v57 = vadd.f32 %v4803_v50, %v2231_v30  ;;  %2778 = vst [vmem:[#allocation8 + $0x580] sm:$0xff] %v2522_v14  ;;  %2779 = vst [vmem:[#allocation8 + $0x588] sm:$0xff] %v2523_v5  ;;  %v1926_v51 = vmul.f32 %v5719_v47, %v6774_v39  ;;  %v1927_v52 = vmul.f32 %v5719_v47, %v6775_v28  ;;  %v6783_v14 = vld [vmem:[#allocation181_spill] sm:$0xff]  ;;  %v6787_v39 = vld [vmem:[#allocation186_spill] sm:$0xff] }
 0x277   :  { %2780 = vst [vmem:[#allocation8 + $0x590] sm:$0xff] %v2524_v38  ;;  %2781 = vst [vmem:[#allocation8 + $0x598] sm:$0xff] %v2525_v45  ;;  %v1928_v21 = vmul.f32 %v5719_v47, %v6776_v61  ;;  %v1929_v12 = vmul.f32 %v5719_v47, %v6777_v55  ;;  %v1930_v62 = vmul.f32 %v5719_v47, %v6778_v24  ;;  %v6784_v38 = vld [vmem:[#allocation182_spill] sm:$0xff]  ;;  %v6788_v28 = vld [vmem:[#allocation191_spill] sm:$0xff] }
 0x278   :  { %2782 = vst [vmem:[#allocation8 + $0x5a0] sm:$0xff] %v2526_v19  ;;  %2783 = vst [vmem:[#allocation8 + $0x5a8] sm:$0xff] %v2527_v15  ;;  %v1931_v63 = vmul.f32 %v5719_v47, %v6779_v56  ;;  %v1932_v59 = vmul.f32 %v5719_v47, %v6780_v34  ;;  %v1933_v2 = vmul.f32 %v5719_v47, %v6781_v0  ;;  %v6785_v19 = vld [vmem:[#allocation183_spill] sm:$0xff]  ;;  %v6789_v61 = vld [vmem:[#allocation192_spill] sm:$0xff] }
 0x279   :  { %2784 = vst [vmem:[#allocation8 + $0x5b0] sm:$0xff] %v2528_v53  ;;  %2785 = vst [vmem:[#allocation8 + $0x5b8] sm:$0xff] %v2529_v57  ;;  %v2232_v41 = vmul.f32 %v4752_v4, %v1926_v51  ;;  %v2233_v54 = vmul.f32 %v4754_v23, %v1927_v52  ;;  %v2234_v44 = vmul.f32 %v4756_v6, %v1928_v21  ;;  %v6786_v53 = vld [vmem:[#allocation185_spill] sm:$0xff] }
 0x27a   :  { %v2235_v3 = vmul.f32 %v4760_v49, %v1929_v12  ;;  %v2236_v16 = vmul.f32 %v4766_v20, %v1930_v62  ;;  %v2237_v25 = vmul.f32 %v4782_v8, %v1931_v63  ;;  %v2238_v1 = vmul.f32 %v4793_v43, %v1932_v59 }
 0x27b   :  { %v2239_v9 = vmul.f32 %v4797_v48, %v1933_v2  ;;  %v2530_v46 = vadd.f32 %v4785_v13, %v2232_v41  ;;  %v2531_v47 = vadd.f32 %v4787_v11, %v2233_v54  ;;  %v2532_v26 = vadd.f32 %v4789_v17, %v2234_v44 }
 0x27c   :  { %v2533_v18 = vadd.f32 %v4791_v10, %v2235_v3  ;;  %v2534_v31 = vadd.f32 %v4795_v7, %v2236_v16  ;;  %v2535_v33 = vadd.f32 %v4799_v27, %v2237_v25  ;;  %v2536_v32 = vadd.f32 %v4801_v58, %v2238_v1  ;;  %v6790_v25 = vld [vmem:[#allocation187_spill] sm:$0xff] }
 0x27d   :  { %v2537_v37 = vadd.f32 %v4803_v50, %v2239_v9  ;;  %2786 = vst [vmem:[#allocation8 + $0x5c0] sm:$0xff] %v2530_v46  ;;  %2787 = vst [vmem:[#allocation8 + $0x5c8] sm:$0xff] %v2531_v47  ;;  %v1935_v30 = vmul.f32 %v5725_v22, %v6782_v60  ;;  %v1936_v5 = vmul.f32 %v5725_v22, %v6783_v14  ;;  %v6791_v9 = vld [vmem:[#allocation188_spill] sm:$0xff]  ;;  %v6792_v47 = vld [vmem:[#allocation189_spill] sm:$0xff] }
 0x27e   :  { %2788 = vst [vmem:[#allocation8 + $0x5d0] sm:$0xff] %v2532_v26  ;;  %2789 = vst [vmem:[#allocation8 + $0x5d8] sm:$0xff] %v2533_v18  ;;  %v1937_v45 = vmul.f32 %v5725_v22, %v6784_v38  ;;  %v1938_v15 = vmul.f32 %v5725_v22, %v6785_v19  ;;  %v1939_v57 = vmul.f32 %v5725_v22, %v6786_v53  ;;  %v6793_v18 = vld [vmem:[#allocation190_spill] sm:$0xff] }
 0x27f   :  { %2790 = vst [vmem:[#allocation8 + $0x5e0] sm:$0xff] %v2534_v31  ;;  %2791 = vst [vmem:[#allocation8 + $0x5e8] sm:$0xff] %v2535_v33  ;;  %v1940_v51 = vmul.f32 %v5725_v22, %v6787_v39  ;;  %v1941_v52 = vmul.f32 %v5725_v22, %v6788_v28  ;;  %v1942_v21 = vmul.f32 %v5725_v22, %v6789_v61  ;;  %v6794_v33 = vld [vmem:[#allocation193_spill] sm:$0xff] }
 0x280   :  { %2792 = vst [vmem:[#allocation8 + $0x5f0] sm:$0xff] %v2536_v32  ;;  %2793 = vst [vmem:[#allocation8 + $0x5f8] sm:$0xff] %v2537_v37  ;;  %v2240_v55 = vmul.f32 %v4752_v4, %v1935_v30  ;;  %v2241_v12 = vmul.f32 %v4754_v23, %v1936_v5  ;;  %v2242_v24 = vmul.f32 %v4756_v6, %v1937_v45  ;;  %v6795_v37 = vld [vmem:[#allocation194_spill] sm:$0xff]  ;;  %v6796_v30 = vld [vmem:[#allocation195_spill] sm:$0xff] }
 0x281   :  { %v2243_v62 = vmul.f32 %v4760_v49, %v1938_v15  ;;  %v2244_v56 = vmul.f32 %v4766_v20, %v1939_v57  ;;  %v2245_v63 = vmul.f32 %v4782_v8, %v1940_v51  ;;  %v2246_v34 = vmul.f32 %v4793_v43, %v1941_v52  ;;  %v6797_v5 = vld [vmem:[#allocation200_spill] sm:$0xff]  ;;  %v1419_v52 = vpop.xlane.xlu0 %1418 }
 0x282   :  { %v2247_v59 = vmul.f32 %v4797_v48, %v1942_v21  ;;  %v2538_v0 = vadd.f32 %v4785_v13, %v2240_v55  ;;  %v2539_v22 = vadd.f32 %v4787_v11, %v2241_v12  ;;  %v2540_v2 = vadd.f32 %v4789_v17, %v2242_v24  ;;  %v1428_v12 = vpop.xlane.xlu1 %1427 }
 0x283   :  { %v2541_v41 = vadd.f32 %v4791_v10, %v2243_v62  ;;  %v2542_v54 = vadd.f32 %v4795_v7, %v2244_v56  ;;  %v2543_v44 = vadd.f32 %v4799_v27, %v2245_v63  ;;  %v2544_v3 = vadd.f32 %v4801_v58, %v2246_v34 }
 0x284   :  { %v2545_v16 = vadd.f32 %v4803_v50, %v2247_v59  ;;  %2794 = vst [vmem:[#allocation8 + $0x600] sm:$0xff] %v2538_v0  ;;  %2795 = vst [vmem:[#allocation8 + $0x608] sm:$0xff] %v2539_v22  ;;  %v1944_v1 = vmul.f32 %v5731_v42, %v6790_v25  ;;  %v1945_v46 = vmul.f32 %v5731_v42, %v6791_v9  ;;  %v1460_v34 = vmul.f32 0.0009775171, %v1419_v52  ;;  %v2987_v0 = vpop.eup %2986 }
 0x285   :  { %2796 = vst [vmem:[#allocation8 + $0x610] sm:$0xff] %v2540_v2  ;;  %2797 = vst [vmem:[#allocation8 + $0x618] sm:$0xff] %v2541_v41  ;;  %v1946_v26 = vmul.f32 %v5731_v42, %v6792_v47  ;;  %v1947_v31 = vmul.f32 %v5731_v42, %v6793_v18  ;;  %v1948_v32 = vmul.f32 %v5731_v42, %v6794_v33  ;;  %v1461_v59 = vmul.f32 0.0009775171, %v1428_v12  ;;  %v2989_v22 = vpop.eup %2988  ;;  %v6800_v12 = vld [vmem:[#allocation198_spill] sm:$0xff] }
 0x286   :  { %2798 = vst [vmem:[#allocation8 + $0x620] sm:$0xff] %v2542_v54  ;;  %2799 = vst [vmem:[#allocation8 + $0x628] sm:$0xff] %v2543_v44  ;;  %v1949_v60 = vmul.f32 %v5731_v42, %v6795_v37  ;;  %v1950_v14 = vmul.f32 %v5731_v42, %v6796_v30  ;;  %v1951_v38 = vmul.f32 %v5731_v42, %v6797_v5  ;;  %2994 = vrsqrt.f32 %v1460_v34  ;;  %v2991_v41 = vpop.eup %2990 }
 0x287   :  { %2800 = vst [vmem:[#allocation8 + $0x630] sm:$0xff] %v2544_v3  ;;  %2801 = vst [vmem:[#allocation8 + $0x638] sm:$0xff] %v2545_v16  ;;  %v2248_v45 = vmul.f32 %v4752_v4, %v1944_v1  ;;  %v2249_v19 = vmul.f32 %v4754_v23, %v1945_v46  ;;  %v2250_v15 = vmul.f32 %v4756_v6, %v1946_v26  ;;  %2996 = vrsqrt.f32 %v1461_v59  ;;  %v2993_v3 = vpop.eup %2992 }
 0x288   :  { %v2251_v53 = vmul.f32 %v4760_v49, %v1947_v31  ;;  %v2252_v57 = vmul.f32 %v4766_v20, %v1948_v32  ;;  %v2253_v39 = vmul.f32 %v4782_v8, %v1949_v60  ;;  %v2254_v51 = vmul.f32 %v4793_v43, %v1950_v14 }
 0x289   :  { %v2255_v28 = vmul.f32 %v4797_v48, %v1951_v38  ;;  %v2546_v61 = vadd.f32 %v4785_v13, %v2248_v45  ;;  %v2547_v42 = vadd.f32 %v4787_v11, %v2249_v19  ;;  %v2548_v21 = vadd.f32 %v4789_v17, %v2250_v15 }
 0x28a   :  { %v2549_v55 = vadd.f32 %v4791_v10, %v2251_v53  ;;  %v2550_v24 = vadd.f32 %v4795_v7, %v2252_v57  ;;  %v2551_v62 = vadd.f32 %v4799_v27, %v2253_v39  ;;  %v2552_v56 = vadd.f32 %v4801_v58, %v2254_v51 }
 0x28b   :  { %v2553_v63 = vadd.f32 %v4803_v50, %v2255_v28  ;;  %2802 = vst [vmem:[#allocation8 + $0x640] sm:$0xff] %v2546_v61  ;;  %2803 = vst [vmem:[#allocation8 + $0x648] sm:$0xff] %v2547_v42  ;;  %v1645_v2 = vmul.f32 %v2987_v0, %v5665_v40  ;;  %v1649_v54 = vand.u32 2147483648, %v5665_v40  ;;  %v1652_v44 = vmul.f32 %v2989_v22, %v5667_v35  ;;  %v6798_v42 = vld [vmem:[#allocation196_spill] sm:$0xff]  ;;  %v6804_v22 = vld [vmem:[#allocation207_spill] sm:$0xff] }
 0x28c   :  { %2804 = vst [vmem:[#allocation8 + $0x650] sm:$0xff] %v2548_v21  ;;  %2805 = vst [vmem:[#allocation8 + $0x658] sm:$0xff] %v2549_v55  ;;  %v1656_v25 = vand.u32 2147483648, %v5667_v35  ;;  %v1659_v1 = vmul.f32 %v2991_v41, %v5669_v29  ;;  %v1666_v26 = vmul.f32 %v2993_v3, %v5671_v36  ;;  %v1663_v30 = vand.u32 2147483648, %v5669_v29  ;;  %v6799_v21 = vld [vmem:[#allocation197_spill] sm:$0xff]  ;;  %v6805_v41 = vld [vmem:[#allocation208_spill] sm:$0xff] }
 0x28d   :  { %2806 = vst [vmem:[#allocation8 + $0x660] sm:$0xff] %v2550_v24  ;;  %2807 = vst [vmem:[#allocation8 + $0x668] sm:$0xff] %v2551_v62  ;;  %v1647_v16 = vsel %vm1646_vm4, %v5665_v40, %v1645_v2  ;;  %v1654_v47 = vsel %vm1653_vm6, %v5667_v35, %v1652_v44  ;;  %vm1674_vm10 = vcmp.eq.f32.partialorder %v1460_v34, inf  ;;  %v1670_v35 = vand.u32 2147483648, %v5671_v36  ;;  %v6801_v62 = vld [vmem:[#allocation199_spill] sm:$0xff] }
 0x28e   :  { %2808 = vst [vmem:[#allocation8 + $0x670] sm:$0xff] %v2552_v56  ;;  %2809 = vst [vmem:[#allocation8 + $0x678] sm:$0xff] %v2553_v63  ;;  %v1650_v46 = vsel %vm1648_vm5, %v1649_v54, %v1647_v16  ;;  %v1657_v33 = vsel %vm1655_vm7, %v1656_v25, %v1654_v47  ;;  %v1661_v60 = vsel %vm1660_vm8, %v5669_v29, %v1659_v1  ;;  %vm1681_vm12 = vcmp.eq.f32.partialorder %v1461_v59, inf  ;;  %v6802_v63 = vld [vmem:[#allocation201_spill] sm:$0xff] }
 0x28f   :  { %v1712_v31 = vadd.f32 1e-05, %v1650_v46  ;;  %v1713_v37 = vadd.f32 1e-05, %v1657_v33  ;;  %v1668_v14 = vsel %vm1667_vm9, %v5671_v36, %v1666_v26  ;;  %v1664_v38 = vsel %vm1662_vm11, %v1663_v30, %v1661_v60 }
 0x290   :  { %v1677_v45 = vand.u32 2147483648, %v1460_v34  ;;  %v1671_v15 = vsel %vm1669_vm13, %v1670_v35, %v1668_v14  ;;  %vm1676_vm14 = vcmp.eq.f32.partialorder %v1460_v34, 0.0  ;;  %v1684_v53 = vand.u32 2147483648, %v1461_v59  ;;  %v6806_v14 = vld [vmem:[#allocation202_spill] sm:$0xff] }
 0x291   :  { %2998 = vrcp.f32 %v1712_v31  ;;  %vm1683_vm15 = vcmp.eq.f32.partialorder %v1461_v59, 0.0  ;;  %v1714_v39 = vadd.f32 1e-05, %v1664_v38  ;;  %v1715_v28 = vadd.f32 1e-05, %v1671_v15  ;;  %v6809_v15 = vld [vmem:[#allocation206_spill] sm:$0xff] }
 0x292   :  { %3000 = vrcp.f32 %v1713_v37 }
 0x293   :  { %v2995_v9 = vpop.eup %2994  ;;  %3002 = vrcp.f32 %v1714_v39 }
 0x294   :  { %v2997_v18 = vpop.eup %2996  ;;  %v1673_v32 = vmul.f32 %v2995_v9, %v1460_v34  ;;  %3004 = vrcp.f32 %v1715_v28 }
 0x295   :  { %v1680_v40 = vmul.f32 %v2997_v18, %v1461_v59 }
 0x296   :  { %v1675_v5 = vsel %vm1674_vm10, %v1460_v34, %v1673_v32 }
 0x297   :  { %v1682_v19 = vsel %vm1681_vm12, %v1461_v59, %v1680_v40  ;;  %v1678_v57 = vsel %vm1676_vm14, %v1677_v45, %v1675_v5  ;;  %v6803_v59 = vld [vmem:[#allocation203_spill] sm:$0xff]  ;;  %v6807_v5 = vld [vmem:[#allocation204_spill] sm:$0xff]  ;;  %v6808_v45 = vld [vmem:[#allocation205_spill] sm:$0xff] }
 0x298   :  { %v1685_v51 = vsel %vm1683_vm15, %v1684_v53, %v1682_v19  ;;  %v1716_v52 = vadd.f32 1e-05, %v1678_v57  ;;  %v6810_v57 = vld [vmem:[#allocation209_spill] sm:$0xff] }
 0x299   :  { %v1717_v29 = vadd.f32 1e-05, %v1685_v51  ;;  %v6811_v51 = vld [vmem:[#allocation210_spill] sm:$0xff] }
 0x29a   :  { %3006 = vrcp.f32 %v1716_v52  ;;  %v6812_v52 = vld [vmem:[#allocation215_spill] sm:$0xff] }
 0x29b   :  { %3008 = vrcp.f32 %v1717_v29 }
 0x29e   :  { %v2999_v61 = vpop.eup %2998 }
 0x29f   :  { %v1953_v36 = vmul.f32 %v2999_v61, %v6798_v42  ;;  %v1954_v55 = vmul.f32 %v2999_v61, %v6799_v21  ;;  %v1955_v24 = vmul.f32 %v2999_v61, %v6800_v12  ;;  %v1956_v56 = vmul.f32 %v2999_v61, %v6801_v62  ;;  %v3001_v1 = vpop.eup %3000 }
 0x2a0   :  { %v1957_v34 = vmul.f32 %v2999_v61, %v6802_v63  ;;  %v1958_v0 = vmul.f32 %v2999_v61, %v6803_v59  ;;  %v1959_v2 = vmul.f32 %v2999_v61, %v6804_v22  ;;  %v1960_v54 = vmul.f32 %v2999_v61, %v6805_v41  ;;  %v6813_v61 = vld [vmem:[#allocation216_spill] sm:$0xff] }
 0x2a1   :  { %v2256_v44 = vmul.f32 %v4752_v4, %v1953_v36  ;;  %v2257_v3 = vmul.f32 %v4754_v23, %v1954_v55  ;;  %v2258_v16 = vmul.f32 %v4756_v6, %v1955_v24  ;;  %v2259_v25 = vmul.f32 %v4760_v49, %v1956_v56  ;;  %v3003_v24 = vpop.eup %3002 }
 0x2a2   :  { %v2260_v9 = vmul.f32 %v4766_v20, %v1957_v34  ;;  %v2261_v46 = vmul.f32 %v4782_v8, %v1958_v0  ;;  %v2262_v47 = vmul.f32 %v4793_v43, %v1959_v2  ;;  %v2263_v26 = vmul.f32 %v4797_v48, %v1960_v54  ;;  %v3005_v59 = vpop.eup %3004 }
 0x2a3   :  { %v2554_v18 = vadd.f32 %v4785_v13, %v2256_v44  ;;  %v2555_v31 = vadd.f32 %v4787_v11, %v2257_v3  ;;  %v2556_v33 = vadd.f32 %v4789_v17, %v2258_v16  ;;  %v2557_v32 = vadd.f32 %v4791_v10, %v2259_v25 }
 0x2a4   :  { %v2558_v40 = vadd.f32 %v4795_v7, %v2260_v9  ;;  %v2559_v37 = vadd.f32 %v4799_v27, %v2261_v46  ;;  %v2560_v60 = vadd.f32 %v4801_v58, %v2262_v47  ;;  %v2561_v30 = vadd.f32 %v4803_v50, %v2263_v26  ;;  %v6814_v9 = vld [vmem:[#allocation211_spill] sm:$0xff]  ;;  %v6815_v47 = vld [vmem:[#allocation212_spill] sm:$0xff] }
 0x2a5   :  { %2810 = vst [vmem:[#allocation8 + $0x680] sm:$0xff] %v2554_v18  ;;  %2811 = vst [vmem:[#allocation8 + $0x688] sm:$0xff] %v2555_v31  ;;  %v1962_v35 = vmul.f32 %v3001_v1, %v6806_v14  ;;  %v1963_v38 = vmul.f32 %v3001_v1, %v6807_v5  ;;  %v1964_v19 = vmul.f32 %v3001_v1, %v6808_v45  ;;  %v6816_v18 = vld [vmem:[#allocation213_spill] sm:$0xff]  ;;  %v6820_v14 = vld [vmem:[#allocation223_spill] sm:$0xff] }
 0x2a6   :  { %2812 = vst [vmem:[#allocation8 + $0x690] sm:$0xff] %v2556_v33  ;;  %2813 = vst [vmem:[#allocation8 + $0x698] sm:$0xff] %v2557_v32  ;;  %v1965_v53 = vmul.f32 %v3001_v1, %v6809_v15  ;;  %v1966_v39 = vmul.f32 %v3001_v1, %v6810_v57  ;;  %v1967_v28 = vmul.f32 %v3001_v1, %v6811_v51  ;;  %v6817_v33 = vld [vmem:[#allocation214_spill] sm:$0xff]  ;;  %v6821_v5 = vld [vmem:[#allocation224_spill] sm:$0xff] }
 0x2a7   :  { %2814 = vst [vmem:[#allocation8 + $0x6a0] sm:$0xff] %v2558_v40  ;;  %2815 = vst [vmem:[#allocation8 + $0x6a8] sm:$0xff] %v2559_v37  ;;  %v1968_v29 = vmul.f32 %v3001_v1, %v6812_v52  ;;  %v1969_v42 = vmul.f32 %v3001_v1, %v6813_v61  ;;  %v2264_v36 = vmul.f32 %v4752_v4, %v1962_v35  ;;  %v6017_v54 = vpop.eup %3006  ;;  %v6818_v40 = vld [vmem:[#allocation217_spill] sm:$0xff] }
 0x2a8   :  { %2816 = vst [vmem:[#allocation8 + $0x6b0] sm:$0xff] %v2560_v60  ;;  %2817 = vst [vmem:[#allocation8 + $0x6b8] sm:$0xff] %v2561_v30  ;;  %v2265_v21 = vmul.f32 %v4754_v23, %v1963_v38  ;;  %v2266_v55 = vmul.f32 %v4756_v6, %v1964_v19  ;;  %v2267_v12 = vmul.f32 %v4760_v49, %v1965_v53  ;;  %v6023_v1 = vpop.eup %3008  ;;  %v6819_v60 = vld [vmem:[#allocation218_spill] sm:$0xff] }
 0x2a9   :  { %v2268_v62 = vmul.f32 %v4766_v20, %v1966_v39  ;;  %v2269_v56 = vmul.f32 %v4782_v8, %v1967_v28  ;;  %v2270_v63 = vmul.f32 %v4793_v43, %v1968_v29  ;;  %v2271_v34 = vmul.f32 %v4797_v48, %v1969_v42 }
 0x2aa   :  { %v2562_v0 = vadd.f32 %v4785_v13, %v2264_v36  ;;  %v2563_v22 = vadd.f32 %v4787_v11, %v2265_v21  ;;  %v2564_v2 = vadd.f32 %v4789_v17, %v2266_v55  ;;  %v2565_v41 = vadd.f32 %v4791_v10, %v2267_v12 }
 0x2ab   :  { %v2566_v44 = vadd.f32 %v4795_v7, %v2268_v62  ;;  %v2567_v3 = vadd.f32 %v4799_v27, %v2269_v56  ;;  %v2568_v16 = vadd.f32 %v4801_v58, %v2270_v63  ;;  %v2569_v25 = vadd.f32 %v4803_v50, %v2271_v34  ;;  %v6823_v56 = vld [vmem:[#allocation220_spill] sm:$0xff]  ;;  %v6824_v34 = vld [vmem:[#allocation221_spill] sm:$0xff] }
 0x2ac   :  { %2818 = vst [vmem:[#allocation8 + $0x6c0] sm:$0xff] %v2562_v0  ;;  %2819 = vst [vmem:[#allocation8 + $0x6c8] sm:$0xff] %v2563_v22  ;;  %v1971_v46 = vmul.f32 %v3003_v24, %v6814_v9  ;;  %v1972_v26 = vmul.f32 %v3003_v24, %v6815_v47  ;;  %v1973_v31 = vmul.f32 %v3003_v24, %v6816_v18  ;;  %v6825_v22 = vld [vmem:[#allocation222_spill] sm:$0xff] }
 0x2ad   :  { %2820 = vst [vmem:[#allocation8 + $0x6d0] sm:$0xff] %v2564_v2  ;;  %2821 = vst [vmem:[#allocation8 + $0x6d8] sm:$0xff] %v2565_v41  ;;  %v1974_v32 = vmul.f32 %v3003_v24, %v6817_v33  ;;  %v1975_v37 = vmul.f32 %v3003_v24, %v6818_v40  ;;  %v1976_v30 = vmul.f32 %v3003_v24, %v6819_v60  ;;  %v6826_v41 = vld [vmem:[#allocation225_spill] sm:$0xff] }
 0x2ae   :  { %2822 = vst [vmem:[#allocation8 + $0x6e0] sm:$0xff] %v2566_v44  ;;  %2823 = vst [vmem:[#allocation8 + $0x6e8] sm:$0xff] %v2567_v3  ;;  %v1977_v35 = vmul.f32 %v3003_v24, %v6820_v14  ;;  %v1978_v38 = vmul.f32 %v3003_v24, %v6821_v5  ;;  %v2272_v45 = vmul.f32 %v4752_v4, %v1971_v46  ;;  %v6822_v24 = vld [vmem:[#allocation219_spill] sm:$0xff]  ;;  %v6827_v3 = vld [vmem:[#allocation226_spill] sm:$0xff] }
 0x2af   :  { %2824 = vst [vmem:[#allocation8 + $0x6f0] sm:$0xff] %v2568_v16  ;;  %2825 = vst [vmem:[#allocation8 + $0x6f8] sm:$0xff] %v2569_v25  ;;  %v2273_v19 = vmul.f32 %v4754_v23, %v1972_v26  ;;  %v2274_v15 = vmul.f32 %v4756_v6, %v1973_v31  ;;  %v2275_v53 = vmul.f32 %v4760_v49, %v1974_v32  ;;  %v6828_v25 = vld [vmem:[#allocation231_spill] sm:$0xff]  ;;  %v6829_v46 = vld [vmem:[#allocation232_spill] sm:$0xff] }
 0x2b0   :  { %v2276_v57 = vmul.f32 %v4766_v20, %v1975_v37  ;;  %v2277_v39 = vmul.f32 %v4782_v8, %v1976_v30  ;;  %v2278_v51 = vmul.f32 %v4793_v43, %v1977_v35  ;;  %v2279_v28 = vmul.f32 %v4797_v48, %v1978_v38 }
 0x2b1   :  { %v2570_v52 = vadd.f32 %v4785_v13, %v2272_v45  ;;  %v2571_v29 = vadd.f32 %v4787_v11, %v2273_v19  ;;  %v2572_v61 = vadd.f32 %v4789_v17, %v2274_v15  ;;  %v2573_v42 = vadd.f32 %v4791_v10, %v2275_v53  ;;  %v6830_v15 = vld [vmem:[#allocation227_spill] sm:$0xff] }
 0x2b2   :  { %v2574_v36 = vadd.f32 %v4795_v7, %v2276_v57  ;;  %v2575_v21 = vadd.f32 %v4799_v27, %v2277_v39  ;;  %v2576_v55 = vadd.f32 %v4801_v58, %v2278_v51  ;;  %v2577_v12 = vadd.f32 %v4803_v50, %v2279_v28  ;;  %v6831_v57 = vld [vmem:[#allocation228_spill] sm:$0xff]  ;;  %v6832_v51 = vld [vmem:[#allocation229_spill] sm:$0xff] }
 0x2b3   :  { %2826 = vst [vmem:[#allocation8 + $0x700] sm:$0xff] %v2570_v52  ;;  %2827 = vst [vmem:[#allocation8 + $0x708] sm:$0xff] %v2571_v29  ;;  %v1980_v62 = vmul.f32 %v3005_v59, %v6822_v24  ;;  %v1981_v63 = vmul.f32 %v3005_v59, %v6823_v56  ;;  %v1982_v0 = vmul.f32 %v3005_v59, %v6824_v34  ;;  %v6833_v52 = vld [vmem:[#allocation230_spill] sm:$0xff]  ;;  %v6837_v24 = vld [vmem:[#allocation240_spill] sm:$0xff] }
 0x2b4   :  { %2828 = vst [vmem:[#allocation8 + $0x710] sm:$0xff] %v2572_v61  ;;  %2829 = vst [vmem:[#allocation8 + $0x718] sm:$0xff] %v2573_v42  ;;  %v1983_v2 = vmul.f32 %v3005_v59, %v6825_v22  ;;  %v1984_v44 = vmul.f32 %v3005_v59, %v6826_v41  ;;  %v1985_v16 = vmul.f32 %v3005_v59, %v6827_v3  ;;  %v6834_v61 = vld [vmem:[#allocation233_spill] sm:$0xff] }
 0x2b5   :  { %2830 = vst [vmem:[#allocation8 + $0x720] sm:$0xff] %v2574_v36  ;;  %2831 = vst [vmem:[#allocation8 + $0x728] sm:$0xff] %v2575_v21  ;;  %v1986_v9 = vmul.f32 %v3005_v59, %v6828_v25  ;;  %v1987_v47 = vmul.f32 %v3005_v59, %v6829_v46  ;;  %v2280_v26 = vmul.f32 %v4752_v4, %v1980_v62  ;;  %v6835_v36 = vld [vmem:[#allocation238_spill] sm:$0xff] }
 0x2b6   :  { %2832 = vst [vmem:[#allocation8 + $0x730] sm:$0xff] %v2576_v55  ;;  %2833 = vst [vmem:[#allocation8 + $0x738] sm:$0xff] %v2577_v12  ;;  %v2281_v18 = vmul.f32 %v4754_v23, %v1981_v63  ;;  %v2282_v31 = vmul.f32 %v4756_v6, %v1982_v0  ;;  %v2283_v33 = vmul.f32 %v4760_v49, %v1983_v2  ;;  %v6836_v55 = vld [vmem:[#allocation239_spill] sm:$0xff] }
 0x2b7   :  { %v2284_v32 = vmul.f32 %v4766_v20, %v1984_v44  ;;  %v2285_v40 = vmul.f32 %v4782_v8, %v1985_v16  ;;  %v2286_v37 = vmul.f32 %v4793_v43, %v1986_v9  ;;  %v2287_v60 = vmul.f32 %v4797_v48, %v1987_v47 }
 0x2b8   :  { %v2578_v30 = vadd.f32 %v4785_v13, %v2280_v26  ;;  %v2579_v59 = vadd.f32 %v4787_v11, %v2281_v18  ;;  %v2580_v14 = vadd.f32 %v4789_v17, %v2282_v31  ;;  %v2581_v35 = vadd.f32 %v4791_v10, %v2283_v33  ;;  %v6838_v18 = vld [vmem:[#allocation234_spill] sm:$0xff]  ;;  %v6839_v33 = vld [vmem:[#allocation235_spill] sm:$0xff] }
 0x2b9   :  { %v2582_v5 = vadd.f32 %v4795_v7, %v2284_v32  ;;  %v2583_v38 = vadd.f32 %v4799_v27, %v2285_v40  ;;  %v2584_v45 = vadd.f32 %v4801_v58, %v2286_v37  ;;  %v2585_v19 = vadd.f32 %v4803_v50, %v2287_v60  ;;  %v6840_v40 = vld [vmem:[#allocation236_spill] sm:$0xff]  ;;  %v6841_v60 = vld [vmem:[#allocation237_spill] sm:$0xff] }
 0x2ba   :  { %2834 = vst [vmem:[#allocation8 + $0x740] sm:$0xff] %v2578_v30  ;;  %2835 = vst [vmem:[#allocation8 + $0x748] sm:$0xff] %v2579_v59  ;;  %v1989_v53 = vmul.f32 %v6017_v54, %v6830_v15  ;;  %v1990_v39 = vmul.f32 %v6017_v54, %v6831_v57  ;;  %v1991_v28 = vmul.f32 %v6017_v54, %v6832_v51  ;;  %v6842_v59 = vld [vmem:[#allocation241_spill] sm:$0xff] }
 0x2bb   :  { %2836 = vst [vmem:[#allocation8 + $0x750] sm:$0xff] %v2580_v14  ;;  %2837 = vst [vmem:[#allocation8 + $0x758] sm:$0xff] %v2581_v35  ;;  %v1992_v29 = vmul.f32 %v6017_v54, %v6833_v52  ;;  %v1993_v42 = vmul.f32 %v6017_v54, %v6834_v61  ;;  %v1994_v21 = vmul.f32 %v6017_v54, %v6835_v36  ;;  %v6843_v35 = vld [vmem:[#allocation242_spill] sm:$0xff] }
 0x2bc   :  { %2838 = vst [vmem:[#allocation8 + $0x760] sm:$0xff] %v2582_v5  ;;  %2839 = vst [vmem:[#allocation8 + $0x768] sm:$0xff] %v2583_v38  ;;  %v1995_v12 = vmul.f32 %v6017_v54, %v6836_v55  ;;  %v1996_v62 = vmul.f32 %v6017_v54, %v6837_v24  ;;  %v2288_v56 = vmul.f32 %v4752_v4, %v1989_v53  ;;  %v6844_v38 = vld [vmem:[#allocation243_spill] sm:$0xff] }
 0x2bd   :  { %2840 = vst [vmem:[#allocation8 + $0x770] sm:$0xff] %v2584_v45  ;;  %2841 = vst [vmem:[#allocation8 + $0x778] sm:$0xff] %v2585_v19  ;;  %v2289_v63 = vmul.f32 %v4754_v23, %v1990_v39  ;;  %v2290_v34 = vmul.f32 %v4756_v6, %v1991_v28  ;;  %v2291_v0 = vmul.f32 %v4760_v49, %v1992_v29  ;;  %v6845_v19 = vld [vmem:[#allocation244_spill] sm:$0xff] }
 0x2be   :  { %v2292_v22 = vmul.f32 %v4766_v20, %v1993_v42  ;;  %v2293_v2 = vmul.f32 %v4782_v8, %v1994_v21  ;;  %v2294_v41 = vmul.f32 %v4793_v43, %v1995_v12  ;;  %v2295_v44 = vmul.f32 %v4797_v48, %v1996_v62 }
 0x2bf   :  { %v2586_v3 = vadd.f32 %v4785_v13, %v2288_v56  ;;  %v2587_v54 = vadd.f32 %v4787_v11, %v2289_v63  ;;  %v2588_v16 = vadd.f32 %v4789_v17, %v2290_v34  ;;  %v2589_v25 = vadd.f32 %v4791_v10, %v2291_v0 }
 0x2c0   :  { %v2590_v9 = vadd.f32 %v4795_v7, %v2292_v22  ;;  %v2591_v46 = vadd.f32 %v4799_v27, %v2293_v2  ;;  %v2592_v47 = vadd.f32 %v4801_v58, %v2294_v41  ;;  %v2593_v26 = vadd.f32 %v4803_v50, %v2295_v44 }
 0x2c1   :  { %2842 = vst [vmem:[#allocation8 + $0x780] sm:$0xff] %v2586_v3  ;;  %2843 = vst [vmem:[#allocation8 + $0x788] sm:$0xff] %v2587_v54  ;;  %v1998_v31 = vmul.f32 %v6023_v1, %v6838_v18  ;;  %v1999_v32 = vmul.f32 %v6023_v1, %v6839_v33  ;;  %v2000_v37 = vmul.f32 %v6023_v1, %v6840_v40 }
 0x2c2   :  { %2844 = vst [vmem:[#allocation8 + $0x790] sm:$0xff] %v2588_v16  ;;  %2845 = vst [vmem:[#allocation8 + $0x798] sm:$0xff] %v2589_v25  ;;  %v2001_v30 = vmul.f32 %v6023_v1, %v6841_v60  ;;  %v2002_v14 = vmul.f32 %v6023_v1, %v6842_v59  ;;  %v2003_v5 = vmul.f32 %v6023_v1, %v6843_v35 }
 0x2c3   :  { %2846 = vst [vmem:[#allocation8 + $0x7a0] sm:$0xff] %v2590_v9  ;;  %2847 = vst [vmem:[#allocation8 + $0x7a8] sm:$0xff] %v2591_v46  ;;  %v2004_v45 = vmul.f32 %v6023_v1, %v6844_v38  ;;  %v2005_v15 = vmul.f32 %v6023_v1, %v6845_v19  ;;  %v2296_v53 = vmul.f32 %v4752_v4, %v1998_v31 }
 0x2c4   :  { %2848 = vst [vmem:[#allocation8 + $0x7b0] sm:$0xff] %v2592_v47  ;;  %2849 = vst [vmem:[#allocation8 + $0x7b8] sm:$0xff] %v2593_v26  ;;  %v2297_v57 = vmul.f32 %v4754_v23, %v1999_v32  ;;  %v2298_v39 = vmul.f32 %v4756_v6, %v2000_v37  ;;  %v2299_v51 = vmul.f32 %v4760_v49, %v2001_v30 }
 0x2c5   :  { %v2300_v28 = vmul.f32 %v4766_v20, %v2002_v14  ;;  %v2301_v52 = vmul.f32 %v4782_v8, %v2003_v5  ;;  %v2302_v29 = vmul.f32 %v4793_v43, %v2004_v45  ;;  %v2303_v61 = vmul.f32 %v4797_v48, %v2005_v15 }
 0x2c6   :  { %v2594_v1 = vadd.f32 %v4785_v13, %v2296_v53  ;;  %v2595_v4 = vadd.f32 %v4787_v11, %v2297_v57  ;;  %v2596_v23 = vadd.f32 %v4789_v17, %v2298_v39  ;;  %v2597_v6 = vadd.f32 %v4791_v10, %v2299_v51 }
 0x2c7   :  { %v2598_v49 = vadd.f32 %v4795_v7, %v2300_v28  ;;  %v2599_v42 = vadd.f32 %v4799_v27, %v2301_v52  ;;  %v2600_v20 = vadd.f32 %v4801_v58, %v2302_v29  ;;  %v2601_v8 = vadd.f32 %v4803_v50, %v2303_v61 }
 0x2c8   :  { %2850 = vst [vmem:[#allocation8 + $0x7c0] sm:$0xff] %v2594_v1  ;;  %2851 = vst [vmem:[#allocation8 + $0x7c8] sm:$0xff] %v2595_v4 }
 0x2c9   :  { %2852 = vst [vmem:[#allocation8 + $0x7d0] sm:$0xff] %v2596_v23  ;;  %2853 = vst [vmem:[#allocation8 + $0x7d8] sm:$0xff] %v2597_v6 }
 0x2ca   :  { %2854 = vst [vmem:[#allocation8 + $0x7e0] sm:$0xff] %v2598_v49  ;;  %2855 = vst [vmem:[#allocation8 + $0x7e8] sm:$0xff] %v2599_v42 }
 0x2cb   :  { %2856 = vst [vmem:[#allocation8 + $0x7f0] sm:$0xff] %v2600_v20  ;;  %2857 = vst [vmem:[#allocation8 + $0x7f8] sm:$0xff] %v2601_v8 }
 0x2cc   :  { %3330 = shalt.err (!%p3327_p5)
}
 0x2cd   :  { %2869 = dma.vmem_to_hbm [thread:$0]  %s2864_s2, 32768, %s6146_s3, [#allocation4], %s3347_s20, %s3347_s20, %s3348_s21  }
 0x2ce   :  { %3343 = dma.done.wait [#allocation4], 32768  }
 0x2cf   :  { %3344 = vsyncadd [#allocation4], 4294934528 }
 0x2d0   :  { %2873 = vsyncpa [#allocation3], 1 }
 0x2d1   :  { %2874 = vsyncpa [#allocation6], 1 }
 0x2d2   :  { %2875 = vsyncpa [#allocation4], 1 }

</bundles_post_ra>
